<compile_context>
chip_gen: v6e
topology: v6e:2x2x1
jax: 0.10.0
libtpu: 0.0.40
codegen_flags: <defaults>
</compile_context>

<pallas_src>
import jax
import jax.numpy as jnp
from jax.experimental import pallas as pl
from jax.experimental.pallas import tpu as pltpu

# ----------------- small synthetic config (consistent with the module) --------
B = 2                      # batch
C_IN = 3                   # image channels
IMG = 16                   # input resolution
PATCH = 4                  # patch size
H = W = IMG // PATCH       # token grid
N = H * W                  # number of grid tokens
D = 32                     # embed_dim
NUM_HEADS = 4
HEAD_DIM = D // NUM_HEADS
DEPTH = 2                  # transformer blocks
K = 4                      # num_classes (outer class tokens)
CLASS_DIM = 8              # cls_head output dim (training-only branch, unused in eval)
MLP_HIDDEN = 4 * D
CPP = C_IN * PATCH * PATCH # flattened patch length (48)
CPP_PAD = 128              # lane-dense padded patch length
T = K + N                  # logical token count (class tokens first)
GRID_OFF = ((K + 7) // 8) * 8          # grid tokens start on a sublane boundary (=8)
TP = GRID_OFF + N                      # padded token count (24, sublane multiple)
KPAD = 128                             # lane-dense seg_head output width
DPAD = 128                             # lane-dense x_out width
SCALE = HEAD_DIM ** -0.5
LN_EPS = 1e-6              # timm ViT uses LayerNorm(eps=1e-6)


# ------------------------------- fused kernel ----------------------------------
def _layernorm(x, w, b):
    mu = jnp.mean(x, axis=-1, keepdims=True)
    xc = x - mu
    var = jnp.mean(xc * xc, axis=-1, keepdims=True)
    return xc * jax.lax.rsqrt(var + LN_EPS) * w + b


def make_fused_kernel(bb):
    """Build the fused forward kernel processing `bb` batch elements per step."""
    R = bb * TP

    def fused_kernel(p_ref, patch_w, patch_b, pos_grid, cls_emb,
                     ln1_w, ln1_b, wqkv, bqkv, proj_w, proj_b,
                     ln2_w, ln2_b, fc1_w, fc1_b, fc2_w, fc2_b,
                     norm_w, norm_b, seg_w, seg_b,
                     x_out_ref, seg_ref):
        f32 = jnp.float32

        # --- patch embedding (lane-dense 128-wide contraction) ------------------
        grid_emb = jnp.dot(p_ref[...], patch_w[...],
                           preferred_element_type=f32) + patch_b[...]     # (bb*N, D)

        # token tensor per batch: [class tokens | zero pad | grid tokens]
        pieces = []
        for b in range(bb):
            pieces.append(cls_emb[...])                                   # (K, D)
            pieces.append(jnp.zeros((GRID_OFF - K, D), f32))
            pieces.append(grid_emb[b * N:(b + 1) * N, :] + pos_grid[...]) # (N, D)
        tok = jnp.concatenate(pieces, axis=0)                             # (R, D)

        # additive key mask: padded rows K..GRID_OFF-1 never receive attention
        col = jax.lax.broadcasted_iota(jnp.int32, (1, TP), 1)
        key_mask = jnp.where((col < K) | (col >= GRID_OFF), 0.0, -1e30).astype(f32)

        for d in range(DEPTH):                      # static unroll over blocks
            # ---- MHSA: one fused QKV matmul, per-(batch, head) score matmuls ----
            xln = _layernorm(tok, ln1_w[d], ln1_b[d])
            qkv = jnp.dot(xln, wqkv[d], preferred_element_type=f32) + bqkv[d]  # (R, 3D)
            outs = []
            for b in range(bb):
                r0 = b * TP
                head_outs = []
                for h in range(NUM_HEADS):          # head_dim=8 contractions are inherent
                    c = h * HEAD_DIM
                    qh = qkv[r0:r0 + TP, c:c + HEAD_DIM]               # SCALE pre-folded
                    kh = qkv[r0:r0 + TP, D + c:D + c + HEAD_DIM]
                    vh = qkv[r0:r0 + TP, 2 * D + c:2 * D + c + HEAD_DIM]
                    s = jax.lax.dot_general(qh, kh, (((1,), (1,)), ((), ())),
                                            preferred_element_type=f32)   # (TP, TP)
                    s = s + key_mask
                    s = s - jnp.max(s, axis=-1, keepdims=True)
                    e = jnp.exp(s)
                    a = e * pl.reciprocal(jnp.sum(e, axis=-1, keepdims=True),
                                          approx=True)
                    head_outs.append(jnp.dot(a, vh, preferred_element_type=f32))
                outs.append(jnp.concatenate(head_outs, axis=-1))           # (TP, D)
            o = jnp.concatenate(outs, axis=0)                              # (R, D)
            tok = tok + jnp.dot(o, proj_w[d],
                                preferred_element_type=f32) + proj_b[d]

            # ---- MLP ----
            h2 = _layernorm(tok, ln2_w[d], ln2_b[d])
            m = jnp.dot(h2, fc1_w[d], preferred_element_type=f32) + fc1_b[d]
            # TODO(synk): PyTorch nn.GELU default is the exact erf GELU; tanh
            #             approximation used (no guaranteed Mosaic erf lowering).
            m = jax.nn.gelu(m, approximate=True)
            m = jnp.dot(m, fc2_w[d], preferred_element_type=f32) + fc2_b[d]
            tok = tok + m

        # ---- final norm + lane-dense outputs (Dropout2d identity in eval) ----
        xn = _layernorm(tok, norm_w[...], norm_b[...])                     # (R, D)
        x_out_ref[0] = jnp.concatenate(
            [xn, jnp.zeros((R, DPAD - D), f32)], axis=-1)                  # (R, 128)
        grid_all = jnp.concatenate(
            [xn[b * TP + GRID_OFF:(b + 1) * TP, :] for b in range(bb)], axis=0)
        seg_ref[0] = jnp.dot(grid_all, seg_w[...],
                             preferred_element_type=f32) + seg_b[...]      # (bb*N, 128)

    return fused_kernel


# ----------------------------- pallas_call wrapper ------------------------------
_KP_ORDER = ('patch_w', 'patch_b', 'pos_grid', 'cls_emb',
             'ln1_w', 'ln1_b', 'wqkv', 'bqkv', 'proj_w', 'proj_b',
             'ln2_w', 'ln2_b', 'fc1_w', 'fc1_b', 'fc2_w', 'fc2_b',
             'norm_w', 'norm_b', 'seg_w', 'seg_b')


def _wspec(arr):
    nd = arr.ndim
    return pl.BlockSpec(arr.shape, lambda g, _n=nd: (0,) * _n)


def _batch_per_step(bq):
    """bb = batch elements per grid step.

    v7x has 2 TensorCores/chip: keep grid=(B,) "parallel" so each core takes one
    image.  Single-TC chips (v5e/v6e): fold the whole batch into one grid step
    (no per-step pipeline overhead, taller MXU operands)."""
    try:
        kind = jax.devices()[0].device_kind.lower()
    except Exception:
        kind = ""
    multi_tc = ("v7" in kind) or ("7x" in kind)
    return 1 if (multi_tc and bq > 1) else bq


def semformer_fused_call(patches_flat, kp, bb):
    bq = patches_flat.shape[0] // N
    g_steps = bq // bb
    r = bb * TP
    weights = [kp[n] for n in _KP_ORDER]
    in_specs = ([pl.BlockSpec((bb * N, CPP_PAD), lambda g: (g, 0))]
                + [_wspec(w) for w in weights])
    out_specs = (pl.BlockSpec((1, r, DPAD), lambda g: (g, 0, 0)),
                 pl.BlockSpec((1, bb * N, KPAD), lambda g: (g, 0, 0)))
    return pl.pallas_call(
        make_fused_kernel(bb),
        out_shape=(jax.ShapeDtypeStruct((g_steps, r, DPAD), jnp.float32),
                   jax.ShapeDtypeStruct((g_steps, bb * N, KPAD), jnp.float32)),
        grid=(g_steps,),
        in_specs=in_specs,
        out_specs=out_specs,
        compiler_params=pltpu.CompilerParams(dimension_semantics=("parallel",)),
    )(patches_flat, *weights)


# --------------------------------- glue ----------------------------------------
def extract_patches(x):
    # x: NCHW -> (B, N, C*p*p), patch pixels flattened as (C, p, p) row-major,
    # matching Conv2d(C, D, p, stride=p) weight.reshape(D, -1).
    bq, c, hh, ww = x.shape
    x = x.reshape(bq, c, hh // PATCH, PATCH, ww // PATCH, PATCH)
    x = x.transpose(0, 2, 4, 1, 3, 5)
    return x.reshape(bq, (hh // PATCH) * (ww // PATCH), c * PATCH * PATCH)


def semformer_forward(kernel_params, x, bb=None):
    # eval-mode forward: returns (x_tokens, seg_logits) like the PyTorch module.
    bq = x.shape[0]
    iH, iW = x.shape[-2:]
    # _F.patchable_pad2d: pad H/W up to a multiple of patch_size (no-op for 16/4).
    pad_h, pad_w = (-iH) % PATCH, (-iW) % PATCH
    if pad_h or pad_w:
        x = jnp.pad(x, ((0, 0), (0, 0), (0, pad_h), (0, pad_w)))
    Hp, Wp = x.shape[-2] // PATCH, x.shape[-1] // PATCH

    patches = extract_patches(x)                               # (B, N, CPP)
    patches = jnp.pad(patches, ((0, 0), (0, 0), (0, CPP_PAD - CPP)))   # lane-dense
    patches_flat = patches.reshape(bq * N, CPP_PAD)

    if bb is None:
        bb = _batch_per_step(bq)
    x_pad, seg_pad = semformer_fused_call(patches_flat, kernel_params, bb)

    x_pad = x_pad.reshape(bq, TP, DPAD)[:, :, :D]
    # drop the internal sublane-padding rows: [cls rows | grid rows]
    x_out = jnp.concatenate([x_pad[:, :K, :], x_pad[:, GRID_OFF:, :]], axis=1)
    seg = seg_pad.reshape(bq, N, KPAD)[:, :, :K]               # (B, N, K)
    seg_logits = jnp.transpose(seg, (0, 2, 1)).reshape(bq, K, Hp, Wp)
    # TODO(synk): training-only branch (SeparateLinear cls_head + ReLU) and
    #             return_cra attention maps are not exercised in eval forward.
    return x_out, seg_logits


# ------------------------------ parameter setup ---------------------------------
def init_params(key):
    keys = iter(jax.random.split(key, 32))

    def nrm(shape, scale=0.02):
        return (scale * jax.random.normal(next(keys), shape)).astype(jnp.float32)

    params = {
        'patch_w': nrm((CPP, D)),                 # Conv2d weight, (in, out) layout
        'patch_b': jnp.zeros((1, D), jnp.float32),
        'pos_embed': nrm((1, 1 + N, D)),          # [cls_pos | grid_pos]
        'cls_token': nrm((1, K, D)),              # backbone cls_token repeated K times
    }
    params['cls_posembed'] = jnp.tile(params['pos_embed'][:, :1, :], (1, K, 1))
    params['pos_grid'] = params['pos_embed'][0, 1:, :]        # (N, D)

    blocks = []
    for _ in range(DEPTH):
        blocks.append({
            'ln1_w': jnp.ones((1, D), jnp.float32), 'ln1_b': jnp.zeros((1, D), jnp.float32),
            'qkv_w': nrm((D, 3 * D)),               'qkv_b': jnp.zeros((1, 3 * D), jnp.float32),
            'proj_w': nrm((D, D)),                  'proj_b': jnp.zeros((1, D), jnp.float32),
            'ln2_w': jnp.ones((1, D), jnp.float32), 'ln2_b': jnp.zeros((1, D), jnp.float32),
            'fc1_w': nrm((D, MLP_HIDDEN)),          'fc1_b': jnp.zeros((1, MLP_HIDDEN), jnp.float32),
            'fc2_w': nrm((MLP_HIDDEN, D)),          'fc2_b': jnp.zeros((1, D), jnp.float32),
        })
    params['blocks'] = blocks
    params['norm_w'] = jnp.ones((1, D), jnp.float32)
    params['norm_b'] = jnp.zeros((1, D), jnp.float32)
    params['seg_w'] = nrm((D, K))                 # seg_head Linear(D, num_classes)
    params['seg_b'] = jnp.zeros((1, K), jnp.float32)
    return params


def prepare_kernel_params(params):
    """Reshape PyTorch-layout params into the fused-kernel layout (one-time)."""
    kp = {
        # lane-dense (zero-row padded) patch-embed weight
        'patch_w': jnp.zeros((CPP_PAD, D), jnp.float32).at[:CPP, :].set(params['patch_w']),
        'patch_b': params['patch_b'],
        'pos_grid': params['pos_grid'],
        'cls_emb': (params['cls_token'] + params['cls_posembed'])[0],   # (K, D)
        'norm_w': params['norm_w'],
        'norm_b': params['norm_b'],
        # lane-dense (zero padded) seg head
        'seg_w': jnp.zeros((D, KPAD), jnp.float32).at[:, :K].set(params['seg_w']),
        'seg_b': jnp.zeros((1, KPAD), jnp.float32).at[:, :K].set(params['seg_b']),
    }

    names = ('ln1_w', 'ln1_b', 'wqkv', 'bqkv', 'proj_w', 'proj_b',
             'ln2_w', 'ln2_b', 'fc1_w', 'fc1_b', 'fc2_w', 'fc2_b')
    stacks = {n: [] for n in names}
    # fold the 1/sqrt(head_dim) scale into the q columns of the fused qkv weight
    scale_vec = jnp.concatenate([jnp.full((D,), SCALE, jnp.float32),
                                 jnp.ones((2 * D,), jnp.float32)])[None, :]
    for blk in params['blocks']:
        stacks['ln1_w'].append(blk['ln1_w']); stacks['ln1_b'].append(blk['ln1_b'])
        stacks['wqkv'].append(blk['qkv_w'] * scale_vec)       # (D, 3D)
        stacks['bqkv'].append(blk['qkv_b'] * scale_vec)       # (1, 3D)
        stacks['proj_w'].append(blk['proj_w']); stacks['proj_b'].append(blk['proj_b'])
        stacks['ln2_w'].append(blk['ln2_w']); stacks['ln2_b'].append(blk['ln2_b'])
        stacks['fc1_w'].append(blk['fc1_w']); stacks['fc1_b'].append(blk['fc1_b'])
        stacks['fc2_w'].append(blk['fc2_w']); stacks['fc2_b'].append(blk['fc2_b'])
    for n in names:
        kp[n] = jnp.stack(stacks[n], axis=0)                  # leading DEPTH axis
    return kp


if __name__ == "__main__":
    key = jax.random.PRNGKey(0)
    pkey, xkey = jax.random.split(key)
    params = init_params(pkey)
    kparams = prepare_kernel_params(params)
    x = jax.random.normal(xkey, (B, C_IN, IMG, IMG), dtype=jnp.float32)  # NCHW like PyTorch

    fwd = jax.jit(lambda img: semformer_forward(kparams, img))
    x_out, seg_logits = fwd(x)
    jax.block_until_ready((x_out, seg_logits))

    assert x_out.shape == (B, T, D), x_out.shape
    assert seg_logits.shape == (B, K, H, W), seg_logits.shape
    assert bool(jnp.all(jnp.isfinite(x_out))) and bool(jnp.all(jnp.isfinite(seg_logits)))
    print("KERNEL_OK")
</pallas_src>

<mosaic_0001>
module attributes {stable_mosaic.version = 11 : i64} {
  func.func @fused_kernel(%arg0: i32, %arg1: memref<32x128xf32, #tpu.memory_space<vmem>>, %arg2: memref<128x32xf32, #tpu.memory_space<vmem>>, %arg3: memref<1x32xf32, #tpu.memory_space<vmem>>, %arg4: memref<16x32xf32, #tpu.memory_space<vmem>>, %arg5: memref<4x32xf32, #tpu.memory_space<vmem>>, %arg6: memref<2x1x32xf32, #tpu.memory_space<vmem>>, %arg7: memref<2x1x32xf32, #tpu.memory_space<vmem>>, %arg8: memref<2x32x96xf32, #tpu.memory_space<vmem>>, %arg9: memref<2x1x96xf32, #tpu.memory_space<vmem>>, %arg10: memref<2x32x32xf32, #tpu.memory_space<vmem>>, %arg11: memref<2x1x32xf32, #tpu.memory_space<vmem>>, %arg12: memref<2x1x32xf32, #tpu.memory_space<vmem>>, %arg13: memref<2x1x32xf32, #tpu.memory_space<vmem>>, %arg14: memref<2x32x128xf32, #tpu.memory_space<vmem>>, %arg15: memref<2x1x128xf32, #tpu.memory_space<vmem>>, %arg16: memref<2x128x32xf32, #tpu.memory_space<vmem>>, %arg17: memref<2x1x32xf32, #tpu.memory_space<vmem>>, %arg18: memref<1x32xf32, #tpu.memory_space<vmem>>, %arg19: memref<1x32xf32, #tpu.memory_space<vmem>>, %arg20: memref<32x128xf32, #tpu.memory_space<vmem>>, %arg21: memref<1x128xf32, #tpu.memory_space<vmem>>, %arg22: memref<1x48x128xf32, #tpu.memory_space<vmem>>, %arg23: memref<1x32x128xf32, #tpu.memory_space<vmem>>) attributes {dimension_semantics = [#tpu.dimension_semantics<parallel>], iteration_bounds = array<i64: 1>, scalar_prefetch = 0 : i64, scratch_operands = 0 : i64, tpu.core_type = #tpu.core_type<tc>, window_params = [{transform_indices = @transform_0, window_bounds = array<i64: 32, 128>}, {pipeline_mode = #tpu.pipeline_mode<synchronous>, transform_indices = @transform_1, window_bounds = array<i64: 128, 32>}, {pipeline_mode = #tpu.pipeline_mode<synchronous>, transform_indices = @transform_2, window_bounds = array<i64: 1, 32>}, {pipeline_mode = #tpu.pipeline_mode<synchronous>, transform_indices = @transform_3, window_bounds = array<i64: 16, 32>}, {pipeline_mode = #tpu.pipeline_mode<synchronous>, transform_indices = @transform_4, window_bounds = array<i64: 4, 32>}, {pipeline_mode = #tpu.pipeline_mode<synchronous>, transform_indices = @transform_5, window_bounds = array<i64: 2, 1, 32>}, {pipeline_mode = #tpu.pipeline_mode<synchronous>, transform_indices = @transform_6, window_bounds = array<i64: 2, 1, 32>}, {pipeline_mode = #tpu.pipeline_mode<synchronous>, transform_indices = @transform_7, window_bounds = array<i64: 2, 32, 96>}, {pipeline_mode = #tpu.pipeline_mode<synchronous>, transform_indices = @transform_8, window_bounds = array<i64: 2, 1, 96>}, {pipeline_mode = #tpu.pipeline_mode<synchronous>, transform_indices = @transform_9, window_bounds = array<i64: 2, 32, 32>}, {pipeline_mode = #tpu.pipeline_mode<synchronous>, transform_indices = @transform_10, window_bounds = array<i64: 2, 1, 32>}, {pipeline_mode = #tpu.pipeline_mode<synchronous>, transform_indices = @transform_11, window_bounds = array<i64: 2, 1, 32>}, {pipeline_mode = #tpu.pipeline_mode<synchronous>, transform_indices = @transform_12, window_bounds = array<i64: 2, 1, 32>}, {pipeline_mode = #tpu.pipeline_mode<synchronous>, transform_indices = @transform_13, window_bounds = array<i64: 2, 32, 128>}, {pipeline_mode = #tpu.pipeline_mode<synchronous>, transform_indices = @transform_14, window_bounds = array<i64: 2, 1, 128>}, {pipeline_mode = #tpu.pipeline_mode<synchronous>, transform_indices = @transform_15, window_bounds = array<i64: 2, 128, 32>}, {pipeline_mode = #tpu.pipeline_mode<synchronous>, transform_indices = @transform_16, window_bounds = array<i64: 2, 1, 32>}, {pipeline_mode = #tpu.pipeline_mode<synchronous>, transform_indices = @transform_17, window_bounds = array<i64: 1, 32>}, {pipeline_mode = #tpu.pipeline_mode<synchronous>, transform_indices = @transform_18, window_bounds = array<i64: 1, 32>}, {pipeline_mode = #tpu.pipeline_mode<synchronous>, transform_indices = @transform_19, window_bounds = array<i64: 32, 128>}, {pipeline_mode = #tpu.pipeline_mode<synchronous>, transform_indices = @transform_20, window_bounds = array<i64: 1, 128>}, {transform_indices = @transform_21, window_bounds = array<i64: 1, 48, 128>}, {transform_indices = @transform_22, window_bounds = array<i64: 1, 32, 128>}]} {
    %c0 = arith.constant 0 : index
    %c0_0 = arith.constant 0 : index
    %0 = vector.load %arg1[%c0, %c0_0] : memref<32x128xf32, #tpu.memory_space<vmem>>, vector<32x128xf32>
    %c0_1 = arith.constant 0 : index
    %c0_2 = arith.constant 0 : index
    %1 = vector.load %arg2[%c0_1, %c0_2] : memref<128x32xf32, #tpu.memory_space<vmem>>, vector<128x32xf32>
    %cst = arith.constant dense<0.000000e+00> : vector<32x32xf32>
    %2 = tpu.matmul %0, %1, %cst {dimension_numbers = #tpu.dot_dimension_numbers<[1], [0], [0], [1], [0, 0, 1, 1], [], []>} : vector<32x128xf32>, vector<128x32xf32>, vector<32x32xf32> -> vector<32x32xf32>
    %c0_3 = arith.constant 0 : index
    %c0_4 = arith.constant 0 : index
    %3 = vector.load %arg3[%c0_3, %c0_4] : memref<1x32xf32, #tpu.memory_space<vmem>>, vector<1x32xf32>
    %4 = vector.broadcast %3 : vector<1x32xf32> to vector<32x32xf32>
    %5 = arith.addf %2, %4 : vector<32x32xf32>
    %c0_5 = arith.constant 0 : index
    %c0_6 = arith.constant 0 : index
    %6 = vector.load %arg5[%c0_5, %c0_6] : memref<4x32xf32, #tpu.memory_space<vmem>>, vector<4x32xf32>
    %cst_7 = arith.constant 0.000000e+00 : f32
    %7 = vector.broadcast %cst_7 : f32 to vector<4x32xf32>
    %8 = vector.extract_strided_slice %5 {offsets = [0, 0], sizes = [16, 32], strides = [1, 1]} : vector<32x32xf32> to vector<16x32xf32>
    %c0_8 = arith.constant 0 : index
    %c0_9 = arith.constant 0 : index
    %9 = vector.load %arg4[%c0_8, %c0_9] : memref<16x32xf32, #tpu.memory_space<vmem>>, vector<16x32xf32>
    %10 = arith.addf %8, %9 : vector<16x32xf32>
    %c0_10 = arith.constant 0 : index
    %c0_11 = arith.constant 0 : index
    %11 = vector.load %arg5[%c0_10, %c0_11] : memref<4x32xf32, #tpu.memory_space<vmem>>, vector<4x32xf32>
    %cst_12 = arith.constant 0.000000e+00 : f32
    %12 = vector.broadcast %cst_12 : f32 to vector<4x32xf32>
    %13 = vector.extract_strided_slice %5 {offsets = [16, 0], sizes = [16, 32], strides = [1, 1]} : vector<32x32xf32> to vector<16x32xf32>
    %c0_13 = arith.constant 0 : index
    %c0_14 = arith.constant 0 : index
    %14 = vector.load %arg4[%c0_13, %c0_14] : memref<16x32xf32, #tpu.memory_space<vmem>>, vector<16x32xf32>
    %15 = arith.addf %13, %14 : vector<16x32xf32>
    %16 = tpu.concatenate %6, %7, %10, %11, %12, %15 in 0 : vector<4x32xf32>, vector<4x32xf32>, vector<16x32xf32>, vector<4x32xf32>, vector<4x32xf32>, vector<16x32xf32> -> vector<48x32xf32>
    %17 = tpu.iota {dimensions = array<i32: 1>} : vector<1x24xi32>
    %c4_i32 = arith.constant 4 : i32
    %18 = vector.broadcast %c4_i32 : i32 to vector<1x24xi32>
    %19 = arith.cmpi slt, %17, %18 : vector<1x24xi32>
    %c8_i32 = arith.constant 8 : i32
    %20 = vector.broadcast %c8_i32 : i32 to vector<1x24xi32>
    %21 = arith.cmpi sge, %17, %20 : vector<1x24xi32>
    %22 = arith.ori %19, %21 : vector<1x24xi1>
    %cst_15 = arith.constant 0.000000e+00 : f32
    %cst_16 = arith.constant -1.000000e+30 : f32
    %23 = vector.broadcast %cst_15 : f32 to vector<1x24xf32>
    %24 = vector.broadcast %cst_16 : f32 to vector<1x24xf32>
    %25 = arith.select %22, %23, %24 : vector<1x24xi1>, vector<1x24xf32>
    %c0_17 = arith.constant 0 : index
    %c0_18 = arith.constant 0 : index
    %c0_19 = arith.constant 0 : index
    %26 = vector.load %arg6[%c0_17, %c0_18, %c0_19] : memref<2x1x32xf32, #tpu.memory_space<vmem>>, vector<1x1x32xf32>
    %27 = vector.shape_cast %26 : vector<1x1x32xf32> to vector<1x32xf32>
    %c0_20 = arith.constant 0 : index
    %c0_21 = arith.constant 0 : index
    %c0_22 = arith.constant 0 : index
    %28 = vector.load %arg7[%c0_20, %c0_21, %c0_22] : memref<2x1x32xf32, #tpu.memory_space<vmem>>, vector<1x1x32xf32>
    %29 = vector.shape_cast %28 : vector<1x1x32xf32> to vector<1x32xf32>
    %cst_23 = arith.constant dense<0.000000e+00> : vector<48xf32>
    %30 = vector.multi_reduction <add>, %16, %cst_23 [1] : vector<48x32xf32> to vector<48xf32>
    %31 = vector.shape_cast %30 : vector<48xf32> to vector<48x1xf32>
    %cst_24 = arith.constant 3.200000e+01 : f32
    %32 = vector.broadcast %cst_24 : f32 to vector<48x1xf32>
    %33 = arith.divf %31, %32 : vector<48x1xf32>
    %34 = vector.broadcast %33 : vector<48x1xf32> to vector<48x32xf32>
    %35 = arith.subf %16, %34 : vector<48x32xf32>
    %36 = arith.mulf %35, %35 : vector<48x32xf32>
    %cst_25 = arith.constant dense<0.000000e+00> : vector<48xf32>
    %37 = vector.multi_reduction <add>, %36, %cst_25 [1] : vector<48x32xf32> to vector<48xf32>
    %38 = vector.shape_cast %37 : vector<48xf32> to vector<48x1xf32>
    %cst_26 = arith.constant 3.200000e+01 : f32
    %39 = vector.broadcast %cst_26 : f32 to vector<48x1xf32>
    %40 = arith.divf %38, %39 : vector<48x1xf32>
    %cst_27 = arith.constant 9.99999997E-7 : f32
    %41 = vector.broadcast %cst_27 : f32 to vector<48x1xf32>
    %42 = arith.addf %40, %41 : vector<48x1xf32>
    %43 = math.rsqrt %42 : vector<48x1xf32>
    %44 = vector.broadcast %43 : vector<48x1xf32> to vector<48x32xf32>
    %45 = arith.mulf %35, %44 : vector<48x32xf32>
    %46 = vector.broadcast %27 : vector<1x32xf32> to vector<48x32xf32>
    %47 = arith.mulf %45, %46 : vector<48x32xf32>
    %48 = vector.broadcast %29 : vector<1x32xf32> to vector<48x32xf32>
    %49 = arith.addf %47, %48 : vector<48x32xf32>
    %c0_28 = arith.constant 0 : index
    %c0_29 = arith.constant 0 : index
    %c0_30 = arith.constant 0 : index
    %50 = vector.load %arg8[%c0_28, %c0_29, %c0_30] : memref<2x32x96xf32, #tpu.memory_space<vmem>>, vector<1x32x96xf32>
    %51 = vector.shape_cast %50 : vector<1x32x96xf32> to vector<32x96xf32>
    %cst_31 = arith.constant dense<0.000000e+00> : vector<48x96xf32>
    %52 = tpu.matmul %49, %51, %cst_31 {dimension_numbers = #tpu.dot_dimension_numbers<[1], [0], [0], [1], [0, 0, 1, 1], [], []>} : vector<48x32xf32>, vector<32x96xf32>, vector<48x96xf32> -> vector<48x96xf32>
    %c0_32 = arith.constant 0 : index
    %c0_33 = arith.constant 0 : index
    %c0_34 = arith.constant 0 : index
    %53 = vector.load %arg9[%c0_32, %c0_33, %c0_34] : memref<2x1x96xf32, #tpu.memory_space<vmem>>, vector<1x1x96xf32>
    %54 = vector.shape_cast %53 : vector<1x1x96xf32> to vector<1x96xf32>
    %55 = vector.broadcast %54 : vector<1x96xf32> to vector<48x96xf32>
    %56 = arith.addf %52, %55 : vector<48x96xf32>
    %57 = vector.extract_strided_slice %56 {offsets = [0, 0], sizes = [24, 8], strides = [1, 1]} : vector<48x96xf32> to vector<24x8xf32>
    %58 = vector.extract_strided_slice %56 {offsets = [0, 32], sizes = [24, 8], strides = [1, 1]} : vector<48x96xf32> to vector<24x8xf32>
    %59 = vector.extract_strided_slice %56 {offsets = [0, 64], sizes = [24, 8], strides = [1, 1]} : vector<48x96xf32> to vector<24x8xf32>
    %cst_35 = arith.constant dense<0.000000e+00> : vector<24x24xf32>
    %60 = tpu.matmul %57, %58, %cst_35 {dimension_numbers = #tpu.dot_dimension_numbers<[1], [1], [0], [0], [0, 0, 1, 0], [], []>} : vector<24x8xf32>, vector<24x8xf32>, vector<24x24xf32> -> vector<24x24xf32>
    %61 = vector.broadcast %25 : vector<1x24xf32> to vector<24x24xf32>
    %62 = arith.addf %60, %61 : vector<24x24xf32>
    %cst_36 = arith.constant dense<0xFF800000> : vector<24xf32>
    %63 = vector.multi_reduction <maximumf>, %62, %cst_36 [1] : vector<24x24xf32> to vector<24xf32>
    %64 = vector.shape_cast %63 : vector<24xf32> to vector<24x1xf32>
    %65 = vector.broadcast %64 : vector<24x1xf32> to vector<24x24xf32>
    %66 = arith.subf %62, %65 : vector<24x24xf32>
    %67 = math.exp %66 : vector<24x24xf32>
    %cst_37 = arith.constant dense<0.000000e+00> : vector<24xf32>
    %68 = vector.multi_reduction <add>, %67, %cst_37 [1] : vector<24x24xf32> to vector<24xf32>
    %69 = vector.shape_cast %68 : vector<24xf32> to vector<24x1xf32>
    %70 = tpu.reciprocal %69 {approx = true} : vector<24x1xf32> -> vector<24x1xf32>
    %71 = vector.broadcast %70 : vector<24x1xf32> to vector<24x24xf32>
    %72 = arith.mulf %67, %71 : vector<24x24xf32>
    %cst_38 = arith.constant dense<0.000000e+00> : vector<24x8xf32>
    %73 = tpu.matmul %72, %59, %cst_38 {dimension_numbers = #tpu.dot_dimension_numbers<[1], [0], [0], [1], [0, 0, 1, 1], [], []>} : vector<24x24xf32>, vector<24x8xf32>, vector<24x8xf32> -> vector<24x8xf32>
    %74 = vector.extract_strided_slice %56 {offsets = [0, 8], sizes = [24, 8], strides = [1, 1]} : vector<48x96xf32> to vector<24x8xf32>
    %75 = vector.extract_strided_slice %56 {offsets = [0, 40], sizes = [24, 8], strides = [1, 1]} : vector<48x96xf32> to vector<24x8xf32>
    %76 = vector.extract_strided_slice %56 {offsets = [0, 72], sizes = [24, 8], strides = [1, 1]} : vector<48x96xf32> to vector<24x8xf32>
    %cst_39 = arith.constant dense<0.000000e+00> : vector<24x24xf32>
    %77 = tpu.matmul %74, %75, %cst_39 {dimension_numbers = #tpu.dot_dimension_numbers<[1], [1], [0], [0], [0, 0, 1, 0], [], []>} : vector<24x8xf32>, vector<24x8xf32>, vector<24x24xf32> -> vector<24x24xf32>
    %78 = vector.broadcast %25 : vector<1x24xf32> to vector<24x24xf32>
    %79 = arith.addf %77, %78 : vector<24x24xf32>
    %cst_40 = arith.constant dense<0xFF800000> : vector<24xf32>
    %80 = vector.multi_reduction <maximumf>, %79, %cst_40 [1] : vector<24x24xf32> to vector<24xf32>
    %81 = vector.shape_cast %80 : vector<24xf32> to vector<24x1xf32>
    %82 = vector.broadcast %81 : vector<24x1xf32> to vector<24x24xf32>
    %83 = arith.subf %79, %82 : vector<24x24xf32>
    %84 = math.exp %83 : vector<24x24xf32>
    %cst_41 = arith.constant dense<0.000000e+00> : vector<24xf32>
    %85 = vector.multi_reduction <add>, %84, %cst_41 [1] : vector<24x24xf32> to vector<24xf32>
    %86 = vector.shape_cast %85 : vector<24xf32> to vector<24x1xf32>
    %87 = tpu.reciprocal %86 {approx = true} : vector<24x1xf32> -> vector<24x1xf32>
    %88 = vector.broadcast %87 : vector<24x1xf32> to vector<24x24xf32>
    %89 = arith.mulf %84, %88 : vector<24x24xf32>
    %cst_42 = arith.constant dense<0.000000e+00> : vector<24x8xf32>
    %90 = tpu.matmul %89, %76, %cst_42 {dimension_numbers = #tpu.dot_dimension_numbers<[1], [0], [0], [1], [0, 0, 1, 1], [], []>} : vector<24x24xf32>, vector<24x8xf32>, vector<24x8xf32> -> vector<24x8xf32>
    %91 = vector.extract_strided_slice %56 {offsets = [0, 16], sizes = [24, 8], strides = [1, 1]} : vector<48x96xf32> to vector<24x8xf32>
    %92 = vector.extract_strided_slice %56 {offsets = [0, 48], sizes = [24, 8], strides = [1, 1]} : vector<48x96xf32> to vector<24x8xf32>
    %93 = vector.extract_strided_slice %56 {offsets = [0, 80], sizes = [24, 8], strides = [1, 1]} : vector<48x96xf32> to vector<24x8xf32>
    %cst_43 = arith.constant dense<0.000000e+00> : vector<24x24xf32>
    %94 = tpu.matmul %91, %92, %cst_43 {dimension_numbers = #tpu.dot_dimension_numbers<[1], [1], [0], [0], [0, 0, 1, 0], [], []>} : vector<24x8xf32>, vector<24x8xf32>, vector<24x24xf32> -> vector<24x24xf32>
    %95 = vector.broadcast %25 : vector<1x24xf32> to vector<24x24xf32>
    %96 = arith.addf %94, %95 : vector<24x24xf32>
    %cst_44 = arith.constant dense<0xFF800000> : vector<24xf32>
    %97 = vector.multi_reduction <maximumf>, %96, %cst_44 [1] : vector<24x24xf32> to vector<24xf32>
    %98 = vector.shape_cast %97 : vector<24xf32> to vector<24x1xf32>
    %99 = vector.broadcast %98 : vector<24x1xf32> to vector<24x24xf32>
    %100 = arith.subf %96, %99 : vector<24x24xf32>
    %101 = math.exp %100 : vector<24x24xf32>
    %cst_45 = arith.constant dense<0.000000e+00> : vector<24xf32>
    %102 = vector.multi_reduction <add>, %101, %cst_45 [1] : vector<24x24xf32> to vector<24xf32>
    %103 = vector.shape_cast %102 : vector<24xf32> to vector<24x1xf32>
    %104 = tpu.reciprocal %103 {approx = true} : vector<24x1xf32> -> vector<24x1xf32>
    %105 = vector.broadcast %104 : vector<24x1xf32> to vector<24x24xf32>
    %106 = arith.mulf %101, %105 : vector<24x24xf32>
    %cst_46 = arith.constant dense<0.000000e+00> : vector<24x8xf32>
    %107 = tpu.matmul %106, %93, %cst_46 {dimension_numbers = #tpu.dot_dimension_numbers<[1], [0], [0], [1], [0, 0, 1, 1], [], []>} : vector<24x24xf32>, vector<24x8xf32>, vector<24x8xf32> -> vector<24x8xf32>
    %108 = vector.extract_strided_slice %56 {offsets = [0, 24], sizes = [24, 8], strides = [1, 1]} : vector<48x96xf32> to vector<24x8xf32>
    %109 = vector.extract_strided_slice %56 {offsets = [0, 56], sizes = [24, 8], strides = [1, 1]} : vector<48x96xf32> to vector<24x8xf32>
    %110 = vector.extract_strided_slice %56 {offsets = [0, 88], sizes = [24, 8], strides = [1, 1]} : vector<48x96xf32> to vector<24x8xf32>
    %cst_47 = arith.constant dense<0.000000e+00> : vector<24x24xf32>
    %111 = tpu.matmul %108, %109, %cst_47 {dimension_numbers = #tpu.dot_dimension_numbers<[1], [1], [0], [0], [0, 0, 1, 0], [], []>} : vector<24x8xf32>, vector<24x8xf32>, vector<24x24xf32> -> vector<24x24xf32>
    %112 = vector.broadcast %25 : vector<1x24xf32> to vector<24x24xf32>
    %113 = arith.addf %111, %112 : vector<24x24xf32>
    %cst_48 = arith.constant dense<0xFF800000> : vector<24xf32>
    %114 = vector.multi_reduction <maximumf>, %113, %cst_48 [1] : vector<24x24xf32> to vector<24xf32>
    %115 = vector.shape_cast %114 : vector<24xf32> to vector<24x1xf32>
    %116 = vector.broadcast %115 : vector<24x1xf32> to vector<24x24xf32>
    %117 = arith.subf %113, %116 : vector<24x24xf32>
    %118 = math.exp %117 : vector<24x24xf32>
    %cst_49 = arith.constant dense<0.000000e+00> : vector<24xf32>
    %119 = vector.multi_reduction <add>, %118, %cst_49 [1] : vector<24x24xf32> to vector<24xf32>
    %120 = vector.shape_cast %119 : vector<24xf32> to vector<24x1xf32>
    %121 = tpu.reciprocal %120 {approx = true} : vector<24x1xf32> -> vector<24x1xf32>
    %122 = vector.broadcast %121 : vector<24x1xf32> to vector<24x24xf32>
    %123 = arith.mulf %118, %122 : vector<24x24xf32>
    %cst_50 = arith.constant dense<0.000000e+00> : vector<24x8xf32>
    %124 = tpu.matmul %123, %110, %cst_50 {dimension_numbers = #tpu.dot_dimension_numbers<[1], [0], [0], [1], [0, 0, 1, 1], [], []>} : vector<24x24xf32>, vector<24x8xf32>, vector<24x8xf32> -> vector<24x8xf32>
    %125 = tpu.concatenate %73, %90, %107, %124 in 1 : vector<24x8xf32>, vector<24x8xf32>, vector<24x8xf32>, vector<24x8xf32> -> vector<24x32xf32>
    %126 = vector.extract_strided_slice %56 {offsets = [24, 0], sizes = [24, 8], strides = [1, 1]} : vector<48x96xf32> to vector<24x8xf32>
    %127 = vector.extract_strided_slice %56 {offsets = [24, 32], sizes = [24, 8], strides = [1, 1]} : vector<48x96xf32> to vector<24x8xf32>
    %128 = vector.extract_strided_slice %56 {offsets = [24, 64], sizes = [24, 8], strides = [1, 1]} : vector<48x96xf32> to vector<24x8xf32>
    %cst_51 = arith.constant dense<0.000000e+00> : vector<24x24xf32>
    %129 = tpu.matmul %126, %127, %cst_51 {dimension_numbers = #tpu.dot_dimension_numbers<[1], [1], [0], [0], [0, 0, 1, 0], [], []>} : vector<24x8xf32>, vector<24x8xf32>, vector<24x24xf32> -> vector<24x24xf32>
    %130 = vector.broadcast %25 : vector<1x24xf32> to vector<24x24xf32>
    %131 = arith.addf %129, %130 : vector<24x24xf32>
    %cst_52 = arith.constant dense<0xFF800000> : vector<24xf32>
    %132 = vector.multi_reduction <maximumf>, %131, %cst_52 [1] : vector<24x24xf32> to vector<24xf32>
    %133 = vector.shape_cast %132 : vector<24xf32> to vector<24x1xf32>
    %134 = vector.broadcast %133 : vector<24x1xf32> to vector<24x24xf32>
    %135 = arith.subf %131, %134 : vector<24x24xf32>
    %136 = math.exp %135 : vector<24x24xf32>
    %cst_53 = arith.constant dense<0.000000e+00> : vector<24xf32>
    %137 = vector.multi_reduction <add>, %136, %cst_53 [1] : vector<24x24xf32> to vector<24xf32>
    %138 = vector.shape_cast %137 : vector<24xf32> to vector<24x1xf32>
    %139 = tpu.reciprocal %138 {approx = true} : vector<24x1xf32> -> vector<24x1xf32>
    %140 = vector.broadcast %139 : vector<24x1xf32> to vector<24x24xf32>
    %141 = arith.mulf %136, %140 : vector<24x24xf32>
    %cst_54 = arith.constant dense<0.000000e+00> : vector<24x8xf32>
    %142 = tpu.matmul %141, %128, %cst_54 {dimension_numbers = #tpu.dot_dimension_numbers<[1], [0], [0], [1], [0, 0, 1, 1], [], []>} : vector<24x24xf32>, vector<24x8xf32>, vector<24x8xf32> -> vector<24x8xf32>
    %143 = vector.extract_strided_slice %56 {offsets = [24, 8], sizes = [24, 8], strides = [1, 1]} : vector<48x96xf32> to vector<24x8xf32>
    %144 = vector.extract_strided_slice %56 {offsets = [24, 40], sizes = [24, 8], strides = [1, 1]} : vector<48x96xf32> to vector<24x8xf32>
    %145 = vector.extract_strided_slice %56 {offsets = [24, 72], sizes = [24, 8], strides = [1, 1]} : vector<48x96xf32> to vector<24x8xf32>
    %cst_55 = arith.constant dense<0.000000e+00> : vector<24x24xf32>
    %146 = tpu.matmul %143, %144, %cst_55 {dimension_numbers = #tpu.dot_dimension_numbers<[1], [1], [0], [0], [0, 0, 1, 0], [], []>} : vector<24x8xf32>, vector<24x8xf32>, vector<24x24xf32> -> vector<24x24xf32>
    %147 = vector.broadcast %25 : vector<1x24xf32> to vector<24x24xf32>
    %148 = arith.addf %146, %147 : vector<24x24xf32>
    %cst_56 = arith.constant dense<0xFF800000> : vector<24xf32>
    %149 = vector.multi_reduction <maximumf>, %148, %cst_56 [1] : vector<24x24xf32> to vector<24xf32>
    %150 = vector.shape_cast %149 : vector<24xf32> to vector<24x1xf32>
    %151 = vector.broadcast %150 : vector<24x1xf32> to vector<24x24xf32>
    %152 = arith.subf %148, %151 : vector<24x24xf32>
    %153 = math.exp %152 : vector<24x24xf32>
    %cst_57 = arith.constant dense<0.000000e+00> : vector<24xf32>
    %154 = vector.multi_reduction <add>, %153, %cst_57 [1] : vector<24x24xf32> to vector<24xf32>
    %155 = vector.shape_cast %154 : vector<24xf32> to vector<24x1xf32>
    %156 = tpu.reciprocal %155 {approx = true} : vector<24x1xf32> -> vector<24x1xf32>
    %157 = vector.broadcast %156 : vector<24x1xf32> to vector<24x24xf32>
    %158 = arith.mulf %153, %157 : vector<24x24xf32>
    %cst_58 = arith.constant dense<0.000000e+00> : vector<24x8xf32>
    %159 = tpu.matmul %158, %145, %cst_58 {dimension_numbers = #tpu.dot_dimension_numbers<[1], [0], [0], [1], [0, 0, 1, 1], [], []>} : vector<24x24xf32>, vector<24x8xf32>, vector<24x8xf32> -> vector<24x8xf32>
    %160 = vector.extract_strided_slice %56 {offsets = [24, 16], sizes = [24, 8], strides = [1, 1]} : vector<48x96xf32> to vector<24x8xf32>
    %161 = vector.extract_strided_slice %56 {offsets = [24, 48], sizes = [24, 8], strides = [1, 1]} : vector<48x96xf32> to vector<24x8xf32>
    %162 = vector.extract_strided_slice %56 {offsets = [24, 80], sizes = [24, 8], strides = [1, 1]} : vector<48x96xf32> to vector<24x8xf32>
    %cst_59 = arith.constant dense<0.000000e+00> : vector<24x24xf32>
    %163 = tpu.matmul %160, %161, %cst_59 {dimension_numbers = #tpu.dot_dimension_numbers<[1], [1], [0], [0], [0, 0, 1, 0], [], []>} : vector<24x8xf32>, vector<24x8xf32>, vector<24x24xf32> -> vector<24x24xf32>
    %164 = vector.broadcast %25 : vector<1x24xf32> to vector<24x24xf32>
    %165 = arith.addf %163, %164 : vector<24x24xf32>
    %cst_60 = arith.constant dense<0xFF800000> : vector<24xf32>
    %166 = vector.multi_reduction <maximumf>, %165, %cst_60 [1] : vector<24x24xf32> to vector<24xf32>
    %167 = vector.shape_cast %166 : vector<24xf32> to vector<24x1xf32>
    %168 = vector.broadcast %167 : vector<24x1xf32> to vector<24x24xf32>
    %169 = arith.subf %165, %168 : vector<24x24xf32>
    %170 = math.exp %169 : vector<24x24xf32>
    %cst_61 = arith.constant dense<0.000000e+00> : vector<24xf32>
    %171 = vector.multi_reduction <add>, %170, %cst_61 [1] : vector<24x24xf32> to vector<24xf32>
    %172 = vector.shape_cast %171 : vector<24xf32> to vector<24x1xf32>
    %173 = tpu.reciprocal %172 {approx = true} : vector<24x1xf32> -> vector<24x1xf32>
    %174 = vector.broadcast %173 : vector<24x1xf32> to vector<24x24xf32>
    %175 = arith.mulf %170, %174 : vector<24x24xf32>
    %cst_62 = arith.constant dense<0.000000e+00> : vector<24x8xf32>
    %176 = tpu.matmul %175, %162, %cst_62 {dimension_numbers = #tpu.dot_dimension_numbers<[1], [0], [0], [1], [0, 0, 1, 1], [], []>} : vector<24x24xf32>, vector<24x8xf32>, vector<24x8xf32> -> vector<24x8xf32>
    %177 = vector.extract_strided_slice %56 {offsets = [24, 24], sizes = [24, 8], strides = [1, 1]} : vector<48x96xf32> to vector<24x8xf32>
    %178 = vector.extract_strided_slice %56 {offsets = [24, 56], sizes = [24, 8], strides = [1, 1]} : vector<48x96xf32> to vector<24x8xf32>
    %179 = vector.extract_strided_slice %56 {offsets = [24, 88], sizes = [24, 8], strides = [1, 1]} : vector<48x96xf32> to vector<24x8xf32>
    %cst_63 = arith.constant dense<0.000000e+00> : vector<24x24xf32>
    %180 = tpu.matmul %177, %178, %cst_63 {dimension_numbers = #tpu.dot_dimension_numbers<[1], [1], [0], [0], [0, 0, 1, 0], [], []>} : vector<24x8xf32>, vector<24x8xf32>, vector<24x24xf32> -> vector<24x24xf32>
    %181 = vector.broadcast %25 : vector<1x24xf32> to vector<24x24xf32>
    %182 = arith.addf %180, %181 : vector<24x24xf32>
    %cst_64 = arith.constant dense<0xFF800000> : vector<24xf32>
    %183 = vector.multi_reduction <maximumf>, %182, %cst_64 [1] : vector<24x24xf32> to vector<24xf32>
    %184 = vector.shape_cast %183 : vector<24xf32> to vector<24x1xf32>
    %185 = vector.broadcast %184 : vector<24x1xf32> to vector<24x24xf32>
    %186 = arith.subf %182, %185 : vector<24x24xf32>
    %187 = math.exp %186 : vector<24x24xf32>
    %cst_65 = arith.constant dense<0.000000e+00> : vector<24xf32>
    %188 = vector.multi_reduction <add>, %187, %cst_65 [1] : vector<24x24xf32> to vector<24xf32>
    %189 = vector.shape_cast %188 : vector<24xf32> to vector<24x1xf32>
    %190 = tpu.reciprocal %189 {approx = true} : vector<24x1xf32> -> vector<24x1xf32>
    %191 = vector.broadcast %190 : vector<24x1xf32> to vector<24x24xf32>
    %192 = arith.mulf %187, %191 : vector<24x24xf32>
    %cst_66 = arith.constant dense<0.000000e+00> : vector<24x8xf32>
    %193 = tpu.matmul %192, %179, %cst_66 {dimension_numbers = #tpu.dot_dimension_numbers<[1], [0], [0], [1], [0, 0, 1, 1], [], []>} : vector<24x24xf32>, vector<24x8xf32>, vector<24x8xf32> -> vector<24x8xf32>
    %194 = tpu.concatenate %142, %159, %176, %193 in 1 : vector<24x8xf32>, vector<24x8xf32>, vector<24x8xf32>, vector<24x8xf32> -> vector<24x32xf32>
    %195 = tpu.concatenate %125, %194 in 0 : vector<24x32xf32>, vector<24x32xf32> -> vector<48x32xf32>
    %c0_67 = arith.constant 0 : index
    %c0_68 = arith.constant 0 : index
    %c0_69 = arith.constant 0 : index
    %196 = vector.load %arg10[%c0_67, %c0_68, %c0_69] : memref<2x32x32xf32, #tpu.memory_space<vmem>>, vector<1x32x32xf32>
    %197 = vector.shape_cast %196 : vector<1x32x32xf32> to vector<32x32xf32>
    %cst_70 = arith.constant dense<0.000000e+00> : vector<48x32xf32>
    %198 = tpu.matmul %195, %197, %cst_70 {dimension_numbers = #tpu.dot_dimension_numbers<[1], [0], [0], [1], [0, 0, 1, 1], [], []>} : vector<48x32xf32>, vector<32x32xf32>, vector<48x32xf32> -> vector<48x32xf32>
    %199 = arith.addf %16, %198 : vector<48x32xf32>
    %c0_71 = arith.constant 0 : index
    %c0_72 = arith.constant 0 : index
    %c0_73 = arith.constant 0 : index
    %200 = vector.load %arg11[%c0_71, %c0_72, %c0_73] : memref<2x1x32xf32, #tpu.memory_space<vmem>>, vector<1x1x32xf32>
    %201 = vector.shape_cast %200 : vector<1x1x32xf32> to vector<1x32xf32>
    %202 = vector.broadcast %201 : vector<1x32xf32> to vector<48x32xf32>
    %203 = arith.addf %199, %202 : vector<48x32xf32>
    %c0_74 = arith.constant 0 : index
    %c0_75 = arith.constant 0 : index
    %c0_76 = arith.constant 0 : index
    %204 = vector.load %arg12[%c0_74, %c0_75, %c0_76] : memref<2x1x32xf32, #tpu.memory_space<vmem>>, vector<1x1x32xf32>
    %205 = vector.shape_cast %204 : vector<1x1x32xf32> to vector<1x32xf32>
    %c0_77 = arith.constant 0 : index
    %c0_78 = arith.constant 0 : index
    %c0_79 = arith.constant 0 : index
    %206 = vector.load %arg13[%c0_77, %c0_78, %c0_79] : memref<2x1x32xf32, #tpu.memory_space<vmem>>, vector<1x1x32xf32>
    %207 = vector.shape_cast %206 : vector<1x1x32xf32> to vector<1x32xf32>
    %cst_80 = arith.constant dense<0.000000e+00> : vector<48xf32>
    %208 = vector.multi_reduction <add>, %203, %cst_80 [1] : vector<48x32xf32> to vector<48xf32>
    %209 = vector.shape_cast %208 : vector<48xf32> to vector<48x1xf32>
    %cst_81 = arith.constant 3.200000e+01 : f32
    %210 = vector.broadcast %cst_81 : f32 to vector<48x1xf32>
    %211 = arith.divf %209, %210 : vector<48x1xf32>
    %212 = vector.broadcast %211 : vector<48x1xf32> to vector<48x32xf32>
    %213 = arith.subf %203, %212 : vector<48x32xf32>
    %214 = arith.mulf %213, %213 : vector<48x32xf32>
    %cst_82 = arith.constant dense<0.000000e+00> : vector<48xf32>
    %215 = vector.multi_reduction <add>, %214, %cst_82 [1] : vector<48x32xf32> to vector<48xf32>
    %216 = vector.shape_cast %215 : vector<48xf32> to vector<48x1xf32>
    %cst_83 = arith.constant 3.200000e+01 : f32
    %217 = vector.broadcast %cst_83 : f32 to vector<48x1xf32>
    %218 = arith.divf %216, %217 : vector<48x1xf32>
    %cst_84 = arith.constant 9.99999997E-7 : f32
    %219 = vector.broadcast %cst_84 : f32 to vector<48x1xf32>
    %220 = arith.addf %218, %219 : vector<48x1xf32>
    %221 = math.rsqrt %220 : vector<48x1xf32>
    %222 = vector.broadcast %221 : vector<48x1xf32> to vector<48x32xf32>
    %223 = arith.mulf %213, %222 : vector<48x32xf32>
    %224 = vector.broadcast %205 : vector<1x32xf32> to vector<48x32xf32>
    %225 = arith.mulf %223, %224 : vector<48x32xf32>
    %226 = vector.broadcast %207 : vector<1x32xf32> to vector<48x32xf32>
    %227 = arith.addf %225, %226 : vector<48x32xf32>
    %c0_85 = arith.constant 0 : index
    %c0_86 = arith.constant 0 : index
    %c0_87 = arith.constant 0 : index
    %228 = vector.load %arg14[%c0_85, %c0_86, %c0_87] : memref<2x32x128xf32, #tpu.memory_space<vmem>>, vector<1x32x128xf32>
    %229 = vector.shape_cast %228 : vector<1x32x128xf32> to vector<32x128xf32>
    %cst_88 = arith.constant dense<0.000000e+00> : vector<48x128xf32>
    %230 = tpu.matmul %227, %229, %cst_88 {dimension_numbers = #tpu.dot_dimension_numbers<[1], [0], [0], [1], [0, 0, 1, 1], [], []>} : vector<48x32xf32>, vector<32x128xf32>, vector<48x128xf32> -> vector<48x128xf32>
    %c0_89 = arith.constant 0 : index
    %c0_90 = arith.constant 0 : index
    %c0_91 = arith.constant 0 : index
    %231 = vector.load %arg15[%c0_89, %c0_90, %c0_91] : memref<2x1x128xf32, #tpu.memory_space<vmem>>, vector<1x1x128xf32>
    %232 = vector.shape_cast %231 : vector<1x1x128xf32> to vector<1x128xf32>
    %233 = vector.broadcast %232 : vector<1x128xf32> to vector<48x128xf32>
    %234 = arith.addf %230, %233 : vector<48x128xf32>
    %235 = arith.mulf %234, %234 : vector<48x128xf32>
    %236 = arith.mulf %234, %235 : vector<48x128xf32>
    %cst_92 = arith.constant 4.471500e-02 : f32
    %237 = vector.broadcast %cst_92 : f32 to vector<48x128xf32>
    %238 = arith.mulf %237, %236 : vector<48x128xf32>
    %239 = arith.addf %234, %238 : vector<48x128xf32>
    %cst_93 = arith.constant 0.797884583 : f32
    %240 = vector.broadcast %cst_93 : f32 to vector<48x128xf32>
    %241 = arith.mulf %240, %239 : vector<48x128xf32>
    %242 = math.tanh %241 : vector<48x128xf32>
    %cst_94 = arith.constant 1.000000e+00 : f32
    %243 = vector.broadcast %cst_94 : f32 to vector<48x128xf32>
    %244 = arith.addf %243, %242 : vector<48x128xf32>
    %cst_95 = arith.constant 5.000000e-01 : f32
    %245 = vector.broadcast %cst_95 : f32 to vector<48x128xf32>
    %246 = arith.mulf %245, %244 : vector<48x128xf32>
    %247 = arith.mulf %234, %246 : vector<48x128xf32>
    %c0_96 = arith.constant 0 : index
    %c0_97 = arith.constant 0 : index
    %c0_98 = arith.constant 0 : index
    %248 = vector.load %arg16[%c0_96, %c0_97, %c0_98] : memref<2x128x32xf32, #tpu.memory_space<vmem>>, vector<1x128x32xf32>
    %249 = vector.shape_cast %248 : vector<1x128x32xf32> to vector<128x32xf32>
    %cst_99 = arith.constant dense<0.000000e+00> : vector<48x32xf32>
    %250 = tpu.matmul %247, %249, %cst_99 {dimension_numbers = #tpu.dot_dimension_numbers<[1], [0], [0], [1], [0, 0, 1, 1], [], []>} : vector<48x128xf32>, vector<128x32xf32>, vector<48x32xf32> -> vector<48x32xf32>
    %c0_100 = arith.constant 0 : index
    %c0_101 = arith.constant 0 : index
    %c0_102 = arith.constant 0 : index
    %251 = vector.load %arg17[%c0_100, %c0_101, %c0_102] : memref<2x1x32xf32, #tpu.memory_space<vmem>>, vector<1x1x32xf32>
    %252 = vector.shape_cast %251 : vector<1x1x32xf32> to vector<1x32xf32>
    %253 = vector.broadcast %252 : vector<1x32xf32> to vector<48x32xf32>
    %254 = arith.addf %250, %253 : vector<48x32xf32>
    %255 = arith.addf %203, %254 : vector<48x32xf32>
    %c1 = arith.constant 1 : index
    %c0_103 = arith.constant 0 : index
    %c0_104 = arith.constant 0 : index
    %256 = vector.load %arg6[%c1, %c0_103, %c0_104] : memref<2x1x32xf32, #tpu.memory_space<vmem>>, vector<1x1x32xf32>
    %257 = vector.shape_cast %256 : vector<1x1x32xf32> to vector<1x32xf32>
    %c1_105 = arith.constant 1 : index
    %c0_106 = arith.constant 0 : index
    %c0_107 = arith.constant 0 : index
    %258 = vector.load %arg7[%c1_105, %c0_106, %c0_107] : memref<2x1x32xf32, #tpu.memory_space<vmem>>, vector<1x1x32xf32>
    %259 = vector.shape_cast %258 : vector<1x1x32xf32> to vector<1x32xf32>
    %cst_108 = arith.constant dense<0.000000e+00> : vector<48xf32>
    %260 = vector.multi_reduction <add>, %255, %cst_108 [1] : vector<48x32xf32> to vector<48xf32>
    %261 = vector.shape_cast %260 : vector<48xf32> to vector<48x1xf32>
    %cst_109 = arith.constant 3.200000e+01 : f32
    %262 = vector.broadcast %cst_109 : f32 to vector<48x1xf32>
    %263 = arith.divf %261, %262 : vector<48x1xf32>
    %264 = vector.broadcast %263 : vector<48x1xf32> to vector<48x32xf32>
    %265 = arith.subf %255, %264 : vector<48x32xf32>
    %266 = arith.mulf %265, %265 : vector<48x32xf32>
    %cst_110 = arith.constant dense<0.000000e+00> : vector<48xf32>
    %267 = vector.multi_reduction <add>, %266, %cst_110 [1] : vector<48x32xf32> to vector<48xf32>
    %268 = vector.shape_cast %267 : vector<48xf32> to vector<48x1xf32>
    %cst_111 = arith.constant 3.200000e+01 : f32
    %269 = vector.broadcast %cst_111 : f32 to vector<48x1xf32>
    %270 = arith.divf %268, %269 : vector<48x1xf32>
    %cst_112 = arith.constant 9.99999997E-7 : f32
    %271 = vector.broadcast %cst_112 : f32 to vector<48x1xf32>
    %272 = arith.addf %270, %271 : vector<48x1xf32>
    %273 = math.rsqrt %272 : vector<48x1xf32>
    %274 = vector.broadcast %273 : vector<48x1xf32> to vector<48x32xf32>
    %275 = arith.mulf %265, %274 : vector<48x32xf32>
    %276 = vector.broadcast %257 : vector<1x32xf32> to vector<48x32xf32>
    %277 = arith.mulf %275, %276 : vector<48x32xf32>
    %278 = vector.broadcast %259 : vector<1x32xf32> to vector<48x32xf32>
    %279 = arith.addf %277, %278 : vector<48x32xf32>
    %c1_113 = arith.constant 1 : index
    %c0_114 = arith.constant 0 : index
    %c0_115 = arith.constant 0 : index
    %280 = vector.load %arg8[%c1_113, %c0_114, %c0_115] : memref<2x32x96xf32, #tpu.memory_space<vmem>>, vector<1x32x96xf32>
    %281 = vector.shape_cast %280 : vector<1x32x96xf32> to vector<32x96xf32>
    %cst_116 = arith.constant dense<0.000000e+00> : vector<48x96xf32>
    %282 = tpu.matmul %279, %281, %cst_116 {dimension_numbers = #tpu.dot_dimension_numbers<[1], [0], [0], [1], [0, 0, 1, 1], [], []>} : vector<48x32xf32>, vector<32x96xf32>, vector<48x96xf32> -> vector<48x96xf32>
    %c1_117 = arith.constant 1 : index
    %c0_118 = arith.constant 0 : index
    %c0_119 = arith.constant 0 : index
    %283 = vector.load %arg9[%c1_117, %c0_118, %c0_119] : memref<2x1x96xf32, #tpu.memory_space<vmem>>, vector<1x1x96xf32>
    %284 = vector.shape_cast %283 : vector<1x1x96xf32> to vector<1x96xf32>
    %285 = vector.broadcast %284 : vector<1x96xf32> to vector<48x96xf32>
    %286 = arith.addf %282, %285 : vector<48x96xf32>
    %287 = vector.extract_strided_slice %286 {offsets = [0, 0], sizes = [24, 8], strides = [1, 1]} : vector<48x96xf32> to vector<24x8xf32>
    %288 = vector.extract_strided_slice %286 {offsets = [0, 32], sizes = [24, 8], strides = [1, 1]} : vector<48x96xf32> to vector<24x8xf32>
    %289 = vector.extract_strided_slice %286 {offsets = [0, 64], sizes = [24, 8], strides = [1, 1]} : vector<48x96xf32> to vector<24x8xf32>
    %cst_120 = arith.constant dense<0.000000e+00> : vector<24x24xf32>
    %290 = tpu.matmul %287, %288, %cst_120 {dimension_numbers = #tpu.dot_dimension_numbers<[1], [1], [0], [0], [0, 0, 1, 0], [], []>} : vector<24x8xf32>, vector<24x8xf32>, vector<24x24xf32> -> vector<24x24xf32>
    %291 = vector.broadcast %25 : vector<1x24xf32> to vector<24x24xf32>
    %292 = arith.addf %290, %291 : vector<24x24xf32>
    %cst_121 = arith.constant dense<0xFF800000> : vector<24xf32>
    %293 = vector.multi_reduction <maximumf>, %292, %cst_121 [1] : vector<24x24xf32> to vector<24xf32>
    %294 = vector.shape_cast %293 : vector<24xf32> to vector<24x1xf32>
    %295 = vector.broadcast %294 : vector<24x1xf32> to vector<24x24xf32>
    %296 = arith.subf %292, %295 : vector<24x24xf32>
    %297 = math.exp %296 : vector<24x24xf32>
    %cst_122 = arith.constant dense<0.000000e+00> : vector<24xf32>
    %298 = vector.multi_reduction <add>, %297, %cst_122 [1] : vector<24x24xf32> to vector<24xf32>
    %299 = vector.shape_cast %298 : vector<24xf32> to vector<24x1xf32>
    %300 = tpu.reciprocal %299 {approx = true} : vector<24x1xf32> -> vector<24x1xf32>
    %301 = vector.broadcast %300 : vector<24x1xf32> to vector<24x24xf32>
    %302 = arith.mulf %297, %301 : vector<24x24xf32>
    %cst_123 = arith.constant dense<0.000000e+00> : vector<24x8xf32>
    %303 = tpu.matmul %302, %289, %cst_123 {dimension_numbers = #tpu.dot_dimension_numbers<[1], [0], [0], [1], [0, 0, 1, 1], [], []>} : vector<24x24xf32>, vector<24x8xf32>, vector<24x8xf32> -> vector<24x8xf32>
    %304 = vector.extract_strided_slice %286 {offsets = [0, 8], sizes = [24, 8], strides = [1, 1]} : vector<48x96xf32> to vector<24x8xf32>
    %305 = vector.extract_strided_slice %286 {offsets = [0, 40], sizes = [24, 8], strides = [1, 1]} : vector<48x96xf32> to vector<24x8xf32>
    %306 = vector.extract_strided_slice %286 {offsets = [0, 72], sizes = [24, 8], strides = [1, 1]} : vector<48x96xf32> to vector<24x8xf32>
    %cst_124 = arith.constant dense<0.000000e+00> : vector<24x24xf32>
    %307 = tpu.matmul %304, %305, %cst_124 {dimension_numbers = #tpu.dot_dimension_numbers<[1], [1], [0], [0], [0, 0, 1, 0], [], []>} : vector<24x8xf32>, vector<24x8xf32>, vector<24x24xf32> -> vector<24x24xf32>
    %308 = vector.broadcast %25 : vector<1x24xf32> to vector<24x24xf32>
    %309 = arith.addf %307, %308 : vector<24x24xf32>
    %cst_125 = arith.constant dense<0xFF800000> : vector<24xf32>
    %310 = vector.multi_reduction <maximumf>, %309, %cst_125 [1] : vector<24x24xf32> to vector<24xf32>
    %311 = vector.shape_cast %310 : vector<24xf32> to vector<24x1xf32>
    %312 = vector.broadcast %311 : vector<24x1xf32> to vector<24x24xf32>
    %313 = arith.subf %309, %312 : vector<24x24xf32>
    %314 = math.exp %313 : vector<24x24xf32>
    %cst_126 = arith.constant dense<0.000000e+00> : vector<24xf32>
    %315 = vector.multi_reduction <add>, %314, %cst_126 [1] : vector<24x24xf32> to vector<24xf32>
    %316 = vector.shape_cast %315 : vector<24xf32> to vector<24x1xf32>
    %317 = tpu.reciprocal %316 {approx = true} : vector<24x1xf32> -> vector<24x1xf32>
    %318 = vector.broadcast %317 : vector<24x1xf32> to vector<24x24xf32>
    %319 = arith.mulf %314, %318 : vector<24x24xf32>
    %cst_127 = arith.constant dense<0.000000e+00> : vector<24x8xf32>
    %320 = tpu.matmul %319, %306, %cst_127 {dimension_numbers = #tpu.dot_dimension_numbers<[1], [0], [0], [1], [0, 0, 1, 1], [], []>} : vector<24x24xf32>, vector<24x8xf32>, vector<24x8xf32> -> vector<24x8xf32>
    %321 = vector.extract_strided_slice %286 {offsets = [0, 16], sizes = [24, 8], strides = [1, 1]} : vector<48x96xf32> to vector<24x8xf32>
    %322 = vector.extract_strided_slice %286 {offsets = [0, 48], sizes = [24, 8], strides = [1, 1]} : vector<48x96xf32> to vector<24x8xf32>
    %323 = vector.extract_strided_slice %286 {offsets = [0, 80], sizes = [24, 8], strides = [1, 1]} : vector<48x96xf32> to vector<24x8xf32>
    %cst_128 = arith.constant dense<0.000000e+00> : vector<24x24xf32>
    %324 = tpu.matmul %321, %322, %cst_128 {dimension_numbers = #tpu.dot_dimension_numbers<[1], [1], [0], [0], [0, 0, 1, 0], [], []>} : vector<24x8xf32>, vector<24x8xf32>, vector<24x24xf32> -> vector<24x24xf32>
    %325 = vector.broadcast %25 : vector<1x24xf32> to vector<24x24xf32>
    %326 = arith.addf %324, %325 : vector<24x24xf32>
    %cst_129 = arith.constant dense<0xFF800000> : vector<24xf32>
    %327 = vector.multi_reduction <maximumf>, %326, %cst_129 [1] : vector<24x24xf32> to vector<24xf32>
    %328 = vector.shape_cast %327 : vector<24xf32> to vector<24x1xf32>
    %329 = vector.broadcast %328 : vector<24x1xf32> to vector<24x24xf32>
    %330 = arith.subf %326, %329 : vector<24x24xf32>
    %331 = math.exp %330 : vector<24x24xf32>
    %cst_130 = arith.constant dense<0.000000e+00> : vector<24xf32>
    %332 = vector.multi_reduction <add>, %331, %cst_130 [1] : vector<24x24xf32> to vector<24xf32>
    %333 = vector.shape_cast %332 : vector<24xf32> to vector<24x1xf32>
    %334 = tpu.reciprocal %333 {approx = true} : vector<24x1xf32> -> vector<24x1xf32>
    %335 = vector.broadcast %334 : vector<24x1xf32> to vector<24x24xf32>
    %336 = arith.mulf %331, %335 : vector<24x24xf32>
    %cst_131 = arith.constant dense<0.000000e+00> : vector<24x8xf32>
    %337 = tpu.matmul %336, %323, %cst_131 {dimension_numbers = #tpu.dot_dimension_numbers<[1], [0], [0], [1], [0, 0, 1, 1], [], []>} : vector<24x24xf32>, vector<24x8xf32>, vector<24x8xf32> -> vector<24x8xf32>
    %338 = vector.extract_strided_slice %286 {offsets = [0, 24], sizes = [24, 8], strides = [1, 1]} : vector<48x96xf32> to vector<24x8xf32>
    %339 = vector.extract_strided_slice %286 {offsets = [0, 56], sizes = [24, 8], strides = [1, 1]} : vector<48x96xf32> to vector<24x8xf32>
    %340 = vector.extract_strided_slice %286 {offsets = [0, 88], sizes = [24, 8], strides = [1, 1]} : vector<48x96xf32> to vector<24x8xf32>
    %cst_132 = arith.constant dense<0.000000e+00> : vector<24x24xf32>
    %341 = tpu.matmul %338, %339, %cst_132 {dimension_numbers = #tpu.dot_dimension_numbers<[1], [1], [0], [0], [0, 0, 1, 0], [], []>} : vector<24x8xf32>, vector<24x8xf32>, vector<24x24xf32> -> vector<24x24xf32>
    %342 = vector.broadcast %25 : vector<1x24xf32> to vector<24x24xf32>
    %343 = arith.addf %341, %342 : vector<24x24xf32>
    %cst_133 = arith.constant dense<0xFF800000> : vector<24xf32>
    %344 = vector.multi_reduction <maximumf>, %343, %cst_133 [1] : vector<24x24xf32> to vector<24xf32>
    %345 = vector.shape_cast %344 : vector<24xf32> to vector<24x1xf32>
    %346 = vector.broadcast %345 : vector<24x1xf32> to vector<24x24xf32>
    %347 = arith.subf %343, %346 : vector<24x24xf32>
    %348 = math.exp %347 : vector<24x24xf32>
    %cst_134 = arith.constant dense<0.000000e+00> : vector<24xf32>
    %349 = vector.multi_reduction <add>, %348, %cst_134 [1] : vector<24x24xf32> to vector<24xf32>
    %350 = vector.shape_cast %349 : vector<24xf32> to vector<24x1xf32>
    %351 = tpu.reciprocal %350 {approx = true} : vector<24x1xf32> -> vector<24x1xf32>
    %352 = vector.broadcast %351 : vector<24x1xf32> to vector<24x24xf32>
    %353 = arith.mulf %348, %352 : vector<24x24xf32>
    %cst_135 = arith.constant dense<0.000000e+00> : vector<24x8xf32>
    %354 = tpu.matmul %353, %340, %cst_135 {dimension_numbers = #tpu.dot_dimension_numbers<[1], [0], [0], [1], [0, 0, 1, 1], [], []>} : vector<24x24xf32>, vector<24x8xf32>, vector<24x8xf32> -> vector<24x8xf32>
    %355 = tpu.concatenate %303, %320, %337, %354 in 1 : vector<24x8xf32>, vector<24x8xf32>, vector<24x8xf32>, vector<24x8xf32> -> vector<24x32xf32>
    %356 = vector.extract_strided_slice %286 {offsets = [24, 0], sizes = [24, 8], strides = [1, 1]} : vector<48x96xf32> to vector<24x8xf32>
    %357 = vector.extract_strided_slice %286 {offsets = [24, 32], sizes = [24, 8], strides = [1, 1]} : vector<48x96xf32> to vector<24x8xf32>
    %358 = vector.extract_strided_slice %286 {offsets = [24, 64], sizes = [24, 8], strides = [1, 1]} : vector<48x96xf32> to vector<24x8xf32>
    %cst_136 = arith.constant dense<0.000000e+00> : vector<24x24xf32>
    %359 = tpu.matmul %356, %357, %cst_136 {dimension_numbers = #tpu.dot_dimension_numbers<[1], [1], [0], [0], [0, 0, 1, 0], [], []>} : vector<24x8xf32>, vector<24x8xf32>, vector<24x24xf32> -> vector<24x24xf32>
    %360 = vector.broadcast %25 : vector<1x24xf32> to vector<24x24xf32>
    %361 = arith.addf %359, %360 : vector<24x24xf32>
    %cst_137 = arith.constant dense<0xFF800000> : vector<24xf32>
    %362 = vector.multi_reduction <maximumf>, %361, %cst_137 [1] : vector<24x24xf32> to vector<24xf32>
    %363 = vector.shape_cast %362 : vector<24xf32> to vector<24x1xf32>
    %364 = vector.broadcast %363 : vector<24x1xf32> to vector<24x24xf32>
    %365 = arith.subf %361, %364 : vector<24x24xf32>
    %366 = math.exp %365 : vector<24x24xf32>
    %cst_138 = arith.constant dense<0.000000e+00> : vector<24xf32>
    %367 = vector.multi_reduction <add>, %366, %cst_138 [1] : vector<24x24xf32> to vector<24xf32>
    %368 = vector.shape_cast %367 : vector<24xf32> to vector<24x1xf32>
    %369 = tpu.reciprocal %368 {approx = true} : vector<24x1xf32> -> vector<24x1xf32>
    %370 = vector.broadcast %369 : vector<24x1xf32> to vector<24x24xf32>
    %371 = arith.mulf %366, %370 : vector<24x24xf32>
    %cst_139 = arith.constant dense<0.000000e+00> : vector<24x8xf32>
    %372 = tpu.matmul %371, %358, %cst_139 {dimension_numbers = #tpu.dot_dimension_numbers<[1], [0], [0], [1], [0, 0, 1, 1], [], []>} : vector<24x24xf32>, vector<24x8xf32>, vector<24x8xf32> -> vector<24x8xf32>
    %373 = vector.extract_strided_slice %286 {offsets = [24, 8], sizes = [24, 8], strides = [1, 1]} : vector<48x96xf32> to vector<24x8xf32>
    %374 = vector.extract_strided_slice %286 {offsets = [24, 40], sizes = [24, 8], strides = [1, 1]} : vector<48x96xf32> to vector<24x8xf32>
    %375 = vector.extract_strided_slice %286 {offsets = [24, 72], sizes = [24, 8], strides = [1, 1]} : vector<48x96xf32> to vector<24x8xf32>
    %cst_140 = arith.constant dense<0.000000e+00> : vector<24x24xf32>
    %376 = tpu.matmul %373, %374, %cst_140 {dimension_numbers = #tpu.dot_dimension_numbers<[1], [1], [0], [0], [0, 0, 1, 0], [], []>} : vector<24x8xf32>, vector<24x8xf32>, vector<24x24xf32> -> vector<24x24xf32>
    %377 = vector.broadcast %25 : vector<1x24xf32> to vector<24x24xf32>
    %378 = arith.addf %376, %377 : vector<24x24xf32>
    %cst_141 = arith.constant dense<0xFF800000> : vector<24xf32>
    %379 = vector.multi_reduction <maximumf>, %378, %cst_141 [1] : vector<24x24xf32> to vector<24xf32>
    %380 = vector.shape_cast %379 : vector<24xf32> to vector<24x1xf32>
    %381 = vector.broadcast %380 : vector<24x1xf32> to vector<24x24xf32>
    %382 = arith.subf %378, %381 : vector<24x24xf32>
    %383 = math.exp %382 : vector<24x24xf32>
    %cst_142 = arith.constant dense<0.000000e+00> : vector<24xf32>
    %384 = vector.multi_reduction <add>, %383, %cst_142 [1] : vector<24x24xf32> to vector<24xf32>
    %385 = vector.shape_cast %384 : vector<24xf32> to vector<24x1xf32>
    %386 = tpu.reciprocal %385 {approx = true} : vector<24x1xf32> -> vector<24x1xf32>
    %387 = vector.broadcast %386 : vector<24x1xf32> to vector<24x24xf32>
    %388 = arith.mulf %383, %387 : vector<24x24xf32>
    %cst_143 = arith.constant dense<0.000000e+00> : vector<24x8xf32>
    %389 = tpu.matmul %388, %375, %cst_143 {dimension_numbers = #tpu.dot_dimension_numbers<[1], [0], [0], [1], [0, 0, 1, 1], [], []>} : vector<24x24xf32>, vector<24x8xf32>, vector<24x8xf32> -> vector<24x8xf32>
    %390 = vector.extract_strided_slice %286 {offsets = [24, 16], sizes = [24, 8], strides = [1, 1]} : vector<48x96xf32> to vector<24x8xf32>
    %391 = vector.extract_strided_slice %286 {offsets = [24, 48], sizes = [24, 8], strides = [1, 1]} : vector<48x96xf32> to vector<24x8xf32>
    %392 = vector.extract_strided_slice %286 {offsets = [24, 80], sizes = [24, 8], strides = [1, 1]} : vector<48x96xf32> to vector<24x8xf32>
    %cst_144 = arith.constant dense<0.000000e+00> : vector<24x24xf32>
    %393 = tpu.matmul %390, %391, %cst_144 {dimension_numbers = #tpu.dot_dimension_numbers<[1], [1], [0], [0], [0, 0, 1, 0], [], []>} : vector<24x8xf32>, vector<24x8xf32>, vector<24x24xf32> -> vector<24x24xf32>
    %394 = vector.broadcast %25 : vector<1x24xf32> to vector<24x24xf32>
    %395 = arith.addf %393, %394 : vector<24x24xf32>
    %cst_145 = arith.constant dense<0xFF800000> : vector<24xf32>
    %396 = vector.multi_reduction <maximumf>, %395, %cst_145 [1] : vector<24x24xf32> to vector<24xf32>
    %397 = vector.shape_cast %396 : vector<24xf32> to vector<24x1xf32>
    %398 = vector.broadcast %397 : vector<24x1xf32> to vector<24x24xf32>
    %399 = arith.subf %395, %398 : vector<24x24xf32>
    %400 = math.exp %399 : vector<24x24xf32>
    %cst_146 = arith.constant dense<0.000000e+00> : vector<24xf32>
    %401 = vector.multi_reduction <add>, %400, %cst_146 [1] : vector<24x24xf32> to vector<24xf32>
    %402 = vector.shape_cast %401 : vector<24xf32> to vector<24x1xf32>
    %403 = tpu.reciprocal %402 {approx = true} : vector<24x1xf32> -> vector<24x1xf32>
    %404 = vector.broadcast %403 : vector<24x1xf32> to vector<24x24xf32>
    %405 = arith.mulf %400, %404 : vector<24x24xf32>
    %cst_147 = arith.constant dense<0.000000e+00> : vector<24x8xf32>
    %406 = tpu.matmul %405, %392, %cst_147 {dimension_numbers = #tpu.dot_dimension_numbers<[1], [0], [0], [1], [0, 0, 1, 1], [], []>} : vector<24x24xf32>, vector<24x8xf32>, vector<24x8xf32> -> vector<24x8xf32>
    %407 = vector.extract_strided_slice %286 {offsets = [24, 24], sizes = [24, 8], strides = [1, 1]} : vector<48x96xf32> to vector<24x8xf32>
    %408 = vector.extract_strided_slice %286 {offsets = [24, 56], sizes = [24, 8], strides = [1, 1]} : vector<48x96xf32> to vector<24x8xf32>
    %409 = vector.extract_strided_slice %286 {offsets = [24, 88], sizes = [24, 8], strides = [1, 1]} : vector<48x96xf32> to vector<24x8xf32>
    %cst_148 = arith.constant dense<0.000000e+00> : vector<24x24xf32>
    %410 = tpu.matmul %407, %408, %cst_148 {dimension_numbers = #tpu.dot_dimension_numbers<[1], [1], [0], [0], [0, 0, 1, 0], [], []>} : vector<24x8xf32>, vector<24x8xf32>, vector<24x24xf32> -> vector<24x24xf32>
    %411 = vector.broadcast %25 : vector<1x24xf32> to vector<24x24xf32>
    %412 = arith.addf %410, %411 : vector<24x24xf32>
    %cst_149 = arith.constant dense<0xFF800000> : vector<24xf32>
    %413 = vector.multi_reduction <maximumf>, %412, %cst_149 [1] : vector<24x24xf32> to vector<24xf32>
    %414 = vector.shape_cast %413 : vector<24xf32> to vector<24x1xf32>
    %415 = vector.broadcast %414 : vector<24x1xf32> to vector<24x24xf32>
    %416 = arith.subf %412, %415 : vector<24x24xf32>
    %417 = math.exp %416 : vector<24x24xf32>
    %cst_150 = arith.constant dense<0.000000e+00> : vector<24xf32>
    %418 = vector.multi_reduction <add>, %417, %cst_150 [1] : vector<24x24xf32> to vector<24xf32>
    %419 = vector.shape_cast %418 : vector<24xf32> to vector<24x1xf32>
    %420 = tpu.reciprocal %419 {approx = true} : vector<24x1xf32> -> vector<24x1xf32>
    %421 = vector.broadcast %420 : vector<24x1xf32> to vector<24x24xf32>
    %422 = arith.mulf %417, %421 : vector<24x24xf32>
    %cst_151 = arith.constant dense<0.000000e+00> : vector<24x8xf32>
    %423 = tpu.matmul %422, %409, %cst_151 {dimension_numbers = #tpu.dot_dimension_numbers<[1], [0], [0], [1], [0, 0, 1, 1], [], []>} : vector<24x24xf32>, vector<24x8xf32>, vector<24x8xf32> -> vector<24x8xf32>
    %424 = tpu.concatenate %372, %389, %406, %423 in 1 : vector<24x8xf32>, vector<24x8xf32>, vector<24x8xf32>, vector<24x8xf32> -> vector<24x32xf32>
    %425 = tpu.concatenate %355, %424 in 0 : vector<24x32xf32>, vector<24x32xf32> -> vector<48x32xf32>
    %c1_152 = arith.constant 1 : index
    %c0_153 = arith.constant 0 : index
    %c0_154 = arith.constant 0 : index
    %426 = vector.load %arg10[%c1_152, %c0_153, %c0_154] : memref<2x32x32xf32, #tpu.memory_space<vmem>>, vector<1x32x32xf32>
    %427 = vector.shape_cast %426 : vector<1x32x32xf32> to vector<32x32xf32>
    %cst_155 = arith.constant dense<0.000000e+00> : vector<48x32xf32>
    %428 = tpu.matmul %425, %427, %cst_155 {dimension_numbers = #tpu.dot_dimension_numbers<[1], [0], [0], [1], [0, 0, 1, 1], [], []>} : vector<48x32xf32>, vector<32x32xf32>, vector<48x32xf32> -> vector<48x32xf32>
    %429 = arith.addf %255, %428 : vector<48x32xf32>
    %c1_156 = arith.constant 1 : index
    %c0_157 = arith.constant 0 : index
    %c0_158 = arith.constant 0 : index
    %430 = vector.load %arg11[%c1_156, %c0_157, %c0_158] : memref<2x1x32xf32, #tpu.memory_space<vmem>>, vector<1x1x32xf32>
    %431 = vector.shape_cast %430 : vector<1x1x32xf32> to vector<1x32xf32>
    %432 = vector.broadcast %431 : vector<1x32xf32> to vector<48x32xf32>
    %433 = arith.addf %429, %432 : vector<48x32xf32>
    %c1_159 = arith.constant 1 : index
    %c0_160 = arith.constant 0 : index
    %c0_161 = arith.constant 0 : index
    %434 = vector.load %arg12[%c1_159, %c0_160, %c0_161] : memref<2x1x32xf32, #tpu.memory_space<vmem>>, vector<1x1x32xf32>
    %435 = vector.shape_cast %434 : vector<1x1x32xf32> to vector<1x32xf32>
    %c1_162 = arith.constant 1 : index
    %c0_163 = arith.constant 0 : index
    %c0_164 = arith.constant 0 : index
    %436 = vector.load %arg13[%c1_162, %c0_163, %c0_164] : memref<2x1x32xf32, #tpu.memory_space<vmem>>, vector<1x1x32xf32>
    %437 = vector.shape_cast %436 : vector<1x1x32xf32> to vector<1x32xf32>
    %cst_165 = arith.constant dense<0.000000e+00> : vector<48xf32>
    %438 = vector.multi_reduction <add>, %433, %cst_165 [1] : vector<48x32xf32> to vector<48xf32>
    %439 = vector.shape_cast %438 : vector<48xf32> to vector<48x1xf32>
    %cst_166 = arith.constant 3.200000e+01 : f32
    %440 = vector.broadcast %cst_166 : f32 to vector<48x1xf32>
    %441 = arith.divf %439, %440 : vector<48x1xf32>
    %442 = vector.broadcast %441 : vector<48x1xf32> to vector<48x32xf32>
    %443 = arith.subf %433, %442 : vector<48x32xf32>
    %444 = arith.mulf %443, %443 : vector<48x32xf32>
    %cst_167 = arith.constant dense<0.000000e+00> : vector<48xf32>
    %445 = vector.multi_reduction <add>, %444, %cst_167 [1] : vector<48x32xf32> to vector<48xf32>
    %446 = vector.shape_cast %445 : vector<48xf32> to vector<48x1xf32>
    %cst_168 = arith.constant 3.200000e+01 : f32
    %447 = vector.broadcast %cst_168 : f32 to vector<48x1xf32>
    %448 = arith.divf %446, %447 : vector<48x1xf32>
    %cst_169 = arith.constant 9.99999997E-7 : f32
    %449 = vector.broadcast %cst_169 : f32 to vector<48x1xf32>
    %450 = arith.addf %448, %449 : vector<48x1xf32>
    %451 = math.rsqrt %450 : vector<48x1xf32>
    %452 = vector.broadcast %451 : vector<48x1xf32> to vector<48x32xf32>
    %453 = arith.mulf %443, %452 : vector<48x32xf32>
    %454 = vector.broadcast %435 : vector<1x32xf32> to vector<48x32xf32>
    %455 = arith.mulf %453, %454 : vector<48x32xf32>
    %456 = vector.broadcast %437 : vector<1x32xf32> to vector<48x32xf32>
    %457 = arith.addf %455, %456 : vector<48x32xf32>
    %c1_170 = arith.constant 1 : index
    %c0_171 = arith.constant 0 : index
    %c0_172 = arith.constant 0 : index
    %458 = vector.load %arg14[%c1_170, %c0_171, %c0_172] : memref<2x32x128xf32, #tpu.memory_space<vmem>>, vector<1x32x128xf32>
    %459 = vector.shape_cast %458 : vector<1x32x128xf32> to vector<32x128xf32>
    %cst_173 = arith.constant dense<0.000000e+00> : vector<48x128xf32>
    %460 = tpu.matmul %457, %459, %cst_173 {dimension_numbers = #tpu.dot_dimension_numbers<[1], [0], [0], [1], [0, 0, 1, 1], [], []>} : vector<48x32xf32>, vector<32x128xf32>, vector<48x128xf32> -> vector<48x128xf32>
    %c1_174 = arith.constant 1 : index
    %c0_175 = arith.constant 0 : index
    %c0_176 = arith.constant 0 : index
    %461 = vector.load %arg15[%c1_174, %c0_175, %c0_176] : memref<2x1x128xf32, #tpu.memory_space<vmem>>, vector<1x1x128xf32>
    %462 = vector.shape_cast %461 : vector<1x1x128xf32> to vector<1x128xf32>
    %463 = vector.broadcast %462 : vector<1x128xf32> to vector<48x128xf32>
    %464 = arith.addf %460, %463 : vector<48x128xf32>
    %465 = arith.mulf %464, %464 : vector<48x128xf32>
    %466 = arith.mulf %464, %465 : vector<48x128xf32>
    %cst_177 = arith.constant 4.471500e-02 : f32
    %467 = vector.broadcast %cst_177 : f32 to vector<48x128xf32>
    %468 = arith.mulf %467, %466 : vector<48x128xf32>
    %469 = arith.addf %464, %468 : vector<48x128xf32>
    %cst_178 = arith.constant 0.797884583 : f32
    %470 = vector.broadcast %cst_178 : f32 to vector<48x128xf32>
    %471 = arith.mulf %470, %469 : vector<48x128xf32>
    %472 = math.tanh %471 : vector<48x128xf32>
    %cst_179 = arith.constant 1.000000e+00 : f32
    %473 = vector.broadcast %cst_179 : f32 to vector<48x128xf32>
    %474 = arith.addf %473, %472 : vector<48x128xf32>
    %cst_180 = arith.constant 5.000000e-01 : f32
    %475 = vector.broadcast %cst_180 : f32 to vector<48x128xf32>
    %476 = arith.mulf %475, %474 : vector<48x128xf32>
    %477 = arith.mulf %464, %476 : vector<48x128xf32>
    %c1_181 = arith.constant 1 : index
    %c0_182 = arith.constant 0 : index
    %c0_183 = arith.constant 0 : index
    %478 = vector.load %arg16[%c1_181, %c0_182, %c0_183] : memref<2x128x32xf32, #tpu.memory_space<vmem>>, vector<1x128x32xf32>
    %479 = vector.shape_cast %478 : vector<1x128x32xf32> to vector<128x32xf32>
    %cst_184 = arith.constant dense<0.000000e+00> : vector<48x32xf32>
    %480 = tpu.matmul %477, %479, %cst_184 {dimension_numbers = #tpu.dot_dimension_numbers<[1], [0], [0], [1], [0, 0, 1, 1], [], []>} : vector<48x128xf32>, vector<128x32xf32>, vector<48x32xf32> -> vector<48x32xf32>
    %c1_185 = arith.constant 1 : index
    %c0_186 = arith.constant 0 : index
    %c0_187 = arith.constant 0 : index
    %481 = vector.load %arg17[%c1_185, %c0_186, %c0_187] : memref<2x1x32xf32, #tpu.memory_space<vmem>>, vector<1x1x32xf32>
    %482 = vector.shape_cast %481 : vector<1x1x32xf32> to vector<1x32xf32>
    %483 = vector.broadcast %482 : vector<1x32xf32> to vector<48x32xf32>
    %484 = arith.addf %480, %483 : vector<48x32xf32>
    %485 = arith.addf %433, %484 : vector<48x32xf32>
    %c0_188 = arith.constant 0 : index
    %c0_189 = arith.constant 0 : index
    %486 = vector.load %arg18[%c0_188, %c0_189] : memref<1x32xf32, #tpu.memory_space<vmem>>, vector<1x32xf32>
    %c0_190 = arith.constant 0 : index
    %c0_191 = arith.constant 0 : index
    %487 = vector.load %arg19[%c0_190, %c0_191] : memref<1x32xf32, #tpu.memory_space<vmem>>, vector<1x32xf32>
    %cst_192 = arith.constant dense<0.000000e+00> : vector<48xf32>
    %488 = vector.multi_reduction <add>, %485, %cst_192 [1] : vector<48x32xf32> to vector<48xf32>
    %489 = vector.shape_cast %488 : vector<48xf32> to vector<48x1xf32>
    %cst_193 = arith.constant 3.200000e+01 : f32
    %490 = vector.broadcast %cst_193 : f32 to vector<48x1xf32>
    %491 = arith.divf %489, %490 : vector<48x1xf32>
    %492 = vector.broadcast %491 : vector<48x1xf32> to vector<48x32xf32>
    %493 = arith.subf %485, %492 : vector<48x32xf32>
    %494 = arith.mulf %493, %493 : vector<48x32xf32>
    %cst_194 = arith.constant dense<0.000000e+00> : vector<48xf32>
    %495 = vector.multi_reduction <add>, %494, %cst_194 [1] : vector<48x32xf32> to vector<48xf32>
    %496 = vector.shape_cast %495 : vector<48xf32> to vector<48x1xf32>
    %cst_195 = arith.constant 3.200000e+01 : f32
    %497 = vector.broadcast %cst_195 : f32 to vector<48x1xf32>
    %498 = arith.divf %496, %497 : vector<48x1xf32>
    %cst_196 = arith.constant 9.99999997E-7 : f32
    %499 = vector.broadcast %cst_196 : f32 to vector<48x1xf32>
    %500 = arith.addf %498, %499 : vector<48x1xf32>
    %501 = math.rsqrt %500 : vector<48x1xf32>
    %502 = vector.broadcast %501 : vector<48x1xf32> to vector<48x32xf32>
    %503 = arith.mulf %493, %502 : vector<48x32xf32>
    %504 = vector.broadcast %486 : vector<1x32xf32> to vector<48x32xf32>
    %505 = arith.mulf %503, %504 : vector<48x32xf32>
    %506 = vector.broadcast %487 : vector<1x32xf32> to vector<48x32xf32>
    %507 = arith.addf %505, %506 : vector<48x32xf32>
    %cst_197 = arith.constant 0.000000e+00 : f32
    %508 = vector.broadcast %cst_197 : f32 to vector<48x96xf32>
    %509 = tpu.concatenate %507, %508 in 1 : vector<48x32xf32>, vector<48x96xf32> -> vector<48x128xf32>
    %c0_198 = arith.constant 0 : index
    %c0_199 = arith.constant 0 : index
    %c0_200 = arith.constant 0 : index
    %510 = vector.load %arg22[%c0_198, %c0_199, %c0_200] : memref<1x48x128xf32, #tpu.memory_space<vmem>>, vector<1x48x128xf32>
    %511 = vector.shape_cast %510 : vector<1x48x128xf32> to vector<48x128xf32>
    %512 = vector.shape_cast %509 : vector<48x128xf32> to vector<1x48x128xf32>
    tpu.vector_store %arg22[%c0_198, %c0_199, %c0_200], %512 {strides = array<i32>} : memref<1x48x128xf32, #tpu.memory_space<vmem>>, vector<1x48x128xf32>,
    %513 = vector.extract_strided_slice %507 {offsets = [8, 0], sizes = [16, 32], strides = [1, 1]} : vector<48x32xf32> to vector<16x32xf32>
    %514 = vector.extract_strided_slice %507 {offsets = [32, 0], sizes = [16, 32], strides = [1, 1]} : vector<48x32xf32> to vector<16x32xf32>
    %515 = tpu.concatenate %513, %514 in 0 : vector<16x32xf32>, vector<16x32xf32> -> vector<32x32xf32>
    %c0_201 = arith.constant 0 : index
    %c0_202 = arith.constant 0 : index
    %516 = vector.load %arg20[%c0_201, %c0_202] : memref<32x128xf32, #tpu.memory_space<vmem>>, vector<32x128xf32>
    %cst_203 = arith.constant dense<0.000000e+00> : vector<32x128xf32>
    %517 = tpu.matmul %515, %516, %cst_203 {dimension_numbers = #tpu.dot_dimension_numbers<[1], [0], [0], [1], [0, 0, 1, 1], [], []>} : vector<32x32xf32>, vector<32x128xf32>, vector<32x128xf32> -> vector<32x128xf32>
    %c0_204 = arith.constant 0 : index
    %c0_205 = arith.constant 0 : index
    %518 = vector.load %arg21[%c0_204, %c0_205] : memref<1x128xf32, #tpu.memory_space<vmem>>, vector<1x128xf32>
    %519 = vector.broadcast %518 : vector<1x128xf32> to vector<32x128xf32>
    %520 = arith.addf %517, %519 : vector<32x128xf32>
    %c0_206 = arith.constant 0 : index
    %c0_207 = arith.constant 0 : index
    %c0_208 = arith.constant 0 : index
    %521 = vector.load %arg23[%c0_206, %c0_207, %c0_208] : memref<1x32x128xf32, #tpu.memory_space<vmem>>, vector<1x32x128xf32>
    %522 = vector.shape_cast %521 : vector<1x32x128xf32> to vector<32x128xf32>
    %523 = vector.shape_cast %520 : vector<32x128xf32> to vector<1x32x128xf32>
    tpu.vector_store %arg23[%c0_206, %c0_207, %c0_208], %523 {strides = array<i32>} : memref<1x32x128xf32, #tpu.memory_space<vmem>>, vector<1x32x128xf32>,
    return
  }
  func.func @transform_0(%arg0: i32) -> (i32, i32) {
    %c0_i32 = arith.constant 0 : i32
    %c0_i32_0 = arith.constant 0 : i32
    return %arg0, %c0_i32 : i32, i32
  }
  func.func @transform_1(%arg0: i32) -> (i32, i32) {
    %c0_i32 = arith.constant 0 : i32
    %c0_i32_0 = arith.constant 0 : i32
    %c0_i32_1 = arith.constant 0 : i32
    return %c0_i32, %c0_i32_0 : i32, i32
  }
  func.func @transform_2(%arg0: i32) -> (i32, i32) {
    %c0_i32 = arith.constant 0 : i32
    %c0_i32_0 = arith.constant 0 : i32
    %c0_i32_1 = arith.constant 0 : i32
    return %c0_i32, %c0_i32_0 : i32, i32
  }
  func.func @transform_3(%arg0: i32) -> (i32, i32) {
    %c0_i32 = arith.constant 0 : i32
    %c0_i32_0 = arith.constant 0 : i32
    %c0_i32_1 = arith.constant 0 : i32
    return %c0_i32, %c0_i32_0 : i32, i32
  }
  func.func @transform_4(%arg0: i32) -> (i32, i32) {
    %c0_i32 = arith.constant 0 : i32
    %c0_i32_0 = arith.constant 0 : i32
    %c0_i32_1 = arith.constant 0 : i32
    return %c0_i32, %c0_i32_0 : i32, i32
  }
  func.func @transform_5(%arg0: i32) -> (i32, i32, i32) {
    %c0_i32 = arith.constant 0 : i32
    %c0_i32_0 = arith.constant 0 : i32
    %c0_i32_1 = arith.constant 0 : i32
    %c0_i32_2 = arith.constant 0 : i32
    return %c0_i32, %c0_i32_0, %c0_i32_1 : i32, i32, i32
  }
  func.func @transform_6(%arg0: i32) -> (i32, i32, i32) {
    %c0_i32 = arith.constant 0 : i32
    %c0_i32_0 = arith.constant 0 : i32
    %c0_i32_1 = arith.constant 0 : i32
    %c0_i32_2 = arith.constant 0 : i32
    return %c0_i32, %c0_i32_0, %c0_i32_1 : i32, i32, i32
  }
  func.func @transform_7(%arg0: i32) -> (i32, i32, i32) {
    %c0_i32 = arith.constant 0 : i32
    %c0_i32_0 = arith.constant 0 : i32
    %c0_i32_1 = arith.constant 0 : i32
    %c0_i32_2 = arith.constant 0 : i32
    return %c0_i32, %c0_i32_0, %c0_i32_1 : i32, i32, i32
  }
  func.func @transform_8(%arg0: i32) -> (i32, i32, i32) {
    %c0_i32 = arith.constant 0 : i32
    %c0_i32_0 = arith.constant 0 : i32
    %c0_i32_1 = arith.constant 0 : i32
    %c0_i32_2 = arith.constant 0 : i32
    return %c0_i32, %c0_i32_0, %c0_i32_1 : i32, i32, i32
  }
  func.func @transform_9(%arg0: i32) -> (i32, i32, i32) {
    %c0_i32 = arith.constant 0 : i32
    %c0_i32_0 = arith.constant 0 : i32
    %c0_i32_1 = arith.constant 0 : i32
    %c0_i32_2 = arith.constant 0 : i32
    return %c0_i32, %c0_i32_0, %c0_i32_1 : i32, i32, i32
  }
  func.func @transform_10(%arg0: i32) -> (i32, i32, i32) {
    %c0_i32 = arith.constant 0 : i32
    %c0_i32_0 = arith.constant 0 : i32
    %c0_i32_1 = arith.constant 0 : i32
    %c0_i32_2 = arith.constant 0 : i32
    return %c0_i32, %c0_i32_0, %c0_i32_1 : i32, i32, i32
  }
  func.func @transform_11(%arg0: i32) -> (i32, i32, i32) {
    %c0_i32 = arith.constant 0 : i32
    %c0_i32_0 = arith.constant 0 : i32
    %c0_i32_1 = arith.constant 0 : i32
    %c0_i32_2 = arith.constant 0 : i32
    return %c0_i32, %c0_i32_0, %c0_i32_1 : i32, i32, i32
  }
  func.func @transform_12(%arg0: i32) -> (i32, i32, i32) {
    %c0_i32 = arith.constant 0 : i32
    %c0_i32_0 = arith.constant 0 : i32
    %c0_i32_1 = arith.constant 0 : i32
    %c0_i32_2 = arith.constant 0 : i32
    return %c0_i32, %c0_i32_0, %c0_i32_1 : i32, i32, i32
  }
  func.func @transform_13(%arg0: i32) -> (i32, i32, i32) {
    %c0_i32 = arith.constant 0 : i32
    %c0_i32_0 = arith.constant 0 : i32
    %c0_i32_1 = arith.constant 0 : i32
    %c0_i32_2 = arith.constant 0 : i32
    return %c0_i32, %c0_i32_0, %c0_i32_1 : i32, i32, i32
  }
  func.func @transform_14(%arg0: i32) -> (i32, i32, i32) {
    %c0_i32 = arith.constant 0 : i32
    %c0_i32_0 = arith.constant 0 : i32
    %c0_i32_1 = arith.constant 0 : i32
    %c0_i32_2 = arith.constant 0 : i32
    return %c0_i32, %c0_i32_0, %c0_i32_1 : i32, i32, i32
  }
  func.func @transform_15(%arg0: i32) -> (i32, i32, i32) {
    %c0_i32 = arith.constant 0 : i32
    %c0_i32_0 = arith.constant 0 : i32
    %c0_i32_1 = arith.constant 0 : i32
    %c0_i32_2 = arith.constant 0 : i32
    return %c0_i32, %c0_i32_0, %c0_i32_1 : i32, i32, i32
  }
  func.func @transform_16(%arg0: i32) -> (i32, i32, i32) {
    %c0_i32 = arith.constant 0 : i32
    %c0_i32_0 = arith.constant 0 : i32
    %c0_i32_1 = arith.constant 0 : i32
    %c0_i32_2 = arith.constant 0 : i32
    return %c0_i32, %c0_i32_0, %c0_i32_1 : i32, i32, i32
  }
  func.func @transform_17(%arg0: i32) -> (i32, i32) {
    %c0_i32 = arith.constant 0 : i32
    %c0_i32_0 = arith.constant 0 : i32
    %c0_i32_1 = arith.constant 0 : i32
    return %c0_i32, %c0_i32_0 : i32, i32
  }
  func.func @transform_18(%arg0: i32) -> (i32, i32) {
    %c0_i32 = arith.constant 0 : i32
    %c0_i32_0 = arith.constant 0 : i32
    %c0_i32_1 = arith.constant 0 : i32
    return %c0_i32, %c0_i32_0 : i32, i32
  }
  func.func @transform_19(%arg0: i32) -> (i32, i32) {
    %c0_i32 = arith.constant 0 : i32
    %c0_i32_0 = arith.constant 0 : i32
    %c0_i32_1 = arith.constant 0 : i32
    return %c0_i32, %c0_i32_0 : i32, i32
  }
  func.func @transform_20(%arg0: i32) -> (i32, i32) {
    %c0_i32 = arith.constant 0 : i32
    %c0_i32_0 = arith.constant 0 : i32
    %c0_i32_1 = arith.constant 0 : i32
    return %c0_i32, %c0_i32_0 : i32, i32
  }
  func.func @transform_21(%arg0: i32) -> (i32, i32, i32) {
    %c0_i32 = arith.constant 0 : i32
    %c0_i32_0 = arith.constant 0 : i32
    %c0_i32_1 = arith.constant 0 : i32
    return %arg0, %c0_i32, %c0_i32_0 : i32, i32, i32
  }
  func.func @transform_22(%arg0: i32) -> (i32, i32, i32) {
    %c0_i32 = arith.constant 0 : i32
    %c0_i32_0 = arith.constant 0 : i32
    %c0_i32_1 = arith.constant 0 : i32
    return %arg0, %c0_i32, %c0_i32_0 : i32, i32, i32
  }
}

</mosaic_0001>

<bundles_post_ra>
// kernel: _lambda_.1
= control target key start
LH: loop header
LB: loop body
LE: loop exit
PB: predicated region body
PF: predicated region fallthrough
CT: control target
= control target key end

     0   :  { %vm189_vm0 = vcmask 1043456   ;;  %vm199_vm1 = vcmask 261120   ;;  %vm7473_vm2 = vmmov 0   ;;  %vm418_vm3 = vcmask 64512   ;;  %s7485_s26 = smov 8   ;;  %s9768_s1 = inlined_call_operand.vmem [shape: f32[128,32], index: 1, kind: input, shape index: {}]   ;;  %s9769_s0 = inlined_call_operand.vmem [shape: f32[32,128], index: 0, kind: input, shape index: {}]   ;;  %s9770_s4 = inlined_call_operand.vmem [shape: f32[4,32], index: 4, kind: input, shape index: {}]   ;;  %s9771_s2 = inlined_call_operand.vmem [shape: f32[1,32], index: 2, kind: input, shape index: {}, may-alias: {2,18}]   ;;  %s9772_s3 = inlined_call_operand.vmem [shape: f32[16,32], index: 3, kind: input, shape index: {}]   ;;  %s9773_s5 = inlined_call_operand.vmem [shape: f32[2,1,32], index: 5, kind: input, shape index: {}, may-alias: {5,11}]   ;;  %s9774_s6 = inlined_call_operand.vmem [shape: f32[2,1,32], index: 6, kind: input, shape index: {}, may-alias: {6,10,12,16}]   ;;  %s9775_s7 = inlined_call_operand.vmem [shape: f32[2,32,96], index: 7, kind: input, shape index: {}]   ;;  %s9776_s8 = inlined_call_operand.vmem [shape: f32[2,1,96], index: 8, kind: input, shape index: {}]   ;;  %s9777_s9 = inlined_call_operand.vmem [shape: f32[2,32,32], index: 9, kind: input, shape index: {}]   ;;  %s9778_s10 = inlined_call_operand.vmem [shape: f32[2,1,32], index: 10, kind: input, shape index: {}, may-alias: {6,10,12,16}]   ;;  %s9779_s13 = inlined_call_operand.vmem [shape: f32[2,32,128], index: 13, kind: input, shape index: {}]   ;;  %s9780_s11 = inlined_call_operand.vmem [shape: f32[2,1,32], index: 11, kind: input, shape index: {}, may-alias: {5,11}]   ;;  %s9781_s12 = inlined_call_operand.vmem [shape: f32[2,1,32], index: 12, kind: input, shape index: {}, may-alias: {6,10,12,16}]   ;;  %s9782_s15 = inlined_call_operand.vmem [shape: f32[2,128,32], index: 15, kind: input, shape index: {}]   ;;  %s9783_s14 = inlined_call_operand.vmem [shape: f32[2,1,128], index: 14, kind: input, shape index: {}]   ;;  %s9784_s16 = inlined_call_operand.vmem [shape: f32[2,1,32], index: 16, kind: input, shape index: {}, may-alias: {6,10,12,16}]   ;;  %s9785_s19 = inlined_call_operand.vmem [shape: f32[32,128], index: 19, kind: input, shape index: {}]   ;;  %s9786_s17 = inlined_call_operand.vmem [shape: f32[1,32], index: 17, kind: input, shape index: {}]   ;;  %s9787_s18 = inlined_call_operand.vmem [shape: f32[1,32], index: 18, kind: input, shape index: {}, may-alias: {2,18}]   ;;  %s9788_s21 = inlined_call_operand.vmem [shape: f32[1,48,128], index: 21, kind: output, shape index: {0}]   ;;  %s9789_s20 = inlined_call_operand.vmem [shape: f32[1,128], index: 20, kind: input, shape index: {}]   ;;  %s9790_s22 = inlined_call_operand.vmem [shape: f32[1,32,128], index: 22, kind: output, shape index: {1}]  }
   0x1   :  { %9814 = sst [smem:[#allocation2_spill]] %s9768_s1  ;;  %vm511_vm7 = vcmask 195584   ;;  %s9806_s1 = smov 112   ;;  %vm1387_vm8 = vcmask 130048  }
   0x2   :  { %9815 = sst [smem:[#allocation3_spill]] %s9769_s0  ;;  %s9804_s0 = smov 104  }
   0x3   :  { %9816 = sst [smem:[#allocation4_spill]] %s9770_s4  ;;  %s7472_s4 = smov 96  }
   0x4   :  { %9817 = sst [smem:[#allocation5_spill]] %s9771_s2  ;;  %s9802_s2 = smov 64  }
   0x5   :  { %9818 = sst [smem:[#allocation6_spill]] %s9772_s3  ;;  %s7477_s3 = smov 120  }
   0x6   :  { %9819 = sst [smem:[#allocation7_spill]] %s9773_s5  ;;  %s9800_s5 = smov 56  }
   0x7   :  { %9820 = sst [smem:[#allocation8_spill]] %s9774_s6  ;;  %s9796_s6 = smov 40  }
   0x8   :  { %s9821_s29 = sld [smem:[#allocation2_spill]] }
   0x9   :  { %s9822_s25 = sld [smem:[#allocation3_spill]] }
   0xa   :  { %s9823_s28 = sld [smem:[#allocation4_spill]] }
   0xb   :  { %s9824_s23 = sld [smem:[#allocation5_spill]] }
   0xc   :  { %s9825_s24 = sld [smem:[#allocation6_spill]] }
   0xd   :  { %s9826_s27 = sld [smem:[#allocation7_spill]] }
   0xe   :  { %v89_v0 = vld [vmem:[%s9821_s29 + $0x78] sm:$0xff]  ;;  %v88_v1 = vld [vmem:[%s9821_s29 + $0x70] sm:$0xff]  ;;  %v87_v2 = vld [vmem:[%s9821_s29 + $0x68] sm:$0xff]  ;;  %s9827_s30 = sld [smem:[#allocation8_spill]] }
   0xf   :  { %6464 = vmatprep.subr.mxu0 %v89_v0  ;;  %v86_v3 = vld [vmem:[%s9821_s29 + $0x60] sm:$0xff]  ;;  %v85_v5 = vld [vmem:[%s9821_s29 + $0x58] sm:$0xff]  ;;  %v84_v8 = vld [vmem:[%s9821_s29 + $0x50] sm:$0xff] }
  0x10   :  { %6465 = vmatpush3.msra.mxu0 %v89_v0  ;;  %v70_v4 = vld [vmem:[%s9822_s25] sm:$0xff]  ;;  %v83_v10 = vld [vmem:[%s9821_s29 + $0x48] sm:$0xff]  ;;  %v81_v12 = vld [vmem:[%s9821_s29 + $0x38] sm:$0xff] }
  0x11   :  { %6466 = vmatprep.subr.mxu0 %v88_v1  ;;  %6496 = vmatprep.mubr.f32.mxu0 %v70_v4  ;;  %v182_v6 = vld [vmem:[%s9823_s28] sm:$0xf]  ;;  %v80_v13 = vld [vmem:[%s9821_s29 + $0x30] sm:$0xff]  ;;  %v79_v14 = vld [vmem:[%s9821_s29 + $0x28] sm:$0xff]  ;;  %s7475_s28 = smov 88  }
  0x12   :  { %6467 = vmatpush3.msra.mxu0 %v88_v1  ;;  %v7624_v7 = vsel %vm189_vm0, %v182_v6, 0.0  ;;  %v82_v11 = vld [vmem:[%s9821_s29 + $0x40] sm:$0xff]  ;;  %v77_v16 = vld [vmem:[%s9821_s29 + $0x18] sm:$0xff]  ;;  %v76_v17 = vld [vmem:[%s9821_s29 + $0x10] sm:$0xff] }
  0x13   :  { %6468 = vmatprep.subr.mxu0 %v87_v2  ;;  %v200_v9 = vsel %vm199_vm1, %v7624_v7, 0.0  ;;  %v78_v15 = vld [vmem:[%s9821_s29 + $0x20] sm:$0xff]  ;;  %v75_v18 = vld [vmem:[%s9821_s29 + $0x8] sm:$0xff]  ;;  %v72_v21 = vld [vmem:[%s9822_s25 + $0x10] sm:$0xff] }
  0x14   :  { %6469 = vmatpush3.msra.mxu0 %v87_v2  ;;  %201 = vadd.xlane.f32.xlu0 %v200_v9  ;;  %v74_v19 = vld [vmem:[%s9821_s29] sm:$0xff]  ;;  %v71_v20 = vld [vmem:[%s9822_s25 + $0x8] sm:$0xff]  ;;  %v73_v22 = vld [vmem:[%s9822_s25 + $0x18] sm:$0xff]  ;;  %s7478_s29 = smov 80   ;;  %s9830_s25 = smov 104  }
  0x15   :  { %6470 = vmatprep.subr.mxu0 %v86_v3  ;;  %v5900_v25 = vld [vmem:[%s9824_s23] ss:$0 sm:$0xff]  ;;  %v184_v28 = vld [vmem:[%s9825_s24 + $0x8] sm:$0xff]  ;;  %v291_v2 = vld [vmem:[%s9775_s7 + $0x18] sm:$0xff]  ;;  %s9808_s23 = smov 72  }
  0x16   :  { %6471 = vmatpush3.msra.mxu0 %v86_v3  ;;  %v183_v31 = vld [vmem:[%s9825_s24] sm:$0xff]  ;;  %v290_v3 = vld [vmem:[%s9775_s7 + $0x10] sm:$0xff]  ;;  %6502 = vmatprep.subr.mxu1 %v291_v2  ;;  %v289_v4 = vld [vmem:[%s9775_s7 + $0x8] sm:$0xff]  ;;  %s9798_s24 = smov 48  }
  0x17   :  { %6472 = vmatprep.subr.mxu0 %v85_v5  ;;  %v7704_v61 = vld [vmem:[%s9826_s27] ss:$0 sm:$0xff]  ;;  %6503 = vmatpush3.msra.mxu1 %v291_v2 }
  0x18   :  { %6473 = vmatpush3.msra.mxu0 %v85_v5  ;;  %v7709_v63 = vld [vmem:[%s9827_s30] ss:$0 sm:$0xff]  ;;  %6504 = vmatprep.subr.mxu1 %v290_v3 }
  0x19   :  { %6474 = vmatprep.subr.mxu0 %v84_v8  ;;  %6505 = vmatpush3.msra.mxu1 %v290_v3  ;;  %v288_v5 = vld [vmem:[%s9775_s7] sm:$0xff] }
  0x1a   :  { %6475 = vmatpush3.msra.mxu0 %v84_v8  ;;  %6506 = vmatprep.subr.mxu1 %v289_v4 }
  0x1b   :  { %6476 = vmatprep.subr.mxu0 %v83_v10  ;;  %6507 = vmatpush3.msra.mxu1 %v289_v4 }
  0x1c   :  { %6477 = vmatpush3.msra.mxu0 %v83_v10  ;;  %6508 = vmatprep.subr.mxu1 %v288_v5 }
  0x1d   :  { %6478 = vmatprep.subr.mxu0 %v82_v11  ;;  %6509 = vmatpush3.msra.mxu1 %v288_v5 }
  0x1e   :  { %6479 = vmatpush3.msra.mxu0 %v82_v11 }
  0x1f   :  { %6480 = vmatprep.subr.mxu0 %v81_v12 }
  0x20   :  { %6481 = vmatpush3.msra.mxu0 %v81_v12 }
  0x21   :  { %6482 = vmatprep.subr.mxu0 %v80_v13 }
  0x22   :  { %6483 = vmatpush3.msra.mxu0 %v80_v13 }
  0x23   :  { %6484 = vmatprep.subr.mxu0 %v79_v14 }
  0x24   :  { %6485 = vmatpush3.msra.mxu0 %v79_v14 }
  0x25   :  { %6486 = vmatprep.subr.mxu0 %v78_v15 }
  0x26   :  { %6487 = vmatpush3.msra.mxu0 %v78_v15 }
  0x27   :  { %6488 = vmatprep.subr.mxu0 %v77_v16 }
  0x28   :  { %6489 = vmatpush3.msra.mxu0 %v77_v16 }
  0x29   :  { %6490 = vmatprep.subr.mxu0 %v76_v17 }
  0x2a   :  { %6491 = vmatpush3.msra.mxu0 %v76_v17 }
  0x2b   :  { %6492 = vmatprep.subr.mxu0 %v75_v18 }
  0x2c   :  { %6493 = vmatpush3.msra.mxu0 %v75_v18 }
  0x2d   :  { %6494 = vmatprep.subr.mxu0 %v74_v19 }
  0x2e   :  { %6495 = vmatpush3.msra.mxu0 %v74_v19 }
  0x2f   :  { %6497 = vmatmul.mubr.f32.vlgmr.msra.gmra.mxu0 %v71_v20 }
  0x30   :  { %6499 = vmatprep.mubr.f32.mxu0 %v72_v21 }
  0x33   :  { %6500 = vmatmul.mubr.f32.gmra.mxu0 %v73_v22 }
  0x9d   :  { %v202_v23 = vpop.xlane.xlu0 %201 }
  0x9e   :  { %v216_v24 = vmul.f32 0.03125, %v202_v23 }
  0xa0   :  { %v221_v26 = vsub.f32 %v7624_v7, %v216_v24 }
  0xa2   :  { %v226_v34 = vmul.f32 %v221_v26, %v221_v26 }
  0xa4   :  { %v231_v38 = vsel %vm199_vm1, %v226_v34, 0.0 }
  0xef   :  { %v6498_v27 = vpop.f32.mrf.mxu0 }
  0xf0   :  { %v169_v29 = vadd.f32 %v6498_v27, %v5900_v25 }
  0xf1   :  { %v163_v30 = vpop.f32.mrf.mxu0 }
  0xf2   :  { %v7680_v32 = vadd.f32 %v184_v28, %v169_v29  ;;  %v164_v33 = vadd.f32 %v5900_v25, %v163_v30 }
  0xf3   :  { %v6501_v39 = vpop.f32.mrf.mxu0 }
  0xf4   :  { %v7682_v35 = vadd.f32 %v183_v31, %v164_v33  ;;  %v206_v36 = vsel %vm199_vm1, %v7680_v32, 0.0  ;;  %v179_v40 = vadd.f32 %v6501_v39, %v5900_v25 }
  0xf5   :  { %207 = vadd.xlane.f32.xlu1 %v206_v36  ;;  %v173_v41 = vpop.f32.mrf.mxu0 }
  0xf6   :  { %v203_v37 = vsel %vm199_vm1, %v7682_v35, 0.0  ;;  %v7689_v42 = vadd.f32 %v184_v28, %v179_v40  ;;  %v174_v43 = vadd.f32 %v5900_v25, %v173_v41 }
  0xf7   :  { %204 = vadd.xlane.f32.xlu0 %v203_v37 }
  0xf8   :  { %v7691_v44 = vadd.f32 %v183_v31, %v174_v43  ;;  %v212_v58 = vsel %vm199_vm1, %v7689_v42, 0.0 }
  0xf9   :  { %232 = vadd.xlane.f32.xlu1 %v231_v38 }
  0xfa   :  { %v209_v59 = vsel %vm199_vm1, %v7691_v44, 0.0 }
 0x17e   :  { %v208_v45 = vpop.xlane.xlu1 %207 }
 0x17f   :  { %v218_v46 = vmul.f32 0.03125, %v208_v45 }
 0x180   :  { %v205_v47 = vpop.xlane.xlu0 %204 }
 0x181   :  { %v223_v48 = vsub.f32 %v7680_v32, %v218_v46  ;;  %v217_v49 = vmul.f32 0.03125, %v205_v47 }
 0x182   :  { %v233_v50 = vpop.xlane.xlu1 %232 }
 0x183   :  { %v222_v51 = vsub.f32 %v7682_v35, %v217_v49  ;;  %v246_v52 = vmul.f32 0.03125, %v233_v50  ;;  %v228_v53 = vmul.f32 %v223_v48, %v223_v48  ;;  %v7471_v49 = vmov 0.0   ;;  %v7748_v50 = vld [vmem:[%s9776_s8] ss:$0 sm:$0xff] }
 0x184   :  { %6519 = vmatprep.subr.mxu1 %v7471_v49  ;;  %6579 = vmatprep.subr.mxu0 %v7471_v49 }
 0x185   :  { %v251_v54 = vadd.f32 1e-06, %v246_v52  ;;  %v237_v55 = vsel %vm199_vm1, %v228_v53, 0.0  ;;  %v227_v56 = vmul.f32 %v222_v51, %v222_v51  ;;  %6585 = vmatprep.mubr.msk.f32.mxu0 %vm7473_vm2, %v7471_v49 }
 0x186   :  { %238 = vadd.xlane.f32.xlu1 %v237_v55 }
 0x187   :  { %7197 = vrsqrt.f32 %v251_v54  ;;  %v234_v57 = vsel %vm199_vm1, %v227_v56, 0.0 }
 0x188   :  { %235 = vadd.xlane.f32.xlu0 %v234_v57 }
 0x18a   :  { %213 = vadd.xlane.f32.xlu1 %v212_v58 }
 0x18c   :  { %210 = vadd.xlane.f32.xlu0 %v209_v59 }
 0x194   :  { %v7198_v60 = vpop.eup %7197 }
 0x195   :  { %v261_v62 = vmul.f32 %v7198_v60, %v221_v26 }
 0x197   :  { %v272_v0 = vmul.f32 %v7704_v61, %v261_v62 }
 0x199   :  { %v283_v1 = vadd.f32 %v7709_v63, %v272_v0 }
 0x19b   :  { %6510 = vmatprep.mubr.msk.f32.mxu1 %vm199_vm1, %v283_v1 }
 0x20f   :  { %v239_v6 = vpop.xlane.xlu1 %238 }
 0x210   :  { %v248_v8 = vmul.f32 0.03125, %v239_v6 }
 0x211   :  { %v236_v9 = vpop.xlane.xlu0 %235 }
 0x212   :  { %v253_v10 = vadd.f32 1e-06, %v248_v8  ;;  %v247_v11 = vmul.f32 0.03125, %v236_v9 }
 0x213   :  { %v214_v12 = vpop.xlane.xlu1 %213 }
 0x214   :  { %7199 = vrsqrt.f32 %v253_v10  ;;  %v252_v13 = vadd.f32 1e-06, %v247_v11  ;;  %v220_v14 = vmul.f32 0.03125, %v214_v12 }
 0x215   :  { %v211_v15 = vpop.xlane.xlu0 %210 }
 0x216   :  { %7201 = vrsqrt.f32 %v252_v13  ;;  %v225_v16 = vsub.f32 %v7689_v42, %v220_v14  ;;  %v219_v17 = vmul.f32 0.03125, %v211_v15 }
 0x218   :  { %v224_v18 = vsub.f32 %v7691_v44, %v219_v17  ;;  %v230_v19 = vmul.f32 %v225_v16, %v225_v16 }
 0x21a   :  { %v243_v20 = vsel %vm199_vm1, %v230_v19, 0.0  ;;  %v229_v21 = vmul.f32 %v224_v18, %v224_v18 }
 0x21b   :  { %244 = vadd.xlane.f32.xlu1 %v243_v20 }
 0x21c   :  { %v240_v22 = vsel %vm199_vm1, %v229_v21, 0.0 }
 0x21d   :  { %241 = vadd.xlane.f32.xlu0 %v240_v22 }
 0x221   :  { %v7200_v23 = vpop.eup %7199 }
 0x222   :  { %v263_v24 = vmul.f32 %v7200_v23, %v223_v48 }
 0x223   :  { %v7202_v25 = vpop.eup %7201 }
 0x224   :  { %v262_v26 = vmul.f32 %v7202_v25, %v222_v51  ;;  %v274_v27 = vmul.f32 %v7704_v61, %v263_v24 }
 0x226   :  { %v273_v28 = vmul.f32 %v7704_v61, %v262_v26  ;;  %v285_v30 = vadd.f32 %v7709_v63, %v274_v27 }
 0x228   :  { %v284_v29 = vadd.f32 %v7709_v63, %v273_v28 }
 0x22a   :  { %6511 = vmatmul.mubr.msk.f32.vlgmr.msra.gmra.mxu1 %vm199_vm1, %v284_v29 }
 0x22b   :  { %6513 = vmatprep.mubr.msk.f32.mxu1 %vm199_vm1, %v285_v30 }
 0x22e   :  { %6514 = vmatmul.mubr.msk.f32.gmra.mxu1 %vm199_vm1, %v283_v1  ;;  %v7476_v1 = vmov -1e+30  }
 0x2a4   :  { %v245_v31 = vpop.xlane.xlu1 %244 }
 0x2a5   :  { %v250_v33 = vmul.f32 0.03125, %v245_v31 }
 0x2a6   :  { %v242_v34 = vpop.xlane.xlu0 %241 }
 0x2a7   :  { %v255_v36 = vadd.f32 1e-06, %v250_v33  ;;  %v249_v37 = vmul.f32 0.03125, %v242_v34 }
 0x2a9   :  { %7203 = vrsqrt.f32 %v255_v36  ;;  %v254_v38 = vadd.f32 1e-06, %v249_v37 }
 0x2ab   :  { %7205 = vrsqrt.f32 %v254_v38 }
 0x2b6   :  { %v7204_v39 = vpop.eup %7203 }
 0x2b7   :  { %v265_v40 = vmul.f32 %v7204_v39, %v225_v16 }
 0x2b8   :  { %v7206_v41 = vpop.eup %7205 }
 0x2b9   :  { %v264_v43 = vmul.f32 %v7206_v41, %v224_v18  ;;  %v276_v45 = vmul.f32 %v7704_v61, %v265_v40 }
 0x2bb   :  { %v275_v46 = vmul.f32 %v7704_v61, %v264_v43  ;;  %v287_v48 = vadd.f32 %v7709_v63, %v276_v45  ;;  %v191_v61 = vlaneseq }
 0x2bd   :  { %v286_v47 = vadd.f32 %v7709_v63, %v275_v46  ;;  %v192_v62 = vand.u32 127, %v191_v61 }
 0x2bf   :  { %6516 = vmatprep.mubr.msk.f32.mxu1 %vm199_vm1, %v286_v47  ;;  %vm193_vm4 = vcmp.lt.s32.totalorder %v192_v62, 4  ;;  %vm194_vm5 = vcmp.ge.s32.totalorder %v192_v62, 8 }
 0x2c0   :  { %6517 = vmatmul.mubr.msk.f32.gmra.mxu1 %vm199_vm1, %v287_v48  ;;  %vm195_vm6 = vmor %vm193_vm4, %vm194_vm5 }
 0x2c1   :  { %6525 = vmatprep.mubr.msk.f32.mxu1 %vm7473_vm2, %v7471_v49  ;;  %v7797_v2 = vsel %vm195_vm6, 0.0, %v7476_v1 }
 0x2ea   :  { %v6512_v51 = vpop.f32.mrf.mxu1 }
 0x2eb   :  { %v7751_v52 = vadd.f32 %v6512_v51, %v7748_v50 }
 0x2ec   :  { %v380_v53 = vpop.f32.mrf.mxu1 }
 0x2ed   :  { %414 = vrot.lane.b32.xlu1 %v7751_v52, %s7472_s4  ;;  %v7758_v55 = vadd.f32 %v7748_v50, %v380_v53 }
 0x2ee   :  { %v7755_v54 = vpop.f32.mrf.mxu1 }
 0x2ef   :  { %v7871_v33 = vadd.f32 %v7755_v54, %v7748_v50 }
 0x2f0   :  { %v390_v56 = vpop.f32.mrf.mxu1 }
 0x2f1   :  { %v7765_v57 = vadd.f32 %v7748_v50, %v390_v56  ;;  %412 = vrot.lane.b32.xlu1 %v7758_v55, %s7472_s4 }
 0x2f3   :  { %416 = vrot.lane.b32.xlu0 %v7765_v57, %s7472_s4 }
 0x2f7   :  { %547 = vrot.lane.b32.xlu0 %v7751_v52, %s9802_s2 }
 0x2fb   :  { %649 = vrot.lane.b32.xlu0 %v7758_v55, %s7475_s28 }
 0x35f   :  { %v415_v59 = vpop.permute.xlu1 %414 }
 0x363   :  { %v413_v60 = vpop.permute.xlu1 %412 }
 0x365   :  { %v417_v58 = vpop.permute.xlu0 %416 }
 0x366   :  { %6520 = vmatpush3.xpose.msk.msra.mxu1 %vm418_vm3, %v417_v58 }
 0x367   :  { %6521 = vmatprep.subr.mxu1 %v7471_v49 }
 0x369   :  { %v548_v16 = vpop.permute.xlu0 %547 }
 0x36a   :  { %6522 = vmatpush3.xpose.msk.msra.mxu1 %vm418_vm3, %v415_v59 }
 0x36b   :  { %6523 = vmatprep.subr.mxu1 %v7471_v49 }
 0x36d   :  { %v7816_v17 = vpop.permute.xlu0 %649 }
 0x36e   :  { %6524 = vmatpush3.xpose.msk.msra.mxu1 %vm418_vm3, %v413_v60 }
 0x36f   :  { %6534 = vmatprep.subr.mxu1 %v7471_v49 }
 0x371   :  { %6526 = vmatmul.mubr.msk.f32.vlgmr.msra.gmra.mxu1 %vm418_vm3, %v7758_v55 }
 0x372   :  { %6528 = vmatprep.mubr.msk.f32.mxu1 %vm7473_vm2, %v7471_v49 }
 0x375   :  { %6529 = vmatmul.mubr.msk.f32.gmra.mxu1 %vm418_vm3, %v7751_v52 }
 0x376   :  { %6531 = vmatprep.mubr.msk.f32.mxu1 %vm7473_vm2, %v7471_v49 }
 0x379   :  { %6532 = vmatmul.mubr.msk.f32.gmra.mxu1 %vm418_vm3, %v7765_v57 }
 0x37a   :  { %6540 = vmatprep.mubr.msk.f32.mxu1 %vm7473_vm2, %v7471_v49 }
 0x380   :  { %v7793_v63 = vpop.f32.mrf.mxu1 }
 0x381   :  { %v7855_v30 = vadd.f32 %v7793_v63, %v7748_v50 }
 0x382   :  { %v7795_v0 = vpop.f32.mrf.mxu1 }
 0x383   :  { %v7863_v31 = vadd.f32 %v7748_v50, %v7795_v0 }
 0x431   :  { %v497_v3 = vpop.f32.mrf.mxu1 }
 0x432   :  { %v498_v4 = vadd.f32 %v497_v3, %v7797_v2 }
 0x433   :  { %v6527_v5 = vpop.f32.mrf.mxu1 }
 0x434   :  { %v512_v6 = vsel %vm511_vm7, %v498_v4, -inf }
 0x435   :  { %513 = vmax.xlane.f32.xlu1 %v512_v6  ;;  %v502_v8 = vpop.f32.mrf.mxu1 }
 0x436   :  { %v503_v9 = vadd.f32 %v502_v8, %v7797_v2 }
 0x437   :  { %v6530_v10 = vpop.f32.mrf.mxu1 }
 0x438   :  { %v515_v11 = vsel %vm511_vm7, %v503_v9, -inf }
 0x439   :  { %516 = vmax.xlane.f32.xlu0 %v515_v11  ;;  %v507_v12 = vpop.f32.mrf.mxu1 }
 0x43a   :  { %v7804_v13 = vadd.f32 %v507_v12, %v7797_v2 }
 0x43b   :  { %v6533_v14 = vpop.f32.mrf.mxu1 }
 0x43c   :  { %v518_v15 = vsel %vm511_vm7, %v7804_v13, -inf }
 0x43d   :  { %519 = vmax.xlane.f32.xlu0 %v518_v15 }
 0x446   :  { %549 = vrot.lane.b32.xlu1 %v7765_v57, %s9802_s2 }
 0x44a   :  { %545 = vrot.lane.b32.xlu1 %v7758_v55, %s9802_s2 }
 0x44e   :  { %653 = vrot.lane.b32.xlu1 %v7765_v57, %s7475_s28 }
 0x452   :  { %651 = vrot.lane.b32.xlu1 %v7751_v52, %s7475_s28 }
 0x4be   :  { %v514_v18 = vpop.xlane.xlu1 %513 }
 0x4bf   :  { %v521_v19 = vsub.f32 %v498_v4, %v514_v18 }
 0x4c1   :  { %v524_v20 = vmul.f32 1.442695, %v521_v19 }
 0x4c2   :  { %v550_v21 = vpop.permute.xlu1 %549  ;;  %v517_v22 = vpop.xlane.xlu0 %516 }
 0x4c3   :  { %7207 = vpow2.f32 %v524_v20  ;;  %v522_v23 = vsub.f32 %v503_v9, %v517_v22  ;;  %6535 = vmatpush3.msra.mxu1 %v550_v21 }
 0x4c4   :  { %6536 = vmatprep.subr.mxu1 %v7471_v49 }
 0x4c5   :  { %v526_v24 = vmul.f32 1.442695, %v522_v23  ;;  %6537 = vmatpush3.msra.mxu1 %v548_v16 }
 0x4c6   :  { %v546_v25 = vpop.permute.xlu1 %545  ;;  %6538 = vmatprep.subr.mxu1 %v7471_v49  ;;  %v520_v34 = vpop.xlane.xlu0 %519 }
 0x4c7   :  { %7209 = vpow2.f32 %v526_v24  ;;  %6539 = vmatpush3.msra.mxu1 %v546_v25  ;;  %v523_v36 = vsub.f32 %v7804_v13, %v520_v34 }
 0x4c8   :  { %6549 = vmatprep.subr.mxu1 %v7471_v49 }
 0x4c9   :  { %v528_v37 = vmul.f32 1.442695, %v523_v36 }
 0x4ca   :  { %v654_v40 = vpop.permute.xlu1 %653 }
 0x4cb   :  { %7211 = vpow2.f32 %v528_v37 }
 0x4ce   :  { %v652_v41 = vpop.permute.xlu1 %651 }
 0x4d0   :  { %v7821_v26 = vpop.eup %7207 }
 0x4d1   :  { %v530_v27 = vsel %vm511_vm7, %v7821_v26, 0.0 }
 0x4d2   :  { %531 = vadd.xlane.f32.xlu0 %v530_v27 }
 0x4d4   :  { %v7825_v28 = vpop.eup %7209 }
 0x4d5   :  { %v533_v29 = vsel %vm511_vm7, %v7825_v28, 0.0 }
 0x4d6   :  { %534 = vadd.xlane.f32.xlu1 %v533_v29 }
 0x4d8   :  { %v7912_v38 = vpop.eup %7211 }
 0x4d9   :  { %v536_v39 = vsel %vm511_vm7, %v7912_v38, 0.0 }
 0x4e7   :  { %643 = vrot.lane.b32.xlu1 %v7758_v55, %s7477_s3 }
 0x4e8   :  { %888 = vrot.lane.b32.xlu0 %v7765_v57, %s7478_s29 }
 0x4eb   :  { %645 = vrot.lane.b32.xlu1 %v7751_v52, %s7477_s3 }
 0x4ec   :  { %886 = vrot.lane.b32.xlu0 %v7751_v52, %s7478_s29 }
 0x4ef   :  { %647 = vrot.lane.b32.xlu1 %v7765_v57, %s7477_s3 }
 0x4f0   :  { %884 = vrot.lane.b32.xlu0 %v7758_v55, %s7478_s29 }
 0x4f3   :  { %878 = vrot.lane.b32.xlu1 %v7758_v55, %s9806_s1 }
 0x4f4   :  { %1123 = vrot.lane.b32.xlu0 %v7765_v57, %s9808_s23 }
 0x4f7   :  { %880 = vrot.lane.b32.xlu1 %v7751_v52, %s9806_s1 }
 0x4f8   :  { %1121 = vrot.lane.b32.xlu0 %v7751_v52, %s9808_s23 }
 0x4fb   :  { %882 = vrot.lane.b32.xlu1 %v7765_v57, %s9806_s1 }
 0x4fc   :  { %1119 = vrot.lane.b32.xlu0 %v7758_v55, %s9808_s23 }
 0x4ff   :  { %1113 = vrot.lane.b32.xlu1 %v7758_v55, %s9804_s0 }
 0x500   :  { %1401 = vrot.lane.b32.xlu0 %v7855_v30, %s7472_s4 }
 0x503   :  { %1115 = vrot.lane.b32.xlu1 %v7751_v52, %s9804_s0 }
 0x504   :  { %1399 = vrot.lane.b32.xlu0 %v7863_v31, %s7472_s4 }
 0x507   :  { %1117 = vrot.lane.b32.xlu1 %v7765_v57, %s9804_s0 }
 0x508   :  { %1397 = vrot.lane.b32.xlu0 %v7871_v33, %s7472_s4 }
 0x50b   :  { %1636 = vrot.lane.b32.xlu1 %v7855_v30, %s7475_s28 }
 0x50c   :  { %1634 = vrot.lane.b32.xlu0 %v7863_v31, %s7475_s28 }
 0x50f   :  { %1632 = vrot.lane.b32.xlu1 %v7871_v33, %s7475_s28 }
 0x510   :  { %1626 = vrot.lane.b32.xlu0 %v7871_v33, %s7477_s3 }
 0x513   :  { %1871 = vrot.lane.b32.xlu1 %v7855_v30, %s7478_s29 }
 0x514   :  { %1628 = vrot.lane.b32.xlu0 %v7863_v31, %s7477_s3 }
 0x517   :  { %1869 = vrot.lane.b32.xlu1 %v7863_v31, %s7478_s29 }
 0x518   :  { %1630 = vrot.lane.b32.xlu0 %v7855_v30, %s7477_s3 }
 0x51b   :  { %1867 = vrot.lane.b32.xlu1 %v7871_v33, %s7478_s29 }
 0x51c   :  { %1861 = vrot.lane.b32.xlu0 %v7871_v33, %s9806_s1 }
 0x51f   :  { %2106 = vrot.lane.b32.xlu1 %v7855_v30, %s9808_s23 }
 0x520   :  { %1863 = vrot.lane.b32.xlu0 %v7863_v31, %s9806_s1 }
 0x523   :  { %2104 = vrot.lane.b32.xlu1 %v7863_v31, %s9808_s23 }
 0x524   :  { %1865 = vrot.lane.b32.xlu0 %v7855_v30, %s9806_s1  ;;  %s9812_s1 = smov 16  }
 0x527   :  { %2102 = vrot.lane.b32.xlu1 %v7871_v33, %s9808_s23 }
 0x528   :  { %2096 = vrot.lane.b32.xlu0 %v7871_v33, %s9804_s0 }
 0x52b   :  { %2098 = vrot.lane.b32.xlu1 %v7863_v31, %s9804_s0 }
 0x547   :  { %537 = vadd.xlane.f32.xlu0 %v536_v39 }
 0x55b   :  { %v532_v43 = vpop.xlane.xlu0 %531 }
 0x55c   :  { %7213 = vrcp.f32 %v532_v43 }
 0x55d   :  { %2100 = vrot.lane.b32.xlu0 %v7855_v30, %s9804_s0 }
 0x55f   :  { %v535_v45 = vpop.xlane.xlu1 %534  ;;  %v889_v46 = vpop.permute.xlu0 %888 }
 0x560   :  { %7215 = vrcp.f32 %v535_v45  ;;  %6580 = vmatpush3.xpose.msk.msra.mxu0 %vm418_vm3, %v889_v46 }
 0x561   :  { %6581 = vmatprep.subr.mxu0 %v7471_v49 }
 0x563   :  { %v7920_v47 = vpop.permute.xlu1 %643  ;;  %v887_v48 = vpop.permute.xlu0 %886 }
 0x564   :  { %6582 = vmatpush3.xpose.msk.msra.mxu0 %vm418_vm3, %v887_v48 }
 0x565   :  { %6583 = vmatprep.subr.mxu0 %v7471_v49 }
 0x567   :  { %v7924_v50 = vpop.permute.xlu1 %645  ;;  %v885_v51 = vpop.permute.xlu0 %884 }
 0x568   :  { %6584 = vmatpush3.xpose.msk.msra.mxu0 %vm418_vm3, %v885_v51 }
 0x569   :  { %v7214_v53 = vpop.eup %7213  ;;  %6609 = vmatprep.subr.mxu0 %v7471_v49 }
 0x56a   :  { %v542_v54 = vmul.f32 %v7214_v53, %v7821_v26 }
 0x56b   :  { %v7929_v56 = vpop.permute.xlu1 %647  ;;  %v1124_v58 = vpop.permute.xlu0 %1123 }
 0x56c   :  { %6541 = vmatmul.mubr.msk.f32.vlgmr.msra.gmra.mxu1 %vm511_vm7, %v542_v54 }
 0x56d   :  { %v7216_v59 = vpop.eup %7215  ;;  %6550 = vmatpush3.xpose.msk.msra.mxu1 %vm418_vm3, %v654_v40  ;;  %6543 = vmatprep.mubr.msk.f32.mxu1 %vm7473_vm2, %v7471_v49 }
 0x56e   :  { %6551 = vmatprep.subr.mxu1 %v7471_v49  ;;  %v543_v60 = vmul.f32 %v7216_v59, %v7825_v28 }
 0x56f   :  { %v879_v61 = vpop.permute.xlu1 %878  ;;  %v1122_v62 = vpop.permute.xlu0 %1121 }
 0x570   :  { %6544 = vmatmul.mubr.msk.f32.gmra.mxu1 %vm511_vm7, %v543_v60  ;;  %6586 = vmatmul.mubr.msk.f32.vlgmr.msra.gmra.mxu0 %vm418_vm3, %v879_v61 }
 0x571   :  { %6552 = vmatpush3.xpose.msk.msra.mxu1 %vm418_vm3, %v652_v41  ;;  %6610 = vmatpush3.xpose.msk.msra.mxu0 %vm418_vm3, %v1124_v58 }
 0x572   :  { %6553 = vmatprep.subr.mxu1 %v7471_v49  ;;  %6588 = vmatprep.mubr.msk.f32.mxu0 %vm7473_vm2, %v7471_v49 }
 0x573   :  { %v881_v63 = vpop.permute.xlu1 %880  ;;  %6611 = vmatprep.subr.mxu0 %v7471_v49  ;;  %v1120_v0 = vpop.permute.xlu0 %1119  ;;  %6546 = vmatprep.mubr.msk.f32.mxu1 %vm7473_vm2, %v7471_v49 }
 0x574   :  { %6589 = vmatmul.mubr.msk.f32.gmra.mxu0 %vm418_vm3, %v881_v63 }
 0x575   :  { %6554 = vmatpush3.xpose.msk.msra.mxu1 %vm418_vm3, %v7816_v17  ;;  %6612 = vmatpush3.xpose.msk.msra.mxu0 %vm418_vm3, %v1122_v62 }
 0x576   :  { %6591 = vmatprep.mubr.msk.f32.mxu0 %vm7473_vm2, %v7471_v49  ;;  %6613 = vmatprep.subr.mxu0 %v7471_v49 }
 0x577   :  { %v883_v1 = vpop.permute.xlu1 %882  ;;  %v1402_v3 = vpop.permute.xlu0 %1401  ;;  %6564 = vmatprep.subr.mxu1 %v7471_v49 }
 0x578   :  { %6592 = vmatmul.mubr.msk.f32.gmra.mxu0 %vm418_vm3, %v883_v1 }
 0x579   :  { %6614 = vmatpush3.xpose.msk.msra.mxu0 %vm418_vm3, %v1120_v0  ;;  %6615 = vmatprep.mubr.msk.f32.mxu0 %vm7473_vm2, %v7471_v49 }
 0x57a   :  { %6639 = vmatprep.subr.mxu0 %v7471_v49 }
 0x57b   :  { %v1114_v4 = vpop.permute.xlu1 %1113  ;;  %v1400_v5 = vpop.permute.xlu0 %1399 }
 0x57c   :  { %6616 = vmatmul.mubr.msk.f32.vlgmr.msra.gmra.mxu0 %vm418_vm3, %v1114_v4 }
 0x57d   :  { %6640 = vmatpush3.xpose.msk.msra.mxu0 %vm418_vm3, %v1402_v3  ;;  %6618 = vmatprep.mubr.msk.f32.mxu0 %vm7473_vm2, %v7471_v49 }
 0x57e   :  { %6641 = vmatprep.subr.mxu0 %v7471_v49 }
 0x57f   :  { %v1116_v6 = vpop.permute.xlu1 %1115  ;;  %v1398_v8 = vpop.permute.xlu0 %1397 }
 0x580   :  { %6619 = vmatmul.mubr.msk.f32.gmra.mxu0 %vm418_vm3, %v1116_v6 }
 0x581   :  { %6642 = vmatpush3.xpose.msk.msra.mxu0 %vm418_vm3, %v1400_v5  ;;  %6621 = vmatprep.mubr.msk.f32.mxu0 %vm7473_vm2, %v7471_v49 }
 0x582   :  { %6643 = vmatprep.subr.mxu0 %v7471_v49 }
 0x583   :  { %v1118_v9 = vpop.permute.xlu1 %1117  ;;  %v1635_v10 = vpop.permute.xlu0 %1634 }
 0x584   :  { %6622 = vmatmul.mubr.msk.f32.gmra.mxu0 %vm418_vm3, %v1118_v9 }
 0x585   :  { %6644 = vmatpush3.xpose.msk.msra.mxu0 %vm418_vm3, %v1398_v8  ;;  %6645 = vmatprep.mubr.msk.f32.mxu0 %vm7473_vm2, %v7471_v49 }
 0x586   :  { %6669 = vmatprep.subr.mxu0 %v7471_v49 }
 0x587   :  { %v1637_v11 = vpop.permute.xlu1 %1636  ;;  %v1627_v12 = vpop.permute.xlu0 %1626 }
 0x588   :  { %6646 = vmatmul.mubr.msk.f32.vlgmr.msra.gmra.mxu0 %vm418_vm3, %v7871_v33 }
 0x589   :  { %6670 = vmatpush3.xpose.msk.msra.mxu0 %vm418_vm3, %v1637_v11  ;;  %6648 = vmatprep.mubr.msk.f32.mxu0 %vm7473_vm2, %v7471_v49 }
 0x58a   :  { %6671 = vmatprep.subr.mxu0 %v7471_v49 }
 0x58b   :  { %v1633_v13 = vpop.permute.xlu1 %1632  ;;  %v1629_v14 = vpop.permute.xlu0 %1628 }
 0x58c   :  { %6649 = vmatmul.mubr.msk.f32.gmra.mxu0 %vm418_vm3, %v7863_v31 }
 0x58d   :  { %6672 = vmatpush3.xpose.msk.msra.mxu0 %vm418_vm3, %v1635_v10  ;;  %6651 = vmatprep.mubr.msk.f32.mxu0 %vm7473_vm2, %v7471_v49 }
 0x58e   :  { %6673 = vmatprep.subr.mxu0 %v7471_v49 }
 0x58f   :  { %v1872_v15 = vpop.permute.xlu1 %1871  ;;  %v1631_v16 = vpop.permute.xlu0 %1630 }
 0x590   :  { %6652 = vmatmul.mubr.msk.f32.gmra.mxu0 %vm418_vm3, %v7855_v30 }
 0x591   :  { %6674 = vmatpush3.xpose.msk.msra.mxu0 %vm418_vm3, %v1633_v13  ;;  %6675 = vmatprep.mubr.msk.f32.mxu0 %vm7473_vm2, %v7471_v49 }
 0x592   :  { %6699 = vmatprep.subr.mxu0 %v7471_v49 }
 0x593   :  { %v1870_v17 = vpop.permute.xlu1 %1869  ;;  %v1862_v19 = vpop.permute.xlu0 %1861 }
 0x594   :  { %6676 = vmatmul.mubr.msk.f32.vlgmr.msra.gmra.mxu0 %vm418_vm3, %v1627_v12 }
 0x595   :  { %6700 = vmatpush3.xpose.msk.msra.mxu0 %vm418_vm3, %v1872_v15  ;;  %6678 = vmatprep.mubr.msk.f32.mxu0 %vm7473_vm2, %v7471_v49 }
 0x596   :  { %6701 = vmatprep.subr.mxu0 %v7471_v49 }
 0x597   :  { %v1868_v18 = vpop.permute.xlu1 %1867  ;;  %v1864_v21 = vpop.permute.xlu0 %1863 }
 0x598   :  { %6679 = vmatmul.mubr.msk.f32.gmra.mxu0 %vm418_vm3, %v1629_v14 }
 0x599   :  { %6702 = vmatpush3.xpose.msk.msra.mxu0 %vm418_vm3, %v1870_v17  ;;  %6681 = vmatprep.mubr.msk.f32.mxu0 %vm7473_vm2, %v7471_v49 }
 0x59a   :  { %6703 = vmatprep.subr.mxu0 %v7471_v49 }
 0x59b   :  { %v2107_v20 = vpop.permute.xlu1 %2106  ;;  %v1866_v23 = vpop.permute.xlu0 %1865 }
 0x59c   :  { %6682 = vmatmul.mubr.msk.f32.gmra.mxu0 %vm418_vm3, %v1631_v16 }
 0x59d   :  { %6704 = vmatpush3.xpose.msk.msra.mxu0 %vm418_vm3, %v1868_v18  ;;  %6705 = vmatprep.mubr.msk.f32.mxu0 %vm7473_vm2, %v7471_v49 }
 0x59e   :  { %6729 = vmatprep.subr.mxu0 %v7471_v49 }
 0x59f   :  { %v2105_v22 = vpop.permute.xlu1 %2104  ;;  %v2097_v25 = vpop.permute.xlu0 %2096 }
 0x5a0   :  { %6706 = vmatmul.mubr.msk.f32.vlgmr.msra.gmra.mxu0 %vm418_vm3, %v1862_v19 }
 0x5a1   :  { %6730 = vmatpush3.xpose.msk.msra.mxu0 %vm418_vm3, %v2107_v20  ;;  %6708 = vmatprep.mubr.msk.f32.mxu0 %vm7473_vm2, %v7471_v49 }
 0x5a2   :  { %6731 = vmatprep.subr.mxu0 %v7471_v49 }
 0x5a3   :  { %v2103_v24 = vpop.permute.xlu1 %2102 }
 0x5a4   :  { %6709 = vmatmul.mubr.msk.f32.gmra.mxu0 %vm418_vm3, %v1864_v21 }
 0x5a5   :  { %6732 = vmatpush3.xpose.msk.msra.mxu0 %vm418_vm3, %v2105_v22  ;;  %6711 = vmatprep.mubr.msk.f32.mxu0 %vm7473_vm2, %v7471_v49 }
 0x5a6   :  { %6733 = vmatprep.subr.mxu0 %v7471_v49 }
 0x5a7   :  { %v2099_v26 = vpop.permute.xlu1 %2098 }
 0x5a8   :  { %6712 = vmatmul.mubr.msk.f32.gmra.mxu0 %vm418_vm3, %v1866_v23 }
 0x5a9   :  { %6734 = vmatpush3.xpose.msk.msra.mxu0 %vm418_vm3, %v2103_v24  ;;  %6735 = vmatprep.mubr.msk.f32.mxu0 %vm7473_vm2, %v7471_v49 }
 0x5ac   :  { %6736 = vmatmul.mubr.msk.f32.vlgmr.msra.gmra.mxu0 %vm418_vm3, %v2097_v25 }
 0x5ad   :  { %6738 = vmatprep.mubr.msk.f32.mxu0 %vm7473_vm2, %v7471_v49 }
 0x5b0   :  { %6739 = vmatmul.mubr.msk.f32.gmra.mxu0 %vm418_vm3, %v2099_v26 }
 0x5b1   :  { %6741 = vmatprep.mubr.msk.f32.mxu0 %vm7473_vm2, %v7471_v49 }
 0x5d0   :  { %v538_v27 = vpop.xlane.xlu0 %537 }
 0x5d1   :  { %7217 = vrcp.f32 %v538_v27 }
 0x5d4   :  { %v2101_v28 = vpop.permute.xlu0 %2100 }
 0x5d5   :  { %6742 = vmatmul.mubr.msk.f32.gmra.mxu0 %vm418_vm3, %v2101_v28 }
 0x5de   :  { %v7218_v29 = vpop.eup %7217 }
 0x5df   :  { %v544_v34 = vmul.f32 %v7218_v29, %v7912_v38 }
 0x5e1   :  { %6547 = vmatmul.mubr.msk.f32.gmra.mxu1 %vm511_vm7, %v544_v34 }
 0x5e2   :  { %6555 = vmatprep.mubr.msk.f32.mxu1 %vm7473_vm2, %v7471_v49 }
 0x5e5   :  { %6556 = vmatmul.mubr.msk.f32.vlgmr.msra.gmra.mxu1 %vm418_vm3, %v7920_v47 }
 0x5e6   :  { %6558 = vmatprep.mubr.msk.f32.mxu1 %vm7473_vm2, %v7471_v49 }
 0x5e9   :  { %6559 = vmatmul.mubr.msk.f32.gmra.mxu1 %vm418_vm3, %v7924_v50 }
 0x5ea   :  { %6561 = vmatprep.mubr.msk.f32.mxu1 %vm7473_vm2, %v7471_v49 }
 0x5ed   :  { %6562 = vmatmul.mubr.msk.f32.gmra.mxu1 %vm418_vm3, %v7929_v56 }
 0x5ee   :  { %6570 = vmatprep.mubr.msk.f32.mxu1 %vm7473_vm2, %v7471_v49 }
 0x62c   :  { %v8045_v36 = vpop.f32.mrf.mxu1 }
 0x62e   :  { %v6542_v37 = vpop.f32.mrf.mxu1 }
 0x630   :  { %v8047_v38 = vpop.f32.mrf.mxu1  ;;  %v968_v39 = vpop.f32.mrf.mxu0 }
 0x631   :  { %v8050_v40 = vadd.f32 %v968_v39, %v7797_v2 }
 0x632   :  { %v6545_v41 = vpop.f32.mrf.mxu1  ;;  %v6587_v43 = vpop.f32.mrf.mxu0 }
 0x633   :  { %v982_v45 = vsel %vm511_vm7, %v8050_v40, -inf }
 0x634   :  { %983 = vmax.xlane.f32.xlu0 %v982_v45  ;;  %v973_v46 = vpop.f32.mrf.mxu0 }
 0x635   :  { %v8055_v47 = vadd.f32 %v973_v46, %v7797_v2 }
 0x636   :  { %v6590_v48 = vpop.f32.mrf.mxu0 }
 0x637   :  { %v985_v50 = vsel %vm511_vm7, %v8055_v47, -inf }
 0x638   :  { %986 = vmax.xlane.f32.xlu1 %v985_v50  ;;  %v978_v51 = vpop.f32.mrf.mxu0 }
 0x639   :  { %v8060_v53 = vadd.f32 %v978_v51, %v7797_v2 }
 0x63a   :  { %v6593_v54 = vpop.f32.mrf.mxu0 }
 0x63b   :  { %v988_v56 = vsel %vm511_vm7, %v8060_v53, -inf }
 0x63c   :  { %989 = vmax.xlane.f32.xlu0 %v988_v56  ;;  %v1203_v58 = vpop.f32.mrf.mxu0 }
 0x63d   :  { %v8065_v59 = vadd.f32 %v1203_v58, %v7797_v2 }
 0x63e   :  { %v6617_v60 = vpop.f32.mrf.mxu0 }
 0x63f   :  { %v1217_v61 = vsel %vm511_vm7, %v8065_v59, -inf }
 0x640   :  { %1218 = vmax.xlane.f32.xlu1 %v1217_v61  ;;  %v1208_v62 = vpop.f32.mrf.mxu0 }
 0x641   :  { %v8070_v63 = vadd.f32 %v1208_v62, %v7797_v2 }
 0x642   :  { %v6620_v0 = vpop.f32.mrf.mxu0 }
 0x643   :  { %v1220_v1 = vsel %vm511_vm7, %v8070_v63, -inf }
 0x644   :  { %1221 = vmax.xlane.f32.xlu0 %v1220_v1  ;;  %v1213_v3 = vpop.f32.mrf.mxu0 }
 0x645   :  { %v8075_v4 = vadd.f32 %v1213_v3, %v7797_v2 }
 0x646   :  { %v6623_v5 = vpop.f32.mrf.mxu0 }
 0x647   :  { %v1223_v6 = vsel %vm511_vm7, %v8075_v4, -inf }
 0x648   :  { %1224 = vmax.xlane.f32.xlu1 %v1223_v6  ;;  %v1481_v8 = vpop.f32.mrf.mxu0 }
 0x649   :  { %v8080_v9 = vadd.f32 %v1481_v8, %v7797_v2 }
 0x64a   :  { %v6647_v10 = vpop.f32.mrf.mxu0 }
 0x64b   :  { %v1495_v11 = vsel %vm511_vm7, %v8080_v9, -inf }
 0x64c   :  { %1496 = vmax.xlane.f32.xlu0 %v1495_v11  ;;  %v1486_v12 = vpop.f32.mrf.mxu0 }
 0x64d   :  { %v8085_v13 = vadd.f32 %v1486_v12, %v7797_v2 }
 0x64e   :  { %v6650_v14 = vpop.f32.mrf.mxu0 }
 0x64f   :  { %v1498_v15 = vsel %vm511_vm7, %v8085_v13, -inf }
 0x650   :  { %1499 = vmax.xlane.f32.xlu1 %v1498_v15  ;;  %v1491_v16 = vpop.f32.mrf.mxu0 }
 0x651   :  { %v8090_v17 = vadd.f32 %v1491_v16, %v7797_v2 }
 0x652   :  { %v6653_v18 = vpop.f32.mrf.mxu0 }
 0x653   :  { %v1501_v19 = vsel %vm511_vm7, %v8090_v17, -inf }
 0x654   :  { %1502 = vmax.xlane.f32.xlu0 %v1501_v19  ;;  %v1716_v20 = vpop.f32.mrf.mxu0 }
 0x655   :  { %v8095_v21 = vadd.f32 %v1716_v20, %v7797_v2 }
 0x656   :  { %v6677_v22 = vpop.f32.mrf.mxu0 }
 0x657   :  { %v1730_v23 = vsel %vm511_vm7, %v8095_v21, -inf }
 0x658   :  { %1731 = vmax.xlane.f32.xlu1 %v1730_v23  ;;  %v1721_v24 = vpop.f32.mrf.mxu0 }
 0x659   :  { %v8100_v25 = vadd.f32 %v1721_v24, %v7797_v2 }
 0x65a   :  { %v6680_v26 = vpop.f32.mrf.mxu0 }
 0x65b   :  { %v1733_v27 = vsel %vm511_vm7, %v8100_v25, -inf }
 0x65c   :  { %1734 = vmax.xlane.f32.xlu0 %v1733_v27  ;;  %v1726_v28 = vpop.f32.mrf.mxu0 }
 0x65d   :  { %v8105_v29 = vadd.f32 %v1726_v28, %v7797_v2 }
 0x65e   :  { %v6683_v34 = vpop.f32.mrf.mxu0 }
 0x65f   :  { %v1736_v37 = vsel %vm511_vm7, %v8105_v29, -inf }
 0x660   :  { %1737 = vmax.xlane.f32.xlu1 %v1736_v37  ;;  %v1951_v39 = vpop.f32.mrf.mxu0 }
 0x661   :  { %v8110_v41 = vadd.f32 %v1951_v39, %v7797_v2 }
 0x662   :  { %v6707_v43 = vpop.f32.mrf.mxu0 }
 0x663   :  { %v1965_v45 = vsel %vm511_vm7, %v8110_v41, -inf }
 0x664   :  { %1966 = vmax.xlane.f32.xlu0 %v1965_v45  ;;  %v1956_v46 = vpop.f32.mrf.mxu0 }
 0x665   :  { %v8115_v48 = vadd.f32 %v1956_v46, %v7797_v2 }
 0x666   :  { %v6710_v50 = vpop.f32.mrf.mxu0 }
 0x667   :  { %v1968_v51 = vsel %vm511_vm7, %v8115_v48, -inf }
 0x668   :  { %1969 = vmax.xlane.f32.xlu1 %v1968_v51  ;;  %v1961_v54 = vpop.f32.mrf.mxu0 }
 0x669   :  { %v8120_v56 = vadd.f32 %v1961_v54, %v7797_v2 }
 0x66a   :  { %v6713_v58 = vpop.f32.mrf.mxu0 }
 0x66b   :  { %v1971_v60 = vsel %vm511_vm7, %v8120_v56, -inf }
 0x66c   :  { %1972 = vmax.xlane.f32.xlu0 %v1971_v60  ;;  %v2186_v61 = vpop.f32.mrf.mxu0 }
 0x66d   :  { %v8125_v62 = vadd.f32 %v2186_v61, %v7797_v2 }
 0x66e   :  { %v6737_v0 = vpop.f32.mrf.mxu0 }
 0x66f   :  { %v2200_v1 = vsel %vm511_vm7, %v8125_v62, -inf }
 0x670   :  { %2201 = vmax.xlane.f32.xlu1 %v2200_v1  ;;  %v2191_v3 = vpop.f32.mrf.mxu0 }
 0x672   :  { %v6740_v5 = vpop.f32.mrf.mxu0 }
 0x695   :  { %v2196_v6 = vpop.f32.mrf.mxu0 }
 0x697   :  { %v6743_v8 = vpop.f32.mrf.mxu0 }
 0x6a1   :  { %v8129_v10 = vpop.f32.mrf.mxu1 }
 0x6a3   :  { %v6548_v11 = vpop.f32.mrf.mxu1 }
 0x6a5   :  { %v8131_v12 = vpop.f32.mrf.mxu1 }
 0x6a7   :  { %v6557_v14 = vpop.f32.mrf.mxu1 }
 0x6a9   :  { %v8133_v15 = vpop.f32.mrf.mxu1 }
 0x6ab   :  { %v6560_v16 = vpop.f32.mrf.mxu1 }
 0x6ad   :  { %v8135_v18 = vpop.f32.mrf.mxu1 }
 0x6af   :  { %v6563_v19 = vpop.f32.mrf.mxu1 }
 0x6bd   :  { %v984_v20 = vpop.xlane.xlu0 %983 }
 0x6be   :  { %v991_v22 = vsub.f32 %v8050_v40, %v984_v20  ;;  %v8154_v40 = vadd.f32 %v2191_v3, %v7797_v2 }
 0x6c0   :  { %v994_v23 = vmul.f32 1.442695, %v991_v22  ;;  %v2203_v45 = vsel %vm511_vm7, %v8154_v40, -inf }
 0x6c1   :  { %v987_v24 = vpop.xlane.xlu1 %986 }
 0x6c2   :  { %7219 = vpow2.f32 %v994_v23  ;;  %v992_v26 = vsub.f32 %v8055_v47, %v987_v24  ;;  %v8157_v47 = vadd.f32 %v2196_v6, %v7797_v2 }
 0x6c4   :  { %v996_v27 = vmul.f32 1.442695, %v992_v26  ;;  %v2206_v43 = vsel %vm511_vm7, %v8157_v47, -inf }
 0x6c5   :  { %v990_v46 = vpop.xlane.xlu0 %989 }
 0x6c6   :  { %7221 = vpow2.f32 %v996_v27  ;;  %v993_v60 = vsub.f32 %v8060_v53, %v990_v46  ;;  %v8201_v46 = vadd.f32 %v8131_v12, %v7797_v2 }
 0x6c8   :  { %v998_v3 = vmul.f32 1.442695, %v993_v60 }
 0x6c9   :  { %v1219_v50 = vpop.xlane.xlu1 %1218 }
 0x6ca   :  { %v1226_v5 = vsub.f32 %v8065_v59, %v1219_v50 }
 0x6cc   :  { %v1229_v14 = vmul.f32 1.442695, %v1226_v5 }
 0x6cd   :  { %v1222_v51 = vpop.xlane.xlu0 %1221 }
 0x6ce   :  { %v1227_v54 = vsub.f32 %v8070_v63, %v1222_v51 }
 0x6cf   :  { %v8139_v28 = vpop.eup %7219 }
 0x6d0   :  { %v1000_v34 = vsel %vm511_vm7, %v8139_v28, 0.0  ;;  %v1231_v61 = vmul.f32 1.442695, %v1227_v54  ;;  %v747_v54 = vsel %vm511_vm7, %v8201_v46, -inf }
 0x6d1   :  { %1001 = vadd.xlane.f32.xlu1 %v1000_v34  ;;  %v1225_v58 = vpop.xlane.xlu1 %1224 }
 0x6d2   :  { %v1228_v0 = vsub.f32 %v8075_v4, %v1225_v58  ;;  %7223 = vpow2.f32 %v1231_v61 }
 0x6d3   :  { %v8143_v37 = vpop.eup %7221  ;;  %7225 = vpow2.f32 %v998_v3 }
 0x6d4   :  { %v1003_v39 = vsel %vm511_vm7, %v8143_v37, 0.0  ;;  %v1233_v6 = vmul.f32 1.442695, %v1228_v0 }
 0x6d5   :  { %1004 = vadd.xlane.f32.xlu0 %v1003_v39  ;;  %v1497_v11 = vpop.xlane.xlu0 %1496 }
 0x6d6   :  { %7227 = vpow2.f32 %v1233_v6  ;;  %v1504_v63 = vsub.f32 %v8080_v9, %v1497_v11 }
 0x6d7   :  { %7229 = vpow2.f32 %v1229_v14 }
 0x6d8   :  { %v1507_v53 = vmul.f32 1.442695, %v1504_v63 }
 0x6d9   :  { %v1500_v1 = vpop.xlane.xlu1 %1499 }
 0x6da   :  { %v1505_v8 = vsub.f32 %v8085_v13, %v1500_v1 }
 0x6dc   :  { %v1509_v16 = vmul.f32 1.442695, %v1505_v8 }
 0x6dd   :  { %v1503_v19 = vpop.xlane.xlu0 %1502 }
 0x6de   :  { %7231 = vpow2.f32 %v1509_v16  ;;  %v1506_v4 = vsub.f32 %v8090_v17, %v1503_v19 }
 0x6df   :  { %7233 = vpow2.f32 %v1507_v53  ;;  %v8176_v20 = vpop.eup %7223 }
 0x6e0   :  { %v8178_v22 = vpop.eup %7225  ;;  %v1511_v13 = vmul.f32 1.442695, %v1506_v4  ;;  %v1238_v24 = vsel %vm511_vm7, %v8176_v20, 0.0 }
 0x6e1   :  { %v1732_v59 = vpop.xlane.xlu1 %1731  ;;  %v1006_v17 = vsel %vm511_vm7, %v8178_v22, 0.0 }
 0x6e2   :  { %782 = vrot.lane.b32.xlu1 %v7751_v52, %s9800_s5  ;;  %v1739_v23 = vsub.f32 %v8095_v21, %v1732_v59  ;;  %7235 = vpow2.f32 %v1511_v13  ;;  %v744_v59 = vadd.f32 %v8135_v18, %v7797_v2 }
 0x6e3   :  { %v8183_v9 = vpop.eup %7227 }
 0x6e4   :  { %v8185_v26 = vpop.eup %7229  ;;  %v1742_v27 = vmul.f32 1.442695, %v1739_v23  ;;  %v1241_v34 = vsel %vm511_vm7, %v8183_v9, 0.0 }
 0x6e5   :  { %v1235_v21 = vsel %vm511_vm7, %v8185_v26, 0.0  ;;  %v1735_v60 = vpop.xlane.xlu0 %1734 }
 0x6e6   :  { %780 = vrot.lane.b32.xlu1 %v7758_v55, %s9800_s5  ;;  %7237 = vpow2.f32 %v1742_v27  ;;  %v1740_v18 = vsub.f32 %v8100_v25, %v1735_v60 }
 0x6e8   :  { %v1744_v27 = vmul.f32 1.442695, %v1740_v18 }
 0x6e9   :  { %v1738_v51 = vpop.xlane.xlu1 %1737 }
 0x6ea   :  { %v1741_v53 = vsub.f32 %v8105_v29, %v1738_v51 }
 0x6eb   :  { %784 = vrot.lane.b32.xlu0 %v7765_v57, %s9800_s5  ;;  %v8191_v39 = vpop.eup %7231 }
 0x6ec   :  { %v1746_v19 = vmul.f32 1.442695, %v1741_v53 }
 0x6ed   :  { %v1967_v12 = vpop.xlane.xlu0 %1966 }
 0x6ee   :  { %v1974_v4 = vsub.f32 %v8110_v41, %v1967_v12  ;;  %7239 = vpow2.f32 %v1746_v19 }
 0x6f0   :  { %v1977_v13 = vmul.f32 1.442695, %v1974_v4 }
 0x6f1   :  { %v8209_v61 = vpop.xlane.xlu1 %1969 }
 0x6f2   :  { %7241 = vpow2.f32 %v1977_v13 }
 0x6f3   :  { %7243 = vpow2.f32 %v1744_v27 }
 0x6f5   :  { %v8219_v6 = vpop.xlane.xlu0 %1972 }
 0x6f9   :  { %v8215_v3 = vpop.xlane.xlu1 %2201 }
 0x70a   :  { %2207 = vmax.xlane.f32.xlu0 %v2206_v43  ;;  %2204 = vmax.xlane.f32.xlu1 %v2203_v45  ;;  %v1516_v43 = vsel %vm511_vm7, %v8191_v39, 0.0  ;;  %v8197_v45 = vpop.eup %7233 }
 0x70b   :  { %v1513_v50 = vsel %vm511_vm7, %v8197_v45, 0.0  ;;  %v8207_v58 = vpop.eup %7235 }
 0x70c   :  { %v1519_v0 = vsel %vm511_vm7, %v8207_v58, 0.0  ;;  %v8213_v1 = vpop.eup %7237 }
 0x70d   :  { %v1748_v5 = vsel %vm511_vm7, %v8213_v1, 0.0 }
 0x71b   :  { %1017 = vrot.lane.b32.xlu1 %v7751_v52, %s9798_s24 }
 0x71f   :  { %1015 = vrot.lane.b32.xlu1 %v7758_v55, %s9798_s24 }
 0x720   :  { %1019 = vrot.lane.b32.xlu0 %v7765_v57, %s9798_s24 }
 0x73f   :  { %1239 = vadd.xlane.f32.xlu0 %v1238_v24  ;;  %v8240_v24 = vpop.eup %7239 }
 0x740   :  { %v1754_v29 = vsel %vm511_vm7, %v8240_v24, 0.0 }
 0x743   :  { %1007 = vadd.xlane.f32.xlu1 %v1006_v17  ;;  %1242 = vadd.xlane.f32.xlu0 %v1241_v34 }
 0x747   :  { %1236 = vadd.xlane.f32.xlu1 %v1235_v21  ;;  %1517 = vadd.xlane.f32.xlu0 %v1516_v43 }
 0x74b   :  { %1514 = vadd.xlane.f32.xlu1 %v1513_v50 }
 0x74f   :  { %748 = vmax.xlane.f32.xlu1 %v747_v54 }
 0x753   :  { %1520 = vadd.xlane.f32.xlu1 %v1519_v0 }
 0x757   :  { %1749 = vadd.xlane.f32.xlu1 %v1748_v5 }
 0x75a   :  { %v8221_v8 = vpop.xlane.xlu1 %1001 }
 0x75d   :  { %1254 = vrot.lane.b32.xlu0 %v7765_v57, %s9796_s6  ;;  %v739_v57 = vadd.f32 %v8133_v15, %v7797_v2  ;;  %v8244_v15 = vpop.eup %7241 }
 0x75e   :  { %v8225_v11 = vpop.xlane.xlu0 %1004  ;;  %v783_v14 = vpop.permute.xlu1 %782  ;;  %v1983_v41 = vsel %vm511_vm7, %v8244_v15, 0.0 }
 0x75f   :  { %v750_v23 = vsel %vm511_vm7, %v739_v57, -inf  ;;  %v8251_v17 = vpop.eup %7243 }
 0x760   :  { %v1751_v34 = vsel %vm511_vm7, %v8251_v17, 0.0 }
 0x762   :  { %v785_v63 = vpop.permute.xlu0 %784  ;;  %v781_v16 = vpop.permute.xlu1 %780 }
 0x763   :  { %6565 = vmatpush3.msra.mxu1 %v785_v63 }
 0x764   :  { %6566 = vmatprep.subr.mxu1 %v7471_v49 }
 0x765   :  { %6567 = vmatpush3.msra.mxu1 %v783_v14 }
 0x766   :  { %6568 = vmatprep.subr.mxu1 %v7471_v49 }
 0x767   :  { %6569 = vmatpush3.msra.mxu1 %v781_v16 }
 0x768   :  { %1252 = vrot.lane.b32.xlu1 %v7751_v52, %s9796_s6  ;;  %6594 = vmatprep.subr.mxu1 %v7471_v49  ;;  %v753_v52 = vsel %vm511_vm7, %v744_v59, -inf }
 0x77c   :  { %751 = vmax.xlane.f32.xlu0 %v750_v23 }
 0x780   :  { %754 = vmax.xlane.f32.xlu0 %v753_v52 }
 0x78c   :  { %1755 = vadd.xlane.f32.xlu1 %v1754_v29 }
 0x790   :  { %1984 = vadd.xlane.f32.xlu1 %v1983_v41 }
 0x793   :  { %v8255_v21 = vpop.xlane.xlu1 %2204  ;;  %v2208_v12 = vpop.xlane.xlu0 %2207 }
 0x796   :  { %1250 = vrot.lane.b32.xlu0 %v7758_v55, %s9796_s6 }
 0x797   :  { %v8257_v43 = vpop.permute.xlu1 %1017  ;;  %v8270_v14 = vpop.permute.xlu0 %1019 }
 0x79b   :  { %v8259_v50 = vpop.permute.xlu1 %1015 }
 0x7b5   :  { %1752 = vadd.xlane.f32.xlu0 %v1751_v34 }
 0x7c8   :  { %v8273_v16 = vpop.xlane.xlu0 %1239 }
 0x7cb   :  { %1532 = vrot.lane.b32.xlu0 %v7855_v30, %s9802_s2 }
 0x7cc   :  { %v8263_v55 = vpop.xlane.xlu1 %1007  ;;  %v8275_v53 = vpop.xlane.xlu0 %1242 }
 0x7d0   :  { %v8265_v25 = vpop.xlane.xlu1 %1236  ;;  %v8277_v19 = vpop.xlane.xlu0 %1517 }
 0x7d4   :  { %v8267_v51 = vpop.xlane.xlu1 %1514  ;;  %v8279_v4 = vpop.permute.xlu0 %1254 }
 0x7d8   :  { %v749_v54 = vpop.xlane.xlu1 %748 }
 0x7d9   :  { %v756_v60 = vsub.f32 %v8201_v46, %v749_v54 }
 0x7db   :  { %v759_v0 = vmul.f32 1.442695, %v756_v60 }
 0x7dd   :  { %7245 = vpow2.f32 %v759_v0  ;;  %v2209_v0 = vsub.f32 %v8125_v62, %v8215_v3 }
 0x7ea   :  { %v7246_v5 = vpop.eup %7245 }
 0x7eb   :  { %v765_v63 = vsel %vm511_vm7, %v7246_v5, 0.0 }
 0x7ec   :  { %766 = vadd.xlane.f32.xlu0 %v765_v63 }
 0x805   :  { %v752_v13 = vpop.xlane.xlu0 %751 }
 0x806   :  { %v757_v23 = vsub.f32 %v739_v57, %v752_v13  ;;  %v1976_v57 = vsub.f32 %v8120_v56, %v8219_v6  ;;  %v2212_v13 = vmul.f32 1.442695, %v2209_v0 }
 0x808   :  { %v761_v46 = vmul.f32 1.442695, %v757_v23  ;;  %v1981_v60 = vmul.f32 1.442695, %v1976_v57 }
 0x809   :  { %v755_v52 = vpop.xlane.xlu0 %754 }
 0x80a   :  { %7247 = vpow2.f32 %v761_v46  ;;  %v758_v29 = vsub.f32 %v744_v59, %v755_v52  ;;  %v1975_v59 = vsub.f32 %v8115_v48, %v8209_v61 }
 0x80c   :  { %v763_v41 = vmul.f32 1.442695, %v758_v29  ;;  %v1979_v63 = vmul.f32 1.442695, %v1975_v59 }
 0x80d   :  { %v8313_v61 = vpop.permute.xlu0 %1250 }
 0x80e   :  { %7249 = vpow2.f32 %v763_v41  ;;  %v2211_v41 = vsub.f32 %v8157_v47, %v2208_v12 }
 0x80f   :  { %7251 = vpow2.f32 %v1981_v60 }
 0x810   :  { %7253 = vpow2.f32 %v1979_v63 }
 0x811   :  { %7255 = vpow2.f32 %v2212_v13 }
 0x817   :  { %v8281_v18 = vpop.eup %7247 }
 0x818   :  { %v768_v27 = vsel %vm511_vm7, %v8281_v18, 0.0 }
 0x819   :  { %769 = vadd.xlane.f32.xlu1 %v768_v27  ;;  %v2210_v27 = vsub.f32 %v8154_v40, %v8255_v21 }
 0x81b   :  { %v8285_v34 = vpop.eup %7249  ;;  %v2214_v57 = vmul.f32 1.442695, %v2210_v27 }
 0x81c   :  { %v771_v54 = vsel %vm511_vm7, %v8285_v34, 0.0  ;;  %v8299_v23 = vpop.eup %7251 }
 0x81d   :  { %772 = vadd.xlane.f32.xlu0 %v771_v54  ;;  %v8301_v46 = vpop.eup %7253  ;;  %v1989_v52 = vsel %vm511_vm7, %v8299_v23, 0.0  ;;  %v2216_v54 = vmul.f32 1.442695, %v2211_v41 }
 0x81e   :  { %v8305_v56 = vpop.eup %7255  ;;  %v1986_v62 = vsel %vm511_vm7, %v8301_v46, 0.0 }
 0x81f   :  { %v2218_v48 = vsel %vm511_vm7, %v8305_v56, 0.0 }
 0x82a   :  { %1530 = vrot.lane.b32.xlu1 %v7863_v31, %s9802_s2 }
 0x833   :  { %1528 = vrot.lane.b32.xlu0 %v7871_v33, %s9802_s2  ;;  %s9810_s2 = smov 24  }
 0x83e   :  { %v8319_v3 = vpop.xlane.xlu0 %1752 }
 0x842   :  { %v8329_v6 = vpop.permute.xlu0 %1532 }
 0x84e   :  { %1990 = vadd.xlane.f32.xlu1 %v1989_v52 }
 0x852   :  { %2219 = vadd.xlane.f32.xlu1 %v2218_v48  ;;  %1987 = vadd.xlane.f32.xlu0 %v1986_v62 }
 0x863   :  { %1765 = vrot.lane.b32.xlu1 %v7863_v31, %s9800_s5 }
 0x867   :  { %2000 = vrot.lane.b32.xlu1 %v7863_v31, %s9798_s24 }
 0x868   :  { %1767 = vrot.lane.b32.xlu0 %v7855_v30, %s9800_s5 }
 0x86b   :  { %2237 = vrot.lane.b32.xlu1 %v7855_v30, %s9796_s6 }
 0x86c   :  { %1763 = vrot.lane.b32.xlu0 %v7871_v33, %s9800_s5  ;;  %s9835_s5 = smov 16  }
 0x86f   :  { %2233 = vrot.lane.b32.xlu1 %v7871_v33, %s9796_s6 }
 0x870   :  { %2002 = vrot.lane.b32.xlu0 %v7855_v30, %s9798_s24 }
 0x874   :  { %1998 = vrot.lane.b32.xlu0 %v7871_v33, %s9798_s24  ;;  %v1521_v33 = vpop.xlane.xlu1 %1520  ;;  %s9829_s24 = smov 112  }
 0x875   :  { %v767_v29 = vpop.xlane.xlu0 %766 }
 0x876   :  { %7257 = vrcp.f32 %v767_v29 }
 0x877   :  { %7259 = vpow2.f32 %v2216_v54 }
 0x878   :  { %2235 = vrot.lane.b32.xlu0 %v7863_v31, %s9796_s6  ;;  %7261 = vpow2.f32 %v2214_v57  ;;  %v8347_v31 = vpop.xlane.xlu1 %1749 }
 0x87c   :  { %v1253_v12 = vpop.permute.xlu1 %1252 }
 0x883   :  { %v7258_v59 = vpop.eup %7257 }
 0x884   :  { %v777_v30 = vmul.f32 %v7258_v59, %v7246_v5  ;;  %v8349_v40 = vpop.eup %7259  ;;  %v8357_v5 = vpop.xlane.xlu1 %1755 }
 0x885   :  { %v2224_v47 = vsel %vm511_vm7, %v8349_v40, 0.0  ;;  %v8353_v21 = vpop.eup %7261 }
 0x886   :  { %6571 = vmatmul.mubr.msk.f32.vlgmr.msra.gmra.mxu1 %vm511_vm7, %v777_v30 }
 0x887   :  { %6595 = vmatpush3.msra.mxu1 %v8270_v14  ;;  %6573 = vmatprep.mubr.msk.f32.mxu1 %vm7473_vm2, %v7471_v49 }
 0x888   :  { %6596 = vmatprep.subr.mxu1 %v7471_v49 }
 0x889   :  { %6597 = vmatpush3.msra.mxu1 %v8257_v43  ;;  %v2221_v43 = vsel %vm511_vm7, %v8353_v21, 0.0 }
 0x88a   :  { %6598 = vmatprep.subr.mxu1 %v7471_v49 }
 0x88b   :  { %6599 = vmatpush3.msra.mxu1 %v8259_v50  ;;  %v8359_v50 = vpop.xlane.xlu1 %1984 }
 0x88c   :  { %6624 = vmatprep.subr.mxu1 %v7471_v49 }
 0x893   :  { %2225 = vadd.xlane.f32.xlu1 %v2224_v47 }
 0x897   :  { %2222 = vadd.xlane.f32.xlu0 %v2221_v43 }
 0x8a2   :  { %v770_v14 = vpop.xlane.xlu1 %769 }
 0x8a3   :  { %7263 = vrcp.f32 %v770_v14 }
 0x8a6   :  { %v773_v60 = vpop.xlane.xlu0 %772 }
 0x8a7   :  { %7265 = vrcp.f32 %v773_v60 }
 0x8a8   :  { %7267 = vrcp.f32 %v8221_v8 }
 0x8a9   :  { %7269 = vrcp.f32 %v8225_v11 }
 0x8aa   :  { %7271 = vrcp.f32 %v8263_v55 }
 0x8ab   :  { %7273 = vrcp.f32 %v8265_v25 }
 0x8ac   :  { %7275 = vrcp.f32 %v8273_v16 }
 0x8ad   :  { %7277 = vrcp.f32 %v8275_v53 }
 0x8ae   :  { %7279 = vrcp.f32 %v8267_v51 }
 0x8af   :  { %7281 = vrcp.f32 %v8277_v19 }
 0x8b0   :  { %v7264_v0 = vpop.eup %7263  ;;  %7283 = vrcp.f32 %v1521_v33 }
 0x8b1   :  { %v778_v63 = vmul.f32 %v7264_v0, %v8281_v18  ;;  %v1529_v18 = vpop.permute.xlu0 %1528  ;;  %7285 = vrcp.f32 %v8347_v31 }
 0x8b2   :  { %7287 = vrcp.f32 %v8319_v3 }
 0x8b3   :  { %6574 = vmatmul.mubr.msk.f32.gmra.mxu1 %vm511_vm7, %v778_v63  ;;  %7289 = vrcp.f32 %v8357_v5 }
 0x8b4   :  { %v7266_v13 = vpop.eup %7265  ;;  %6576 = vmatprep.mubr.msk.f32.mxu1 %vm7473_vm2, %v7471_v49  ;;  %7291 = vrcp.f32 %v8359_v50 }
 0x8b5   :  { %v779_v52 = vmul.f32 %v7266_v13, %v8285_v34  ;;  %v7268_v48 = vpop.eup %7267 }
 0x8b6   :  { %v1012_v8 = vmul.f32 %v7268_v48, %v8139_v28  ;;  %v7270_v11 = vpop.eup %7269 }
 0x8b7   :  { %6577 = vmatmul.mubr.msk.f32.gmra.mxu1 %vm511_vm7, %v779_v52  ;;  %v1013_v55 = vmul.f32 %v7270_v11, %v8143_v37  ;;  %v7272_v25 = vpop.eup %7271 }
 0x8b8   :  { %6600 = vmatprep.mubr.msk.f32.mxu1 %vm7473_vm2, %v7471_v49  ;;  %v1014_v28 = vmul.f32 %v7272_v25, %v8178_v22  ;;  %v7274_v16 = vpop.eup %7273  ;;  %v1531_v22 = vpop.permute.xlu1 %1530  ;;  %v2379_v25 = vld [vmem:[%s9777_s9 + $0x18] sm:$0xff] }
 0x8b9   :  { %v1247_v37 = vmul.f32 %v7274_v16, %v8185_v26  ;;  %v7276_v53 = vpop.eup %7275  ;;  %6759 = vmatprep.subr.mxu0 %v2379_v25 }
 0x8ba   :  { %v1248_v51 = vmul.f32 %v7276_v53, %v8176_v20  ;;  %6760 = vmatpush3.msra.mxu0 %v2379_v25  ;;  %v2376_v53 = vld [vmem:[%s9777_s9] sm:$0xff] }
 0x8bb   :  { %6601 = vmatmul.mubr.msk.f32.vlgmr.msra.gmra.mxu1 %vm511_vm7, %v1012_v8 }
 0x8bc   :  { %6625 = vmatpush3.msra.mxu1 %v8279_v4  ;;  %6603 = vmatprep.mubr.msk.f32.mxu1 %vm7473_vm2, %v7471_v49  ;;  %v7278_v4 = vpop.eup %7277 }
 0x8bd   :  { %6626 = vmatprep.subr.mxu1 %v7471_v49  ;;  %v1249_v26 = vmul.f32 %v7278_v4, %v8183_v9  ;;  %v7280_v19 = vpop.eup %7279 }
 0x8be   :  { %6627 = vmatpush3.msra.mxu1 %v1253_v12  ;;  %v1525_v20 = vmul.f32 %v7280_v19, %v8197_v45  ;;  %v7282_v34 = vpop.eup %7281 }
 0x8bf   :  { %6628 = vmatprep.subr.mxu1 %v7471_v49  ;;  %6604 = vmatmul.mubr.msk.f32.gmra.mxu1 %vm511_vm7, %v1013_v55  ;;  %v1526_v9 = vmul.f32 %v7282_v34, %v8191_v39  ;;  %v7284_v62 = vpop.eup %7283 }
 0x8c0   :  { %6629 = vmatpush3.msra.mxu1 %v8313_v61  ;;  %6606 = vmatprep.mubr.msk.f32.mxu1 %vm7473_vm2, %v7471_v49  ;;  %v1527_v45 = vmul.f32 %v7284_v62, %v8207_v58  ;;  %v7286_v3 = vpop.eup %7285 }
 0x8c1   :  { %6654 = vmatprep.subr.mxu1 %v7471_v49  ;;  %v1760_v58 = vmul.f32 %v7286_v3, %v8213_v1  ;;  %v7288_v54 = vpop.eup %7287 }
 0x8c2   :  { %v1761_v59 = vmul.f32 %v7288_v54, %v8251_v17  ;;  %v7290_v30 = vpop.eup %7289 }
 0x8c3   :  { %6607 = vmatmul.mubr.msk.f32.gmra.mxu1 %vm511_vm7, %v1014_v28  ;;  %v1762_v31 = vmul.f32 %v7290_v30, %v8240_v24  ;;  %v7292_v47 = vpop.eup %7291 }
 0x8c4   :  { %6630 = vmatprep.mubr.msk.f32.mxu1 %vm7473_vm2, %v7471_v49  ;;  %v1995_v17 = vmul.f32 %v7292_v47, %v8244_v15 }
 0x8c7   :  { %6631 = vmatmul.mubr.msk.f32.vlgmr.msra.gmra.mxu1 %vm511_vm7, %v1247_v37  ;;  %v2377_v37 = vld [vmem:[%s9777_s9 + $0x8] sm:$0xff] }
 0x8c8   :  { %6655 = vmatpush3.msra.mxu1 %v8329_v6  ;;  %6633 = vmatprep.mubr.msk.f32.mxu1 %vm7473_vm2, %v7471_v49 }
 0x8c9   :  { %6656 = vmatprep.subr.mxu1 %v7471_v49 }
 0x8ca   :  { %6657 = vmatpush3.msra.mxu1 %v1531_v22 }
 0x8cb   :  { %6658 = vmatprep.subr.mxu1 %v7471_v49  ;;  %6634 = vmatmul.mubr.msk.f32.gmra.mxu1 %vm511_vm7, %v1248_v51 }
 0x8cc   :  { %6659 = vmatpush3.msra.mxu1 %v1529_v18  ;;  %6636 = vmatprep.mubr.msk.f32.mxu1 %vm7473_vm2, %v7471_v49 }
 0x8cd   :  { %6684 = vmatprep.subr.mxu1 %v7471_v49 }
 0x8cf   :  { %6637 = vmatmul.mubr.msk.f32.gmra.mxu1 %vm511_vm7, %v1249_v26 }
 0x8d0   :  { %6660 = vmatprep.mubr.msk.f32.mxu1 %vm7473_vm2, %v7471_v49 }
 0x8d3   :  { %6661 = vmatmul.mubr.msk.f32.vlgmr.msra.gmra.mxu1 %vm511_vm7, %v1525_v20 }
 0x8d4   :  { %6663 = vmatprep.mubr.msk.f32.mxu1 %vm7473_vm2, %v7471_v49 }
 0x8d7   :  { %v1991_v61 = vpop.xlane.xlu1 %1990  ;;  %6664 = vmatmul.mubr.msk.f32.gmra.mxu1 %vm511_vm7, %v1526_v9 }
 0x8d8   :  { %6666 = vmatprep.mubr.msk.f32.mxu1 %vm7473_vm2, %v7471_v49 }
 0x8db   :  { %v2220_v6 = vpop.xlane.xlu1 %2219  ;;  %6667 = vmatmul.mubr.msk.f32.gmra.mxu1 %vm511_vm7, %v1527_v45  ;;  %v1988_v29 = vpop.xlane.xlu0 %1987 }
 0x8dc   :  { %6690 = vmatprep.mubr.msk.f32.mxu1 %vm7473_vm2, %v7471_v49  ;;  %7293 = vrcp.f32 %v1988_v29 }
 0x8dd   :  { %7295 = vrcp.f32 %v1991_v61 }
 0x8de   :  { %7297 = vrcp.f32 %v2220_v6 }
 0x8df   :  { %v1768_v39 = vpop.permute.xlu0 %1767  ;;  %v1766_v41 = vpop.permute.xlu1 %1765 }
 0x8e0   :  { %6685 = vmatpush3.msra.mxu1 %v1768_v39 }
 0x8e1   :  { %6686 = vmatprep.subr.mxu1 %v7471_v49 }
 0x8e2   :  { %6687 = vmatpush3.msra.mxu1 %v1766_v41 }
 0x8e3   :  { %6688 = vmatprep.subr.mxu1 %v7471_v49  ;;  %v1764_v27 = vpop.permute.xlu0 %1763  ;;  %v2001_v1 = vpop.permute.xlu1 %2000 }
 0x8e4   :  { %6689 = vmatpush3.msra.mxu1 %v1764_v27 }
 0x8e5   :  { %6691 = vmatmul.mubr.msk.f32.vlgmr.msra.gmra.mxu1 %vm511_vm7, %v1760_v58  ;;  %6714 = vmatprep.subr.mxu1 %v7471_v49 }
 0x8e6   :  { %6693 = vmatprep.mubr.msk.f32.mxu1 %vm7473_vm2, %v7471_v49 }
 0x8e7   :  { %v2003_v57 = vpop.permute.xlu0 %2002  ;;  %v2238_v12 = vpop.permute.xlu1 %2237 }
 0x8e8   :  { %6715 = vmatpush3.msra.mxu1 %v2003_v57 }
 0x8e9   :  { %6694 = vmatmul.mubr.msk.f32.gmra.mxu1 %vm511_vm7, %v1761_v59  ;;  %6716 = vmatprep.subr.mxu1 %v7471_v49  ;;  %v7294_v43 = vpop.eup %7293 }
 0x8ea   :  { %6717 = vmatpush3.msra.mxu1 %v2001_v1  ;;  %6696 = vmatprep.mubr.msk.f32.mxu1 %vm7473_vm2, %v7471_v49  ;;  %v1996_v5 = vmul.f32 %v7294_v43, %v8301_v46  ;;  %v7296_v50 = vpop.eup %7295 }
 0x8eb   :  { %6718 = vmatprep.subr.mxu1 %v7471_v49  ;;  %v1999_v33 = vpop.permute.xlu0 %1998  ;;  %v2234_v14 = vpop.permute.xlu1 %2233  ;;  %v1997_v15 = vmul.f32 %v7296_v50, %v8299_v23 }
 0x8ec   :  { %6719 = vmatpush3.msra.mxu1 %v1999_v33  ;;  %v7298_v60 = vpop.eup %7297 }
 0x8ed   :  { %6697 = vmatmul.mubr.msk.f32.gmra.mxu1 %vm511_vm7, %v1762_v31  ;;  %6744 = vmatprep.subr.mxu1 %v7471_v49  ;;  %v2230_v46 = vmul.f32 %v7298_v60, %v8305_v56 }
 0x8ee   :  { %6720 = vmatprep.mubr.msk.f32.mxu1 %vm7473_vm2, %v7471_v49 }
 0x8ef   :  { %v2236_v24 = vpop.permute.xlu0 %2235 }
 0x8f1   :  { %6721 = vmatmul.mubr.msk.f32.vlgmr.msra.gmra.mxu1 %vm511_vm7, %v1995_v17 }
 0x8f2   :  { %6745 = vmatpush3.msra.mxu1 %v2238_v12  ;;  %6723 = vmatprep.mubr.msk.f32.mxu1 %vm7473_vm2, %v7471_v49 }
 0x8f3   :  { %6746 = vmatprep.subr.mxu1 %v7471_v49 }
 0x8f4   :  { %6747 = vmatpush3.msra.mxu1 %v2236_v24 }
 0x8f5   :  { %6748 = vmatprep.subr.mxu1 %v7471_v49  ;;  %6724 = vmatmul.mubr.msk.f32.gmra.mxu1 %vm511_vm7, %v1996_v5 }
 0x8f6   :  { %6749 = vmatpush3.msra.mxu1 %v2234_v14  ;;  %6726 = vmatprep.mubr.msk.f32.mxu1 %vm7473_vm2, %v7471_v49 }
 0x8f9   :  { %6727 = vmatmul.mubr.msk.f32.gmra.mxu1 %vm511_vm7, %v1997_v15 }
 0x8fa   :  { %6750 = vmatprep.mubr.msk.f32.mxu1 %vm7473_vm2, %v7471_v49 }
 0x8fd   :  { %6751 = vmatmul.mubr.msk.f32.vlgmr.msra.gmra.mxu1 %vm511_vm7, %v2230_v46 }
 0x8fe   :  { %6753 = vmatprep.mubr.msk.f32.mxu1 %vm7473_vm2, %v7471_v49 }
 0x91c   :  { %v2226_v0 = vpop.xlane.xlu1 %2225 }
 0x920   :  { %v2223_v63 = vpop.xlane.xlu0 %2222 }
 0x921   :  { %7299 = vrcp.f32 %v2223_v63 }
 0x922   :  { %7301 = vrcp.f32 %v2226_v0 }
 0x92e   :  { %v7300_v13 = vpop.eup %7299 }
 0x92f   :  { %v2231_v23 = vmul.f32 %v7300_v13, %v8353_v21  ;;  %v7302_v52 = vpop.eup %7301 }
 0x930   :  { %v2232_v56 = vmul.f32 %v7302_v52, %v8349_v40  ;;  %v2378_v40 = vld [vmem:[%s9777_s9 + $0x10] sm:$0xff] }
 0x931   :  { %6754 = vmatmul.mubr.msk.f32.gmra.mxu1 %vm511_vm7, %v2231_v23  ;;  %6761 = vmatprep.subr.mxu0 %v2378_v40 }
 0x932   :  { %6756 = vmatprep.mubr.msk.f32.mxu1 %vm7473_vm2, %v7471_v49  ;;  %6762 = vmatpush3.msra.mxu0 %v2378_v40 }
 0x933   :  { %6763 = vmatprep.subr.mxu0 %v2377_v37 }
 0x934   :  { %6764 = vmatpush3.msra.mxu0 %v2377_v37 }
 0x935   :  { %6757 = vmatmul.mubr.msk.f32.gmra.mxu1 %vm511_vm7, %v2232_v56  ;;  %6765 = vmatprep.subr.mxu0 %v2376_v53 }
 0x936   :  { %6766 = vmatpush3.msra.mxu0 %v2376_v53 }
 0x946   :  { %v864_v48 = vpop.f32.mrf.mxu1 }
 0x947   :  { %1351 = vrot.lane.b32.xlu0 %v864_v48, %s7485_s26 }
 0x948   :  { %v6572_v8 = vpop.f32.mrf.mxu1 }
 0x973   :  { %v869_v11 = vpop.f32.mrf.mxu1 }
 0x974   :  { %1353 = vrot.lane.b32.xlu1 %v869_v11, %s7485_s26 }
 0x975   :  { %v6575_v55 = vpop.f32.mrf.mxu1 }
 0x977   :  { %v874_v21 = vpop.f32.mrf.mxu1 }
 0x978   :  { %1355 = vrot.lane.b32.xlu0 %v874_v21, %s7485_s26 }
 0x979   :  { %v6578_v28 = vpop.f32.mrf.mxu1 }
 0x97b   :  { %v1099_v16 = vpop.f32.mrf.mxu1 }
 0x97c   :  { %1363 = vrot.lane.b32.xlu0 %v1099_v16, %s9812_s1 }
 0x97d   :  { %v6602_v22 = vpop.f32.mrf.mxu1 }
 0x97f   :  { %v1104_v51 = vpop.f32.mrf.mxu1 }
 0x980   :  { %1365 = vrot.lane.b32.xlu1 %v1104_v51, %s9812_s1 }
 0x981   :  { %v6605_v4 = vpop.f32.mrf.mxu1 }
 0x983   :  { %v1109_v18 = vpop.f32.mrf.mxu1 }
 0x984   :  { %1367 = vrot.lane.b32.xlu1 %v1109_v18, %s9812_s1 }
 0x985   :  { %v6608_v26 = vpop.f32.mrf.mxu1 }
 0x987   :  { %v1334_v19 = vpop.f32.mrf.mxu1 }
 0x988   :  { %1375 = vrot.lane.b32.xlu0 %v1334_v19, %s9810_s2 }
 0x989   :  { %v6632_v20 = vpop.f32.mrf.mxu1 }
 0x98b   :  { %v1339_v34 = vpop.f32.mrf.mxu1 }
 0x98c   :  { %1377 = vrot.lane.b32.xlu1 %v1339_v34, %s9810_s2 }
 0x98d   :  { %v6635_v9 = vpop.f32.mrf.mxu1 }
 0x98f   :  { %v1344_v62 = vpop.f32.mrf.mxu1 }
 0x990   :  { %1379 = vrot.lane.b32.xlu1 %v1344_v62, %s9810_s2 }
 0x991   :  { %v6638_v61 = vpop.f32.mrf.mxu1 }
 0x993   :  { %v1612_v45 = vpop.f32.mrf.mxu1 }
 0x995   :  { %v6662_v6 = vpop.f32.mrf.mxu1 }
 0x997   :  { %v8489_v29 = vpop.f32.mrf.mxu1 }
 0x999   :  { %v6665_v39 = vpop.f32.mrf.mxu1 }
 0x99b   :  { %v8491_v3 = vpop.f32.mrf.mxu1 }
 0x99d   :  { %v6668_v41 = vpop.f32.mrf.mxu1 }
 0x9a5   :  { %v1847_v58 = vpop.f32.mrf.mxu1 }
 0x9a6   :  { %2334 = vrot.lane.b32.xlu0 %v1847_v58, %s7485_s26 }
 0x9a7   :  { %v6692_v27 = vpop.f32.mrf.mxu1 }
 0x9a9   :  { %v1852_v54 = vpop.f32.mrf.mxu1 }
 0x9ab   :  { %v6695_v57 = vpop.f32.mrf.mxu1 }
 0x9ad   :  { %v1857_v59 = vpop.f32.mrf.mxu1 }
 0x9af   :  { %v6698_v30 = vpop.f32.mrf.mxu1 }
 0x9b1   :  { %v2082_v1 = vpop.f32.mrf.mxu1 }
 0x9b2   :  { %2346 = vrot.lane.b32.xlu0 %v2082_v1, %s9812_s1 }
 0x9b3   :  { %v6722_v33 = vpop.f32.mrf.mxu1 }
 0x9b5   :  { %v2087_v31 = vpop.f32.mrf.mxu1 }
 0x9b6   :  { %2336 = vrot.lane.b32.xlu0 %v1852_v54, %s7485_s26 }
 0x9b7   :  { %v6725_v47 = vpop.f32.mrf.mxu1 }
 0x9b9   :  { %v2092_v17 = vpop.f32.mrf.mxu1  ;;  %v1352_v5 = vpop.permute.xlu0 %1351 }
 0x9ba   :  { %2348 = vrot.lane.b32.xlu0 %v2087_v31, %s9812_s1  ;;  %v1384_v23 = vsel %vm418_vm3, %v8045_v36, %v1352_v5 }
 0x9bb   :  { %v6728_v12 = vpop.f32.mrf.mxu1 }
 0x9bd   :  { %v2317_v43 = vpop.f32.mrf.mxu1 }
 0x9be   :  { %2358 = vrot.lane.b32.xlu1 %v2317_v43, %s9810_s2 }
 0x9bf   :  { %v6752_v24 = vpop.f32.mrf.mxu1 }
 0x9c2   :  { %2338 = vrot.lane.b32.xlu1 %v1857_v59, %s7485_s26 }
 0x9c6   :  { %2350 = vrot.lane.b32.xlu1 %v2092_v17, %s9812_s1 }
 0x9e6   :  { %v1354_v50 = vpop.permute.xlu1 %1353 }
 0x9e7   :  { %v1385_v11 = vsel %vm418_vm3, %v8047_v38, %v1354_v50 }
 0x9ea   :  { %v1356_v14 = vpop.permute.xlu0 %1355 }
 0x9eb   :  { %v1386_v36 = vsel %vm418_vm3, %v8129_v10, %v1356_v14 }
 0x9ee   :  { %v1364_v63 = vpop.permute.xlu0 %1363 }
 0x9ef   :  { %v1388_v52 = vsel %vm1387_vm8, %v1384_v23, %v1364_v63 }
 0x9f1   :  { %v2322_v15 = vpop.f32.mrf.mxu1 }
 0x9f2   :  { %2360 = vrot.lane.b32.xlu0 %v2322_v15, %s9810_s2  ;;  %v1366_v46 = vpop.permute.xlu1 %1365 }
 0x9f3   :  { %v6755_v60 = vpop.f32.mrf.mxu1  ;;  %v1389_v55 = vsel %vm1387_vm8, %v1385_v11, %v1366_v46  ;;  %v2618_v11 = vld [vmem:[%s9779_s13 + $0x10] sm:$0xff] }
 0x9f5   :  { %v2327_v0 = vpop.f32.mrf.mxu1 }
 0x9f6   :  { %2362 = vrot.lane.b32.xlu1 %v2327_v0, %s9810_s2  ;;  %v1368_v56 = vpop.permute.xlu1 %1367 }
 0x9f7   :  { %v6758_v13 = vpop.f32.mrf.mxu1  ;;  %v1390_v40 = vsel %vm1387_vm8, %v1386_v36, %v1368_v56 }
 0x9fa   :  { %v1376_v48 = vpop.permute.xlu0 %1375 }
 0x9fb   :  { %v1391_v8 = vsel %vm511_vm7, %v1388_v52, %v1376_v48 }
 0x9fc   :  { %6767 = vmatprep.mubr.msk.f32.mxu0 %vm199_vm1, %v1391_v8  ;;  %v2619_v8 = vld [vmem:[%s9779_s13 + $0x18] sm:$0xff] }
 0x9fd   :  { %6776 = vmatprep.subr.mxu1 %v2619_v8 }
 0x9fe   :  { %v1378_v21 = vpop.permute.xlu1 %1377  ;;  %6777 = vmatpush3.msra.mxu1 %v2619_v8  ;;  %v2807_v8 = vld [vmem:[%s9782_s15 + $0x68] sm:$0xff] }
 0x9ff   :  { %v1392_v25 = vsel %vm511_vm7, %v1389_v55, %v1378_v21  ;;  %v2617_v55 = vld [vmem:[%s9779_s13 + $0x8] sm:$0xff]  ;;  %6778 = vmatprep.subr.mxu1 %v2618_v11  ;;  %v2616_v21 = vld [vmem:[%s9779_s13] sm:$0xff] }
 0xa00   :  { %6768 = vmatmul.mubr.msk.f32.vlgmr.msra.gmra.mxu0 %vm199_vm1, %v1392_v25  ;;  %6779 = vmatpush3.msra.mxu1 %v2618_v11  ;;  %v2806_v11 = vld [vmem:[%s9782_s15 + $0x60] sm:$0xff] }
 0xa01   :  { %6780 = vmatprep.subr.mxu1 %v2617_v55 }
 0xa02   :  { %v1380_v28 = vpop.permute.xlu1 %1379  ;;  %6781 = vmatpush3.msra.mxu1 %v2617_v55  ;;  %v2805_v55 = vld [vmem:[%s9782_s15 + $0x58] sm:$0xff] }
 0xa03   :  { %v1393_v16 = vsel %vm511_vm7, %v1390_v40, %v1380_v28  ;;  %6782 = vmatprep.subr.mxu1 %v2616_v21 }
 0xa04   :  { %6770 = vmatprep.mubr.msk.f32.mxu0 %vm199_vm1, %v1393_v16  ;;  %6783 = vmatpush3.msra.mxu1 %v2616_v21 }
 0xa18   :  { %v2335_v37 = vpop.permute.xlu0 %2334 }
 0xa19   :  { %v2367_v38 = vsel %vm418_vm3, %v1612_v45, %v2335_v37 }
 0xa24   :  { %v2347_v53 = vpop.permute.xlu0 %2346 }
 0xa25   :  { %v2370_v22 = vsel %vm1387_vm8, %v2367_v38, %v2347_v53 }
 0xa28   :  { %v2337_v18 = vpop.permute.xlu0 %2336 }
 0xa29   :  { %v2368_v19 = vsel %vm418_vm3, %v8489_v29, %v2337_v18  ;;  %v5988_v29 = vld [vmem:[%s9778_s10] ss:$0 sm:$0xff] }
 0xa2c   :  { %v2349_v26 = vpop.permute.xlu0 %2348 }
 0xa2d   :  { %v2371_v20 = vsel %vm1387_vm8, %v2368_v19, %v2349_v26 }
 0xa30   :  { %v2359_v51 = vpop.permute.xlu1 %2358 }
 0xa31   :  { %v2373_v4 = vsel %vm511_vm7, %v2370_v22, %v2359_v51 }
 0xa32   :  { %6771 = vmatmul.mubr.msk.f32.gmra.mxu0 %vm199_vm1, %v2373_v4 }
 0xa34   :  { %v2339_v10 = vpop.permute.xlu1 %2338 }
 0xa35   :  { %v2369_v61 = vsel %vm418_vm3, %v8491_v3, %v2339_v10 }
 0xa38   :  { %v2351_v34 = vpop.permute.xlu1 %2350 }
 0xa39   :  { %v2372_v45 = vsel %vm1387_vm8, %v2369_v61, %v2351_v34 }
 0xa64   :  { %v2361_v9 = vpop.permute.xlu0 %2360 }
 0xa65   :  { %v2374_v62 = vsel %vm511_vm7, %v2371_v20, %v2361_v9 }
 0xa66   :  { %6773 = vmatprep.mubr.msk.f32.mxu0 %vm199_vm1, %v2374_v62 }
 0xa68   :  { %v2363_v6 = vpop.permute.xlu1 %2362 }
 0xa69   :  { %v2375_v39 = vsel %vm511_vm7, %v2372_v45, %v2363_v6 }
 0xa6a   :  { %6774 = vmatmul.mubr.msk.f32.gmra.mxu0 %vm199_vm1, %v2375_v39 }
 0xac0   :  { %v6769_v41 = vpop.f32.mrf.mxu0 }
 0xac1   :  { %v2494_v58 = vadd.f32 %v6769_v41, %v7682_v35 }
 0xac2   :  { %v2464_v27 = vpop.f32.mrf.mxu0 }
 0xac3   :  { %v8535_v54 = vadd.f32 %v5988_v29, %v2494_v58  ;;  %v2493_v57 = vadd.f32 %v2464_v27, %v7624_v7 }
 0xac5   :  { %v8538_v3 = vadd.f32 %v5988_v29, %v2493_v57  ;;  %v2517_v59 = vsel %vm199_vm1, %v8535_v54, 0.0 }
 0xac6   :  { %2518 = vadd.xlane.f32.xlu1 %v2517_v59  ;;  %v8599_v59 = vld [vmem:[%s9780_s11] ss:$0 sm:$0xff] }
 0xac7   :  { %v2514_v30 = vsel %vm199_vm1, %v8538_v3, 0.0 }
 0xac8   :  { %2515 = vadd.xlane.f32.xlu0 %v2514_v30 }
 0xaf2   :  { %v6772_v1 = vpop.f32.mrf.mxu0 }
 0xaf3   :  { %v2496_v31 = vadd.f32 %v6772_v1, %v7624_v7 }
 0xaf4   :  { %v2474_v33 = vpop.f32.mrf.mxu0 }
 0xaf5   :  { %v2495_v35 = vadd.f32 %v2474_v33, %v7680_v32  ;;  %v8548_v17 = vadd.f32 %v5988_v29, %v2496_v31  ;;  %v8605_v31 = vld [vmem:[%s9781_s12] ss:$0 sm:$0xff] }
 0xaf7   :  { %v8546_v47 = vadd.f32 %v5988_v29, %v2495_v35  ;;  %v2523_v43 = vsel %vm199_vm1, %v8548_v17, 0.0 }
 0xaf9   :  { %v2520_v12 = vsel %vm199_vm1, %v8546_v47, 0.0 }
 0xafa   :  { %2521 = vadd.xlane.f32.xlu0 %v2520_v12 }
 0xafe   :  { %2524 = vadd.xlane.f32.xlu0 %v2523_v43 }
 0xb2a   :  { %v6775_v24 = vpop.f32.mrf.mxu0 }
 0xb2b   :  { %v2498_v5 = vadd.f32 %v6775_v24, %v7689_v42 }
 0xb2c   :  { %v2484_v50 = vpop.f32.mrf.mxu0 }
 0xb2d   :  { %v8555_v14 = vadd.f32 %v5988_v29, %v2498_v5  ;;  %v2497_v7 = vadd.f32 %v2484_v50, %v7691_v44 }
 0xb2f   :  { %v8558_v32 = vadd.f32 %v5988_v29, %v2497_v7  ;;  %v2529_v15 = vsel %vm199_vm1, %v8555_v14, 0.0 }
 0xb30   :  { %2530 = vadd.xlane.f32.xlu1 %v2529_v15 }
 0xb31   :  { %v2526_v60 = vsel %vm199_vm1, %v8558_v32, 0.0 }
 0xb32   :  { %2527 = vadd.xlane.f32.xlu0 %v2526_v60 }
 0xb4f   :  { %v2519_v46 = vpop.xlane.xlu1 %2518 }
 0xb50   :  { %v2533_v0 = vmul.f32 0.03125, %v2519_v46 }
 0xb51   :  { %v2516_v63 = vpop.xlane.xlu0 %2515 }
 0xb52   :  { %v2539_v42 = vsub.f32 %v8535_v54, %v2533_v0  ;;  %v2532_v13 = vmul.f32 0.03125, %v2516_v63 }
 0xb54   :  { %v2538_v23 = vsub.f32 %v8538_v3, %v2532_v13  ;;  %v2545_v52 = vmul.f32 %v2539_v42, %v2539_v42 }
 0xb56   :  { %v2553_v44 = vsel %vm199_vm1, %v2545_v52, 0.0  ;;  %v2544_v56 = vmul.f32 %v2538_v23, %v2538_v23 }
 0xb57   :  { %2554 = vadd.xlane.f32.xlu1 %v2553_v44 }
 0xb58   :  { %v2550_v48 = vsel %vm199_vm1, %v2544_v56, 0.0  ;;  %v2809_v56 = vld [vmem:[%s9782_s15 + $0x78] sm:$0xff] }
 0xb59   :  { %2551 = vadd.xlane.f32.xlu0 %v2550_v48  ;;  %6793 = vmatprep.subr.mxu0 %v2809_v56  ;;  %v2808_v48 = vld [vmem:[%s9782_s15 + $0x70] sm:$0xff] }
 0xb5a   :  { %6794 = vmatpush3.msra.mxu0 %v2809_v56 }
 0xb5b   :  { %6795 = vmatprep.subr.mxu0 %v2808_v48 }
 0xb5c   :  { %6796 = vmatpush3.msra.mxu0 %v2808_v48 }
 0xb5d   :  { %6797 = vmatprep.subr.mxu0 %v2807_v8 }
 0xb5e   :  { %6798 = vmatpush3.msra.mxu0 %v2807_v8 }
 0xb5f   :  { %6799 = vmatprep.subr.mxu0 %v2806_v11 }
 0xb60   :  { %6800 = vmatpush3.msra.mxu0 %v2806_v11 }
 0xb61   :  { %6801 = vmatprep.subr.mxu0 %v2805_v55 }
 0xb62   :  { %6802 = vmatpush3.msra.mxu0 %v2805_v55 }
 0xb83   :  { %v2522_v25 = vpop.xlane.xlu0 %2521 }
 0xb84   :  { %v2534_v36 = vmul.f32 0.03125, %v2522_v25  ;;  %v2804_v25 = vld [vmem:[%s9782_s15 + $0x50] sm:$0xff] }
 0xb85   :  { %6803 = vmatprep.subr.mxu0 %v2804_v25 }
 0xb86   :  { %v2540_v40 = vsub.f32 %v8546_v47, %v2534_v36  ;;  %6804 = vmatpush3.msra.mxu0 %v2804_v25 }
 0xb87   :  { %v2525_v28 = vpop.xlane.xlu0 %2524 }
 0xb88   :  { %v2535_v16 = vmul.f32 0.03125, %v2525_v28  ;;  %v2546_v37 = vmul.f32 %v2540_v40, %v2540_v40  ;;  %v2803_v28 = vld [vmem:[%s9782_s15 + $0x48] sm:$0xff] }
 0xb89   :  { %6805 = vmatprep.subr.mxu0 %v2803_v28 }
 0xb8a   :  { %v2541_v53 = vsub.f32 %v8548_v17, %v2535_v16  ;;  %v2556_v38 = vsel %vm199_vm1, %v2546_v37, 0.0  ;;  %6806 = vmatpush3.msra.mxu0 %v2803_v28 }
 0xb8b   :  { %2557 = vadd.xlane.f32.xlu0 %v2556_v38 }
 0xb8c   :  { %v2547_v22 = vmul.f32 %v2541_v53, %v2541_v53 }
 0xb8e   :  { %v2559_v51 = vsel %vm199_vm1, %v2547_v22, 0.0  ;;  %v2801_v22 = vld [vmem:[%s9782_s15 + $0x38] sm:$0xff] }
 0xb8f   :  { %2560 = vadd.xlane.f32.xlu1 %v2559_v51  ;;  %v2800_v51 = vld [vmem:[%s9782_s15 + $0x30] sm:$0xff] }
 0xbb9   :  { %v2531_v4 = vpop.xlane.xlu1 %2530 }
 0xbba   :  { %v2537_v18 = vmul.f32 0.03125, %v2531_v4  ;;  %v2799_v4 = vld [vmem:[%s9782_s15 + $0x28] sm:$0xff] }
 0xbbb   :  { %v2528_v10 = vpop.xlane.xlu0 %2527 }
 0xbbc   :  { %v8585_v26 = vsub.f32 %v8555_v14, %v2537_v18  ;;  %v2536_v19 = vmul.f32 0.03125, %v2528_v10  ;;  %v2798_v18 = vld [vmem:[%s9782_s15 + $0x20] sm:$0xff]  ;;  %v2797_v10 = vld [vmem:[%s9782_s15 + $0x18] sm:$0xff] }
 0xbbe   :  { %v8588_v20 = vsub.f32 %v8558_v32, %v2536_v19  ;;  %v2549_v34 = vmul.f32 %v8585_v26, %v8585_v26  ;;  %v2796_v19 = vld [vmem:[%s9782_s15 + $0x10] sm:$0xff] }
 0xbc0   :  { %v2565_v9 = vsel %vm199_vm1, %v2549_v34, 0.0  ;;  %v2548_v62 = vmul.f32 %v8588_v20, %v8588_v20  ;;  %v2795_v34 = vld [vmem:[%s9782_s15 + $0x8] sm:$0xff] }
 0xbc1   :  { %2566 = vadd.xlane.f32.xlu1 %v2565_v9 }
 0xbc2   :  { %v2562_v61 = vsel %vm199_vm1, %v2548_v62, 0.0  ;;  %v2794_v62 = vld [vmem:[%s9782_s15] sm:$0xff] }
 0xbc3   :  { %2563 = vadd.xlane.f32.xlu0 %v2562_v61 }
 0xbe0   :  { %v2555_v45 = vpop.xlane.xlu1 %2554 }
 0xbe1   :  { %v2569_v6 = vmul.f32 0.03125, %v2555_v45 }
 0xbe2   :  { %v2552_v39 = vpop.xlane.xlu0 %2551 }
 0xbe3   :  { %v2575_v41 = vadd.f32 1e-06, %v2569_v6  ;;  %v2568_v29 = vmul.f32 0.03125, %v2552_v39 }
 0xbe5   :  { %7303 = vrsqrt.f32 %v2575_v41  ;;  %v2574_v58 = vadd.f32 1e-06, %v2568_v29 }
 0xbe7   :  { %7305 = vrsqrt.f32 %v2574_v58 }
 0xbf2   :  { %v7304_v27 = vpop.eup %7303 }
 0xbf3   :  { %v2587_v57 = vmul.f32 %v7304_v27, %v2539_v42 }
 0xbf4   :  { %v7306_v30 = vpop.eup %7305 }
 0xbf5   :  { %v2586_v1 = vmul.f32 %v7306_v30, %v2538_v23  ;;  %v2599_v33 = vmul.f32 %v8599_v59, %v2587_v57 }
 0xbf7   :  { %v2598_v35 = vmul.f32 %v8599_v59, %v2586_v1  ;;  %v2611_v43 = vadd.f32 %v8605_v31, %v2599_v33 }
 0xbf9   :  { %v2610_v12 = vadd.f32 %v8605_v31, %v2598_v35 }
 0xbfb   :  { %6784 = vmatprep.mubr.msk.f32.mxu1 %vm199_vm1, %v2610_v12 }
 0xbfc   :  { %6785 = vmatmul.mubr.msk.f32.vlgmr.msra.gmra.mxu1 %vm199_vm1, %v2611_v43 }
 0xc14   :  { %v2558_v24 = vpop.xlane.xlu0 %2557 }
 0xc15   :  { %v2570_v5 = vmul.f32 0.03125, %v2558_v24 }
 0xc17   :  { %v2576_v50 = vadd.f32 1e-06, %v2570_v5 }
 0xc18   :  { %v2561_v7 = vpop.xlane.xlu1 %2560 }
 0xc19   :  { %7307 = vrsqrt.f32 %v2576_v50  ;;  %v2571_v15 = vmul.f32 0.03125, %v2561_v7 }
 0xc1b   :  { %v2577_v60 = vadd.f32 1e-06, %v2571_v15 }
 0xc1d   :  { %7309 = vrsqrt.f32 %v2577_v60 }
 0xc26   :  { %v7308_v46 = vpop.eup %7307 }
 0xc27   :  { %v2588_v0 = vmul.f32 %v7308_v46, %v2540_v40 }
 0xc29   :  { %v2600_v63 = vmul.f32 %v8599_v59, %v2588_v0 }
 0xc2a   :  { %v7310_v42 = vpop.eup %7309 }
 0xc2b   :  { %v2612_v13 = vadd.f32 %v8605_v31, %v2600_v63  ;;  %v2589_v23 = vmul.f32 %v7310_v42, %v2541_v53  ;;  %v2802_v53 = vld [vmem:[%s9782_s15 + $0x40] sm:$0xff] }
 0xc2c   :  { %6807 = vmatprep.subr.mxu0 %v2802_v53 }
 0xc2d   :  { %6787 = vmatprep.mubr.msk.f32.mxu1 %vm199_vm1, %v2612_v13  ;;  %v2601_v52 = vmul.f32 %v8599_v59, %v2589_v23  ;;  %6808 = vmatpush3.msra.mxu0 %v2802_v53 }
 0xc2e   :  { %6809 = vmatprep.subr.mxu0 %v2801_v22 }
 0xc2f   :  { %v2613_v44 = vadd.f32 %v8605_v31, %v2601_v52  ;;  %6810 = vmatpush3.msra.mxu0 %v2801_v22 }
 0xc30   :  { %6811 = vmatprep.subr.mxu0 %v2800_v51 }
 0xc31   :  { %6788 = vmatmul.mubr.msk.f32.gmra.mxu1 %vm199_vm1, %v2613_v44  ;;  %6812 = vmatpush3.msra.mxu0 %v2800_v51 }
 0xc32   :  { %6813 = vmatprep.subr.mxu0 %v2799_v4 }
 0xc33   :  { %6814 = vmatpush3.msra.mxu0 %v2799_v4 }
 0xc34   :  { %6815 = vmatprep.subr.mxu0 %v2798_v18 }
 0xc35   :  { %6816 = vmatpush3.msra.mxu0 %v2798_v18 }
 0xc36   :  { %6817 = vmatprep.subr.mxu0 %v2797_v10 }
 0xc37   :  { %6818 = vmatpush3.msra.mxu0 %v2797_v10 }
 0xc38   :  { %6819 = vmatprep.subr.mxu0 %v2796_v19 }
 0xc39   :  { %6820 = vmatpush3.msra.mxu0 %v2796_v19 }
 0xc3a   :  { %6821 = vmatprep.subr.mxu0 %v2795_v34 }
 0xc3b   :  { %6822 = vmatpush3.msra.mxu0 %v2795_v34 }
 0xc3c   :  { %6823 = vmatprep.subr.mxu0 %v2794_v62 }
 0xc3d   :  { %6824 = vmatpush3.msra.mxu0 %v2794_v62 }
 0xc3e   :  { %6881 = vmatprep.subr.mxu0 %v7471_v49 }
 0xc4a   :  { %v2567_v21 = vpop.xlane.xlu1 %2566 }
 0xc4b   :  { %v2573_v36 = vmul.f32 0.03125, %v2567_v21 }
 0xc4c   :  { %v2564_v40 = vpop.xlane.xlu0 %2563 }
 0xc4d   :  { %v2579_v16 = vadd.f32 1e-06, %v2573_v36  ;;  %v2572_v37 = vmul.f32 0.03125, %v2564_v40 }
 0xc4f   :  { %7311 = vrsqrt.f32 %v2579_v16  ;;  %v2578_v38 = vadd.f32 1e-06, %v2572_v37 }
 0xc51   :  { %7313 = vrsqrt.f32 %v2578_v38 }
 0xc5c   :  { %v7312_v9 = vpop.eup %7311 }
 0xc5d   :  { %v2591_v61 = vmul.f32 %v7312_v9, %v8585_v26  ;;  %v5991_v26 = vld [vmem:[%s9783_s14] ss:$0 sm:$0xff] }
 0xc5e   :  { %v7314_v45 = vpop.eup %7313 }
 0xc5f   :  { %v2590_v6 = vmul.f32 %v7314_v45, %v8588_v20  ;;  %v2603_v39 = vmul.f32 %v8599_v59, %v2591_v61 }
 0xc61   :  { %v2602_v41 = vmul.f32 %v8599_v59, %v2590_v6  ;;  %v2615_v58 = vadd.f32 %v8605_v31, %v2603_v39 }
 0xc63   :  { %v2614_v29 = vadd.f32 %v8605_v31, %v2602_v41 }
 0xc65   :  { %6790 = vmatprep.mubr.msk.f32.mxu1 %vm199_vm1, %v2614_v29 }
 0xc66   :  { %6791 = vmatmul.mubr.msk.f32.gmra.mxu1 %vm199_vm1, %v2615_v58 }
 0xcbc   :  { %v6786_v20 = vpop.f32.mrf.mxu1 }
 0xcbd   :  { %v2717_v27 = vadd.f32 %v6786_v20, %v5991_v26 }
 0xcbe   :  { %v2711_v57 = vpop.f32.mrf.mxu1 }
 0xcbf   :  { %v2741_v30 = vmul.f32 %v2717_v27, %v2717_v27  ;;  %v2712_v1 = vadd.f32 %v5991_v26, %v2711_v57 }
 0xcc1   :  { %v2747_v59 = vmul.f32 %v2741_v30, %v2717_v27  ;;  %v2740_v33 = vmul.f32 %v2712_v1, %v2712_v1 }
 0xcc3   :  { %v2753_v35 = vmul.f32 0.044715, %v2747_v59  ;;  %v2746_v12 = vmul.f32 %v2740_v33, %v2712_v1 }
 0xcc5   :  { %v2759_v43 = vadd.f32 %v2753_v35, %v2717_v27  ;;  %v2752_v24 = vmul.f32 0.044715, %v2746_v12 }
 0xcc7   :  { %v2765_v31 = vmul.f32 0.7978846, %v2759_v43  ;;  %v2758_v5 = vadd.f32 %v2752_v24, %v2712_v1 }
 0xcc9   :  { %7315 = vtanh.f32 %v2765_v31  ;;  %v2764_v50 = vmul.f32 0.7978846, %v2758_v5 }
 0xccb   :  { %7317 = vtanh.f32 %v2764_v50 }
 0xcd6   :  { %v7316_v7 = vpop.eup %7315 }
 0xcd7   :  { %v2777_v15 = vadd.f32 1.0, %v7316_v7 }
 0xcd8   :  { %v7318_v60 = vpop.eup %7317 }
 0xcd9   :  { %v2776_v46 = vadd.f32 1.0, %v7318_v60  ;;  %v2783_v0 = vmul.f32 0.5, %v2777_v15 }
 0xcdb   :  { %v2782_v63 = vmul.f32 0.5, %v2776_v46  ;;  %v2789_v13 = vmul.f32 %v2783_v0, %v2717_v27 }
 0xcdd   :  { %v2788_v42 = vmul.f32 %v2782_v63, %v2712_v1 }
 0xcdf   :  { %6825 = vmatprep.mubr.f32.mxu0 %v2788_v42 }
 0xce0   :  { %6826 = vmatmul.mubr.f32.vlgmr.msra.gmra.mxu0 %v2789_v13 }
 0xcf1   :  { %v6789_v23 = vpop.f32.mrf.mxu1 }
 0xcf2   :  { %v2727_v52 = vadd.f32 %v6789_v23, %v5991_v26 }
 0xcf3   :  { %v2721_v44 = vpop.f32.mrf.mxu1 }
 0xcf4   :  { %v2743_v56 = vmul.f32 %v2727_v52, %v2727_v52  ;;  %v2722_v48 = vadd.f32 %v5991_v26, %v2721_v44 }
 0xcf6   :  { %v2749_v8 = vmul.f32 %v2743_v56, %v2727_v52  ;;  %v2742_v11 = vmul.f32 %v2722_v48, %v2722_v48 }
 0xcf8   :  { %v2755_v55 = vmul.f32 0.044715, %v2749_v8  ;;  %v2748_v21 = vmul.f32 %v2742_v11, %v2722_v48 }
 0xcfa   :  { %v2761_v25 = vadd.f32 %v2755_v55, %v2727_v52  ;;  %v2754_v36 = vmul.f32 0.044715, %v2748_v21 }
 0xcfc   :  { %v2767_v40 = vmul.f32 0.7978846, %v2761_v25  ;;  %v2760_v28 = vadd.f32 %v2754_v36, %v2722_v48 }
 0xcfe   :  { %7319 = vtanh.f32 %v2767_v40  ;;  %v2766_v16 = vmul.f32 0.7978846, %v2760_v28 }
 0xd00   :  { %7321 = vtanh.f32 %v2766_v16 }
 0xd0b   :  { %v7320_v37 = vpop.eup %7319 }
 0xd0c   :  { %v2779_v53 = vadd.f32 1.0, %v7320_v37 }
 0xd0d   :  { %v7322_v38 = vpop.eup %7321 }
 0xd0e   :  { %v2778_v22 = vadd.f32 1.0, %v7322_v38  ;;  %v2785_v51 = vmul.f32 0.5, %v2779_v53 }
 0xd10   :  { %v2784_v4 = vmul.f32 0.5, %v2778_v22  ;;  %v2791_v10 = vmul.f32 %v2785_v51, %v2727_v52  ;;  %v6006_v22 = vld [vmem:[%s9775_s7 + $0x38] sm:$0xff]  ;;  %v6005_v51 = vld [vmem:[%s9775_s7 + $0x30] sm:$0xff] }
 0xd11   :  { %6834 = vmatprep.subr.mxu1 %v6006_v22 }
 0xd12   :  { %v2790_v18 = vmul.f32 %v2784_v4, %v2722_v48  ;;  %6835 = vmatpush3.msra.mxu1 %v6006_v22  ;;  %v6004_v4 = vld [vmem:[%s9775_s7 + $0x28] sm:$0xff] }
 0xd13   :  { %6836 = vmatprep.subr.mxu1 %v6005_v51 }
 0xd14   :  { %6828 = vmatprep.mubr.f32.mxu0 %v2790_v18  ;;  %6837 = vmatpush3.msra.mxu1 %v6005_v51  ;;  %v6003_v18 = vld [vmem:[%s9775_s7 + $0x20] sm:$0xff] }
 0xd15   :  { %6829 = vmatmul.mubr.f32.gmra.mxu0 %v2791_v10  ;;  %6838 = vmatprep.subr.mxu1 %v6004_v4 }
 0xd16   :  { %6839 = vmatpush3.msra.mxu1 %v6004_v4 }
 0xd17   :  { %6840 = vmatprep.subr.mxu1 %v6003_v18 }
 0xd18   :  { %6841 = vmatpush3.msra.mxu1 %v6003_v18 }
 0xd19   :  { %6851 = vmatprep.subr.mxu1 %v7471_v49 }
 0xd26   :  { %v6792_v19 = vpop.f32.mrf.mxu1 }
 0xd27   :  { %v2737_v34 = vadd.f32 %v6792_v19, %v5991_v26 }
 0xd28   :  { %v2731_v9 = vpop.f32.mrf.mxu1 }
 0xd29   :  { %v2745_v62 = vmul.f32 %v2737_v34, %v2737_v34  ;;  %v2732_v61 = vadd.f32 %v5991_v26, %v2731_v9  ;;  %v5998_v26 = vld [vmem:[%s9784_s16] ss:$0 sm:$0xff] }
 0xd2b   :  { %v2751_v45 = vmul.f32 %v2745_v62, %v2737_v34  ;;  %v2744_v6 = vmul.f32 %v2732_v61, %v2732_v61 }
 0xd2d   :  { %v2757_v39 = vmul.f32 0.044715, %v2751_v45  ;;  %v2750_v41 = vmul.f32 %v2744_v6, %v2732_v61 }
 0xd2f   :  { %v2763_v29 = vadd.f32 %v2757_v39, %v2737_v34  ;;  %v2756_v58 = vmul.f32 0.044715, %v2750_v41 }
 0xd31   :  { %v2769_v20 = vmul.f32 0.7978846, %v2763_v29  ;;  %v2762_v27 = vadd.f32 %v2756_v58, %v2732_v61 }
 0xd33   :  { %7323 = vtanh.f32 %v2769_v20  ;;  %v2768_v57 = vmul.f32 0.7978846, %v2762_v27 }
 0xd35   :  { %7325 = vtanh.f32 %v2768_v57 }
 0xd40   :  { %v7324_v30 = vpop.eup %7323 }
 0xd41   :  { %v2781_v1 = vadd.f32 1.0, %v7324_v30 }
 0xd42   :  { %v7326_v59 = vpop.eup %7325 }
 0xd43   :  { %v2780_v33 = vadd.f32 1.0, %v7326_v59  ;;  %v2787_v35 = vmul.f32 0.5, %v2781_v1 }
 0xd45   :  { %v2786_v12 = vmul.f32 0.5, %v2780_v33  ;;  %v2793_v24 = vmul.f32 %v2787_v35, %v2737_v34 }
 0xd47   :  { %v2792_v43 = vmul.f32 %v2786_v12, %v2732_v61 }
 0xd49   :  { %6831 = vmatprep.mubr.f32.mxu0 %v2792_v43 }
 0xd4a   :  { %6832 = vmatmul.mubr.f32.gmra.mxu0 %v2793_v24 }
 0xd4b   :  { %6887 = vmatprep.mubr.msk.f32.mxu0 %vm7473_vm2, %v7471_v49 }
 0xda0   :  { %v6827_v31 = vpop.f32.mrf.mxu0 }
 0xda1   :  { %v2889_v5 = vadd.f32 %v6827_v31, %v5998_v26 }
 0xda2   :  { %v2883_v50 = vpop.f32.mrf.mxu0 }
 0xda3   :  { %v8684_v7 = vadd.f32 %v2889_v5, %v8535_v54  ;;  %v2884_v15 = vadd.f32 %v5998_v26, %v2883_v50 }
 0xda5   :  { %v8687_v60 = vadd.f32 %v2884_v15, %v8538_v3  ;;  %v2925_v46 = vsel %vm199_vm1, %v8684_v7, 0.0  ;;  %v6001_v15 = vld [vmem:[%s9826_s27 + $0x1] ss:$0 sm:$0xff] }
 0xda6   :  { %2926 = vadd.xlane.f32.xlu1 %v2925_v46 }
 0xda7   :  { %v2922_v0 = vsel %vm199_vm1, %v8687_v60, 0.0 }
 0xda8   :  { %2923 = vadd.xlane.f32.xlu0 %v2922_v0 }
 0xdd5   :  { %v6830_v63 = vpop.f32.mrf.mxu0 }
 0xdd6   :  { %v2899_v42 = vadd.f32 %v6830_v63, %v5998_v26 }
 0xdd7   :  { %v2893_v13 = vpop.f32.mrf.mxu0 }
 0xdd8   :  { %v8694_v23 = vadd.f32 %v2899_v42, %v8548_v17  ;;  %v2894_v54 = vadd.f32 %v5998_v26, %v2893_v13  ;;  %v6002_v13 = vld [vmem:[%s9827_s30 + $0x1] ss:$0 sm:$0xff] }
 0xdda   :  { %v8697_v52 = vadd.f32 %v2894_v54, %v8546_v47  ;;  %v2931_v3 = vsel %vm199_vm1, %v8694_v23, 0.0 }
 0xddb   :  { %2932 = vadd.xlane.f32.xlu1 %v2931_v3 }
 0xddc   :  { %v2928_v44 = vsel %vm199_vm1, %v8697_v52, 0.0 }
 0xddd   :  { %2929 = vadd.xlane.f32.xlu0 %v2928_v44 }
 0xe0a   :  { %v6833_v56 = vpop.f32.mrf.mxu0 }
 0xe0b   :  { %v2909_v48 = vadd.f32 %v6833_v56, %v5998_v26 }
 0xe0c   :  { %v2903_v8 = vpop.f32.mrf.mxu0 }
 0xe0d   :  { %v8704_v11 = vadd.f32 %v2909_v48, %v8555_v14  ;;  %v2904_v17 = vadd.f32 %v5998_v26, %v2903_v8 }
 0xe0f   :  { %v8707_v55 = vadd.f32 %v2904_v17, %v8558_v32  ;;  %v2937_v47 = vsel %vm199_vm1, %v8704_v11, 0.0 }
 0xe10   :  { %2938 = vadd.xlane.f32.xlu1 %v2937_v47 }
 0xe11   :  { %v2934_v21 = vsel %vm199_vm1, %v8707_v55, 0.0 }
 0xe12   :  { %2935 = vadd.xlane.f32.xlu0 %v2934_v21 }
 0xe2f   :  { %v2927_v25 = vpop.xlane.xlu1 %2926 }
 0xe30   :  { %v2941_v36 = vmul.f32 0.03125, %v2927_v25 }
 0xe31   :  { %v2924_v40 = vpop.xlane.xlu0 %2923 }
 0xe32   :  { %v2947_v28 = vsub.f32 %v8684_v7, %v2941_v36  ;;  %v2940_v16 = vmul.f32 0.03125, %v2924_v40 }
 0xe34   :  { %v2946_v14 = vsub.f32 %v8687_v60, %v2940_v16  ;;  %v2953_v37 = vmul.f32 %v2947_v28, %v2947_v28 }
 0xe36   :  { %v2961_v32 = vsel %vm199_vm1, %v2953_v37, 0.0  ;;  %v2952_v53 = vmul.f32 %v2946_v14, %v2946_v14 }
 0xe37   :  { %2962 = vadd.xlane.f32.xlu1 %v2961_v32 }
 0xe38   :  { %v2958_v38 = vsel %vm199_vm1, %v2952_v53, 0.0 }
 0xe39   :  { %2959 = vadd.xlane.f32.xlu0 %v2958_v38 }
 0xe64   :  { %v2933_v10 = vpop.xlane.xlu1 %2932 }
 0xe65   :  { %v2943_v19 = vmul.f32 0.03125, %v2933_v10 }
 0xe66   :  { %v2930_v34 = vpop.xlane.xlu0 %2929 }
 0xe67   :  { %v2949_v9 = vsub.f32 %v8694_v23, %v2943_v19  ;;  %v2942_v62 = vmul.f32 0.03125, %v2930_v34 }
 0xe69   :  { %v2948_v61 = vsub.f32 %v8697_v52, %v2942_v62  ;;  %v2955_v45 = vmul.f32 %v2949_v9, %v2949_v9 }
 0xe6b   :  { %v2967_v6 = vsel %vm199_vm1, %v2955_v45, 0.0  ;;  %v2954_v39 = vmul.f32 %v2948_v61, %v2948_v61 }
 0xe6c   :  { %2968 = vadd.xlane.f32.xlu1 %v2967_v6 }
 0xe6d   :  { %v2964_v41 = vsel %vm199_vm1, %v2954_v39, 0.0  ;;  %v6008_v39 = vld [vmem:[%s9776_s8 + $0x1] ss:$0 sm:$0xff]  ;;  %s9828_s8 = smov 72  }
 0xe6e   :  { %2965 = vadd.xlane.f32.xlu0 %v2964_v41 }
 0xe99   :  { %v2939_v29 = vpop.xlane.xlu1 %2938 }
 0xe9a   :  { %v2945_v58 = vmul.f32 0.03125, %v2939_v29 }
 0xe9b   :  { %v2936_v20 = vpop.xlane.xlu0 %2935 }
 0xe9c   :  { %v2951_v27 = vsub.f32 %v8704_v11, %v2945_v58  ;;  %v2944_v57 = vmul.f32 0.03125, %v2936_v20 }
 0xe9e   :  { %v2950_v30 = vsub.f32 %v8707_v55, %v2944_v57  ;;  %v2957_v1 = vmul.f32 %v2951_v27, %v2951_v27 }
 0xea0   :  { %v2973_v59 = vsel %vm199_vm1, %v2957_v1, 0.0  ;;  %v2956_v33 = vmul.f32 %v2950_v30, %v2950_v30 }
 0xea1   :  { %2974 = vadd.xlane.f32.xlu1 %v2973_v59 }
 0xea2   :  { %v2970_v35 = vsel %vm199_vm1, %v2956_v33, 0.0 }
 0xea3   :  { %2971 = vadd.xlane.f32.xlu0 %v2970_v35 }
 0xec0   :  { %v2963_v12 = vpop.xlane.xlu1 %2962 }
 0xec1   :  { %v2977_v43 = vmul.f32 0.03125, %v2963_v12 }
 0xec2   :  { %v2960_v24 = vpop.xlane.xlu0 %2959 }
 0xec3   :  { %v2983_v26 = vadd.f32 1e-06, %v2977_v43  ;;  %v2976_v31 = vmul.f32 0.03125, %v2960_v24 }
 0xec5   :  { %7327 = vrsqrt.f32 %v2983_v26  ;;  %v2982_v5 = vadd.f32 1e-06, %v2976_v31 }
 0xec7   :  { %7329 = vrsqrt.f32 %v2982_v5 }
 0xed2   :  { %v7328_v50 = vpop.eup %7327 }
 0xed3   :  { %v2995_v46 = vmul.f32 %v7328_v50, %v2947_v28 }
 0xed4   :  { %v7330_v0 = vpop.eup %7329 }
 0xed5   :  { %v2994_v63 = vmul.f32 %v7330_v0, %v2946_v14  ;;  %v3007_v42 = vmul.f32 %v6001_v15, %v2995_v46 }
 0xed7   :  { %v3006_v54 = vmul.f32 %v6001_v15, %v2994_v63  ;;  %v3019_v44 = vadd.f32 %v6002_v13, %v3007_v42 }
 0xed9   :  { %v3018_v3 = vadd.f32 %v6002_v13, %v3006_v54 }
 0xedb   :  { %6842 = vmatprep.mubr.msk.f32.mxu1 %vm199_vm1, %v3018_v3 }
 0xedc   :  { %6843 = vmatmul.mubr.msk.f32.vlgmr.msra.gmra.mxu1 %vm199_vm1, %v3019_v44 }
 0xef5   :  { %v2969_v56 = vpop.xlane.xlu1 %2968 }
 0xef6   :  { %v2979_v48 = vmul.f32 0.03125, %v2969_v56 }
 0xef7   :  { %v2966_v8 = vpop.xlane.xlu0 %2965 }
 0xef8   :  { %v2985_v17 = vadd.f32 1e-06, %v2979_v48  ;;  %v2978_v47 = vmul.f32 0.03125, %v2966_v8 }
 0xefa   :  { %7331 = vrsqrt.f32 %v2985_v17  ;;  %v2984_v21 = vadd.f32 1e-06, %v2978_v47 }
 0xefc   :  { %7333 = vrsqrt.f32 %v2984_v21 }
 0xf07   :  { %v7332_v25 = vpop.eup %7331 }
 0xf08   :  { %v2997_v36 = vmul.f32 %v7332_v25, %v2949_v9 }
 0xf09   :  { %v7334_v40 = vpop.eup %7333 }
 0xf0a   :  { %v2996_v28 = vmul.f32 %v7334_v40, %v2948_v61  ;;  %v3009_v16 = vmul.f32 %v6001_v15, %v2997_v36 }
 0xf0c   :  { %v3008_v14 = vmul.f32 %v6001_v15, %v2996_v28  ;;  %v3021_v32 = vadd.f32 %v6002_v13, %v3009_v16 }
 0xf0e   :  { %v3020_v37 = vadd.f32 %v6002_v13, %v3008_v14 }
 0xf10   :  { %6845 = vmatprep.mubr.msk.f32.mxu1 %vm199_vm1, %v3020_v37 }
 0xf11   :  { %6846 = vmatmul.mubr.msk.f32.gmra.mxu1 %vm199_vm1, %v3021_v32 }
 0xf2a   :  { %v2975_v53 = vpop.xlane.xlu1 %2974 }
 0xf2b   :  { %v2981_v38 = vmul.f32 0.03125, %v2975_v53 }
 0xf2c   :  { %v2972_v22 = vpop.xlane.xlu0 %2971 }
 0xf2d   :  { %v2987_v51 = vadd.f32 1e-06, %v2981_v38  ;;  %v2980_v4 = vmul.f32 0.03125, %v2972_v22 }
 0xf2f   :  { %7335 = vrsqrt.f32 %v2987_v51  ;;  %v2986_v18 = vadd.f32 1e-06, %v2980_v4 }
 0xf31   :  { %7337 = vrsqrt.f32 %v2986_v18 }
 0xf3c   :  { %v7336_v10 = vpop.eup %7335 }
 0xf3d   :  { %v2999_v19 = vmul.f32 %v7336_v10, %v2951_v27 }
 0xf3e   :  { %v7338_v34 = vpop.eup %7337 }
 0xf3f   :  { %v2998_v9 = vmul.f32 %v7338_v34, %v2950_v30  ;;  %v3011_v62 = vmul.f32 %v6001_v15, %v2999_v19 }
 0xf41   :  { %v3010_v61 = vmul.f32 %v6001_v15, %v2998_v9  ;;  %v3023_v6 = vadd.f32 %v6002_v13, %v3011_v62 }
 0xf43   :  { %v3022_v45 = vadd.f32 %v6002_v13, %v3010_v61 }
 0xf45   :  { %6848 = vmatprep.mubr.msk.f32.mxu1 %vm199_vm1, %v3022_v45 }
 0xf46   :  { %6849 = vmatmul.mubr.msk.f32.gmra.mxu1 %vm199_vm1, %v3023_v6 }
 0xf47   :  { %6857 = vmatprep.mubr.msk.f32.mxu1 %vm7473_vm2, %v7471_v49 }
 0xf9c   :  { %v6844_v41 = vpop.f32.mrf.mxu1 }
 0xf9d   :  { %v8755_v29 = vadd.f32 %v6844_v41, %v6008_v39 }
 0xf9e   :  { %v3121_v58 = vpop.f32.mrf.mxu1 }
 0xf9f   :  { %3155 = vrot.lane.b32.xlu1 %v8755_v29, %s7472_s4  ;;  %v8759_v20 = vadd.f32 %v6008_v39, %v3121_v58 }
 0xfa3   :  { %3153 = vrot.lane.b32.xlu1 %v8759_v20, %s7472_s4 }
 0xfd1   :  { %v6847_v27 = vpop.f32.mrf.mxu1 }
 0xfd2   :  { %v8809_v35 = vadd.f32 %v6847_v27, %v6008_v39 }
 0xfd3   :  { %v3131_v57 = vpop.f32.mrf.mxu1 }
 0xfd4   :  { %v8763_v30 = vadd.f32 %v6008_v39, %v3131_v57 }
 0xfd6   :  { %3392 = vrot.lane.b32.xlu1 %v8763_v30, %s7475_s28  ;;  %3157 = vrot.lane.b32.xlu0 %v8763_v30, %s7472_s4 }
 0xfda   :  { %3388 = vrot.lane.b32.xlu1 %v8759_v20, %s7475_s28  ;;  %3390 = vrot.lane.b32.xlu0 %v8755_v29, %s7475_s28 }
 0xfde   :  { %3627 = vrot.lane.b32.xlu1 %v8763_v30, %s7478_s29  ;;  %3382 = vrot.lane.b32.xlu0 %v8759_v20, %s7477_s3 }
 0xfe2   :  { %3625 = vrot.lane.b32.xlu1 %v8755_v29, %s7478_s29  ;;  %3384 = vrot.lane.b32.xlu0 %v8755_v29, %s7477_s3 }
 0xfe6   :  { %3623 = vrot.lane.b32.xlu1 %v8759_v20, %s7478_s29  ;;  %3386 = vrot.lane.b32.xlu0 %v8763_v30, %s7477_s3 }
 0xfea   :  { %3862 = vrot.lane.b32.xlu1 %v8763_v30, %s9828_s8  ;;  %3617 = vrot.lane.b32.xlu0 %v8759_v20, %s9829_s24 }
 0xfee   :  { %3860 = vrot.lane.b32.xlu1 %v8755_v29, %s9828_s8  ;;  %3619 = vrot.lane.b32.xlu0 %v8755_v29, %s9829_s24 }
 0xff2   :  { %3858 = vrot.lane.b32.xlu1 %v8759_v20, %s9828_s8  ;;  %3621 = vrot.lane.b32.xlu0 %v8763_v30, %s9829_s24 }
 0xff6   :  { %3852 = vrot.lane.b32.xlu0 %v8759_v20, %s9830_s25 }
 0xffa   :  { %3854 = vrot.lane.b32.xlu0 %v8755_v29, %s9830_s25 }
 0xffe   :  { %3856 = vrot.lane.b32.xlu0 %v8763_v30, %s9830_s25 }
0x1006   :  { %v6850_v1 = vpop.f32.mrf.mxu1 }
0x1007   :  { %v8803_v59 = vadd.f32 %v6850_v1, %v6008_v39 }
0x1008   :  { %v3141_v33 = vpop.f32.mrf.mxu1 }
0x1009   :  { %4374 = vrot.lane.b32.xlu0 %v8803_v59, %s7475_s28  ;;  %4139 = vrot.lane.b32.xlu1 %v8803_v59, %s7472_s4  ;;  %v8811_v12 = vadd.f32 %v6008_v39, %v3141_v33 }
0x100d   :  { %4370 = vrot.lane.b32.xlu0 %v8809_v35, %s7475_s28  ;;  %4137 = vrot.lane.b32.xlu1 %v8811_v12, %s7472_s4 }
0x1011   :  { %4609 = vrot.lane.b32.xlu0 %v8803_v59, %s7478_s29  ;;  %4135 = vrot.lane.b32.xlu1 %v8809_v35, %s7472_s4  ;;  %s9831_s4 = smov 64   ;;  %v3156_v43 = vpop.permute.xlu1 %3155 }
0x1015   :  { %4607 = vrot.lane.b32.xlu0 %v8811_v12, %s7478_s29  ;;  %4372 = vrot.lane.b32.xlu1 %v8811_v12, %s7475_s28  ;;  %s9832_s28 = smov 56   ;;  %v3154_v24 = vpop.permute.xlu1 %3153 }
0x1019   :  { %4605 = vrot.lane.b32.xlu0 %v8809_v35, %s7478_s29  ;;  %4364 = vrot.lane.b32.xlu1 %v8809_v35, %s7477_s3  ;;  %s9834_s29 = smov 40  }
0x101d   :  { %4844 = vrot.lane.b32.xlu0 %v8803_v59, %s9828_s8  ;;  %4366 = vrot.lane.b32.xlu1 %v8811_v12, %s7477_s3 }
0x1021   :  { %4842 = vrot.lane.b32.xlu0 %v8811_v12, %s9828_s8  ;;  %4368 = vrot.lane.b32.xlu1 %v8803_v59, %s7477_s3  ;;  %s9833_s3 = smov 48  }
0x1025   :  { %4840 = vrot.lane.b32.xlu0 %v8809_v35, %s9828_s8  ;;  %4599 = vrot.lane.b32.xlu1 %v8809_v35, %s9829_s24  ;;  %s9836_s8 = smov 24  }
0x1029   :  { %4836 = vrot.lane.b32.xlu0 %v8811_v12, %s9830_s25  ;;  %4601 = vrot.lane.b32.xlu1 %v8811_v12, %s9829_s24 }
0x102d   :  { %3288 = vrot.lane.b32.xlu0 %v8763_v30, %s9831_s4  ;;  %4603 = vrot.lane.b32.xlu1 %v8803_v59, %s9829_s24 }
0x1031   :  { %3523 = vrot.lane.b32.xlu0 %v8763_v30, %s9832_s28  ;;  %4834 = vrot.lane.b32.xlu1 %v8809_v35, %s9830_s25 }
0x1035   :  { %3519 = vrot.lane.b32.xlu0 %v8759_v20, %s9832_s28  ;;  %4838 = vrot.lane.b32.xlu1 %v8803_v59, %s9830_s25 }
0x1039   :  { %3758 = vrot.lane.b32.xlu0 %v8763_v30, %s9833_s3  ;;  %3286 = vrot.lane.b32.xlu1 %v8755_v29, %s9831_s4 }
0x103d   :  { %3754 = vrot.lane.b32.xlu0 %v8759_v20, %s9833_s3  ;;  %3284 = vrot.lane.b32.xlu1 %v8759_v20, %s9831_s4 }
0x1041   :  { %3993 = vrot.lane.b32.xlu0 %v8763_v30, %s9834_s29  ;;  %3521 = vrot.lane.b32.xlu1 %v8755_v29, %s9832_s28 }
0x1045   :  { %3989 = vrot.lane.b32.xlu0 %v8759_v20, %s9834_s29  ;;  %3756 = vrot.lane.b32.xlu1 %v8755_v29, %s9833_s3 }
0x1048   :  { %v3393_v26 = vpop.permute.xlu1 %3392  ;;  %v3158_v31 = vpop.permute.xlu0 %3157 }
0x1049   :  { %6882 = vmatpush3.xpose.msk.msra.mxu0 %vm418_vm3, %v3393_v26  ;;  %4270 = vrot.lane.b32.xlu0 %v8803_v59, %s9831_s4 }
0x104a   :  { %3991 = vrot.lane.b32.xlu1 %v8755_v29, %s9834_s29  ;;  %6852 = vmatpush3.xpose.msk.msra.mxu1 %vm418_vm3, %v3158_v31 }
0x104b   :  { %6883 = vmatprep.subr.mxu0 %v7471_v49  ;;  %6853 = vmatprep.subr.mxu1 %v7471_v49 }
0x104c   :  { %v3389_v5 = vpop.permute.xlu1 %3388  ;;  %v3391_v50 = vpop.permute.xlu0 %3390 }
0x104d   :  { %4266 = vrot.lane.b32.xlu0 %v8809_v35, %s9831_s4  ;;  %6884 = vmatpush3.xpose.msk.msra.mxu0 %vm418_vm3, %v3391_v50 }
0x104e   :  { %4268 = vrot.lane.b32.xlu1 %v8811_v12, %s9831_s4  ;;  %6854 = vmatpush3.xpose.msk.msra.mxu1 %vm418_vm3, %v3156_v43 }
0x104f   :  { %6855 = vmatprep.subr.mxu1 %v7471_v49  ;;  %6885 = vmatprep.subr.mxu0 %v7471_v49 }
0x1050   :  { %v3628_v15 = vpop.permute.xlu1 %3627  ;;  %v3383_v46 = vpop.permute.xlu0 %3382 }
0x1051   :  { %4505 = vrot.lane.b32.xlu0 %v8803_v59, %s9832_s28  ;;  %6886 = vmatpush3.xpose.msk.msra.mxu0 %vm418_vm3, %v3389_v5 }
0x1052   :  { %4503 = vrot.lane.b32.xlu1 %v8811_v12, %s9832_s28  ;;  %6856 = vmatpush3.xpose.msk.msra.mxu1 %vm418_vm3, %v3154_v24 }
0x1053   :  { %6911 = vmatprep.subr.mxu0 %v7471_v49  ;;  %6866 = vmatprep.subr.mxu1 %v7471_v49 }
0x1054   :  { %v3626_v0 = vpop.permute.xlu1 %3625  ;;  %6888 = vmatmul.mubr.msk.f32.vlgmr.msra.gmra.mxu0 %vm418_vm3, %v3383_v46  ;;  %v3385_v63 = vpop.permute.xlu0 %3384 }
0x1055   :  { %6858 = vmatmul.mubr.msk.f32.vlgmr.msra.gmra.mxu1 %vm418_vm3, %v8759_v20  ;;  %4501 = vrot.lane.b32.xlu0 %v8809_v35, %s9832_s28 }
0x1056   :  { %6912 = vmatpush3.xpose.msk.msra.mxu0 %vm418_vm3, %v3628_v15  ;;  %6860 = vmatprep.mubr.msk.f32.mxu1 %vm7473_vm2, %v7471_v49 }
0x1057   :  { %6890 = vmatprep.mubr.msk.f32.mxu0 %vm7473_vm2, %v7471_v49  ;;  %6913 = vmatprep.subr.mxu0 %v7471_v49 }
0x1058   :  { %v3624_v42 = vpop.permute.xlu1 %3623  ;;  %6891 = vmatmul.mubr.msk.f32.gmra.mxu0 %vm418_vm3, %v3385_v63  ;;  %v3387_v13 = vpop.permute.xlu0 %3386 }
0x1059   :  { %6861 = vmatmul.mubr.msk.f32.gmra.mxu1 %vm418_vm3, %v8755_v29  ;;  %6893 = vmatprep.mubr.msk.f32.mxu0 %vm7473_vm2, %v7471_v49 }
0x105a   :  { %6914 = vmatpush3.xpose.msk.msra.mxu0 %vm418_vm3, %v3626_v0  ;;  %6863 = vmatprep.mubr.msk.f32.mxu1 %vm7473_vm2, %v7471_v49 }
0x105b   :  { %6915 = vmatprep.subr.mxu0 %v7471_v49 }
0x105c   :  { %6894 = vmatmul.mubr.msk.f32.gmra.mxu0 %vm418_vm3, %v3387_v13  ;;  %v3618_v54 = vpop.permute.xlu0 %3617  ;;  %v3863_v3 = vpop.permute.xlu1 %3862 }
0x105d   :  { %6864 = vmatmul.mubr.msk.f32.gmra.mxu1 %vm418_vm3, %v8763_v30  ;;  %6917 = vmatprep.mubr.msk.f32.mxu0 %vm7473_vm2, %v7471_v49 }
0x105e   :  { %6916 = vmatpush3.xpose.msk.msra.mxu0 %vm418_vm3, %v3624_v42  ;;  %6872 = vmatprep.mubr.msk.f32.mxu1 %vm7473_vm2, %v7471_v49 }
0x105f   :  { %6941 = vmatprep.subr.mxu0 %v7471_v49 }
0x1060   :  { %v3620_v44 = vpop.permute.xlu0 %3619  ;;  %v3861_v56 = vpop.permute.xlu1 %3860 }
0x1061   :  { %6918 = vmatmul.mubr.msk.f32.vlgmr.msra.gmra.mxu0 %vm418_vm3, %v3618_v54 }
0x1062   :  { %6942 = vmatpush3.xpose.msk.msra.mxu0 %vm418_vm3, %v3863_v3  ;;  %6920 = vmatprep.mubr.msk.f32.mxu0 %vm7473_vm2, %v7471_v49 }
0x1063   :  { %6943 = vmatprep.subr.mxu0 %v7471_v49 }
0x1064   :  { %v3622_v48 = vpop.permute.xlu0 %3621  ;;  %v3859_v17 = vpop.permute.xlu1 %3858 }
0x1065   :  { %6921 = vmatmul.mubr.msk.f32.gmra.mxu0 %vm418_vm3, %v3620_v44 }
0x1066   :  { %6944 = vmatpush3.xpose.msk.msra.mxu0 %vm418_vm3, %v3861_v56  ;;  %6923 = vmatprep.mubr.msk.f32.mxu0 %vm7473_vm2, %v7471_v49 }
0x1067   :  { %6945 = vmatprep.subr.mxu0 %v7471_v49 }
0x1068   :  { %v3853_v8 = vpop.permute.xlu0 %3852 }
0x1069   :  { %6924 = vmatmul.mubr.msk.f32.gmra.mxu0 %vm418_vm3, %v3622_v48 }
0x106a   :  { %6946 = vmatpush3.xpose.msk.msra.mxu0 %vm418_vm3, %v3859_v17  ;;  %6947 = vmatprep.mubr.msk.f32.mxu0 %vm7473_vm2, %v7471_v49 }
0x106b   :  { %6971 = vmatprep.subr.mxu0 %v7471_v49 }
0x106c   :  { %v3855_v47 = vpop.permute.xlu0 %3854 }
0x106d   :  { %6948 = vmatmul.mubr.msk.f32.vlgmr.msra.gmra.mxu0 %vm418_vm3, %v3853_v8 }
0x106e   :  { %6950 = vmatprep.mubr.msk.f32.mxu0 %vm7473_vm2, %v7471_v49 }
0x1070   :  { %v3857_v21 = vpop.permute.xlu0 %3856 }
0x1071   :  { %6951 = vmatmul.mubr.msk.f32.gmra.mxu0 %vm418_vm3, %v3855_v47 }
0x1072   :  { %6953 = vmatprep.mubr.msk.f32.mxu0 %vm7473_vm2, %v7471_v49 }
0x1075   :  { %6954 = vmatmul.mubr.msk.f32.gmra.mxu0 %vm418_vm3, %v3857_v21 }
0x1076   :  { %6977 = vmatprep.mubr.msk.f32.mxu0 %vm7473_vm2, %v7471_v49 }
0x107b   :  { %v4140_v25 = vpop.permute.xlu1 %4139  ;;  %v4375_v36 = vpop.permute.xlu0 %4374 }
0x107c   :  { %6972 = vmatpush3.xpose.msk.msra.mxu0 %vm418_vm3, %v4140_v25 }
0x107d   :  { %6973 = vmatprep.subr.mxu0 %v7471_v49 }
0x107f   :  { %v4138_v40 = vpop.permute.xlu1 %4137  ;;  %v4371_v28 = vpop.permute.xlu0 %4370 }
0x1080   :  { %6974 = vmatpush3.xpose.msk.msra.mxu0 %vm418_vm3, %v4138_v40 }
0x1081   :  { %6975 = vmatprep.subr.mxu0 %v7471_v49 }
0x1083   :  { %v4136_v16 = vpop.permute.xlu1 %4135  ;;  %v4610_v14 = vpop.permute.xlu0 %4609 }
0x1084   :  { %6976 = vmatpush3.xpose.msk.msra.mxu0 %vm418_vm3, %v4136_v16 }
0x1085   :  { %7001 = vmatprep.subr.mxu0 %v7471_v49 }
0x1087   :  { %v4373_v37 = vpop.permute.xlu1 %4372  ;;  %6978 = vmatmul.mubr.msk.f32.vlgmr.msra.gmra.mxu0 %vm418_vm3, %v8809_v35  ;;  %v4608_v32 = vpop.permute.xlu0 %4607 }
0x1088   :  { %7002 = vmatpush3.xpose.msk.msra.mxu0 %vm418_vm3, %v4375_v36  ;;  %6980 = vmatprep.mubr.msk.f32.mxu0 %vm7473_vm2, %v7471_v49 }
0x1089   :  { %7003 = vmatprep.subr.mxu0 %v7471_v49 }
0x108b   :  { %v4365_v53 = vpop.permute.xlu1 %4364  ;;  %6981 = vmatmul.mubr.msk.f32.gmra.mxu0 %vm418_vm3, %v8811_v12  ;;  %v4606_v38 = vpop.permute.xlu0 %4605 }
0x108c   :  { %7004 = vmatpush3.xpose.msk.msra.mxu0 %vm418_vm3, %v4373_v37  ;;  %6983 = vmatprep.mubr.msk.f32.mxu0 %vm7473_vm2, %v7471_v49 }
0x108d   :  { %7005 = vmatprep.subr.mxu0 %v7471_v49 }
0x108f   :  { %v4367_v22 = vpop.permute.xlu1 %4366  ;;  %6984 = vmatmul.mubr.msk.f32.gmra.mxu0 %vm418_vm3, %v8803_v59  ;;  %v4845_v51 = vpop.permute.xlu0 %4844 }
0x1090   :  { %7006 = vmatpush3.xpose.msk.msra.mxu0 %vm418_vm3, %v4371_v28  ;;  %7007 = vmatprep.mubr.msk.f32.mxu0 %vm7473_vm2, %v7471_v49 }
0x1091   :  { %7031 = vmatprep.subr.mxu0 %v7471_v49 }
0x1093   :  { %v4369_v4 = vpop.permute.xlu1 %4368  ;;  %7008 = vmatmul.mubr.msk.f32.vlgmr.msra.gmra.mxu0 %vm418_vm3, %v4365_v53  ;;  %v4843_v18 = vpop.permute.xlu0 %4842 }
0x1094   :  { %7032 = vmatpush3.xpose.msk.msra.mxu0 %vm418_vm3, %v4610_v14  ;;  %7010 = vmatprep.mubr.msk.f32.mxu0 %vm7473_vm2, %v7471_v49 }
0x1095   :  { %7033 = vmatprep.subr.mxu0 %v7471_v49 }
0x1097   :  { %v4600_v10 = vpop.permute.xlu1 %4599  ;;  %7011 = vmatmul.mubr.msk.f32.gmra.mxu0 %vm418_vm3, %v4367_v22  ;;  %v4841_v19 = vpop.permute.xlu0 %4840 }
0x1098   :  { %7034 = vmatpush3.xpose.msk.msra.mxu0 %vm418_vm3, %v4608_v32  ;;  %7013 = vmatprep.mubr.msk.f32.mxu0 %vm7473_vm2, %v7471_v49 }
0x1099   :  { %7035 = vmatprep.subr.mxu0 %v7471_v49 }
0x109b   :  { %v4602_v34 = vpop.permute.xlu1 %4601  ;;  %7014 = vmatmul.mubr.msk.f32.gmra.mxu0 %vm418_vm3, %v4369_v4  ;;  %v4837_v9 = vpop.permute.xlu0 %4836 }
0x109c   :  { %7036 = vmatpush3.xpose.msk.msra.mxu0 %vm418_vm3, %v4606_v38  ;;  %7037 = vmatprep.mubr.msk.f32.mxu0 %vm7473_vm2, %v7471_v49 }
0x109d   :  { %7061 = vmatprep.subr.mxu0 %v7471_v49 }
0x109f   :  { %v4604_v62 = vpop.permute.xlu1 %4603  ;;  %7038 = vmatmul.mubr.msk.f32.vlgmr.msra.gmra.mxu0 %vm418_vm3, %v4600_v10  ;;  %v3289_v61 = vpop.permute.xlu0 %3288 }
0x10a0   :  { %6867 = vmatpush3.msra.mxu1 %v3289_v61  ;;  %7062 = vmatpush3.xpose.msk.msra.mxu0 %vm418_vm3, %v4845_v51 }
0x10a1   :  { %7040 = vmatprep.mubr.msk.f32.mxu0 %vm7473_vm2, %v7471_v49  ;;  %7063 = vmatprep.subr.mxu0 %v7471_v49 }
0x10a2   :  { %6868 = vmatprep.subr.mxu1 %v7471_v49 }
0x10a3   :  { %v4835_v45 = vpop.permute.xlu1 %4834  ;;  %7041 = vmatmul.mubr.msk.f32.gmra.mxu0 %vm418_vm3, %v4602_v34 }
0x10a4   :  { %7064 = vmatpush3.xpose.msk.msra.mxu0 %vm418_vm3, %v4843_v18  ;;  %7043 = vmatprep.mubr.msk.f32.mxu0 %vm7473_vm2, %v7471_v49 }
0x10a5   :  { %7065 = vmatprep.subr.mxu0 %v7471_v49 }
0x10a7   :  { %v4839_v6 = vpop.permute.xlu1 %4838  ;;  %7044 = vmatmul.mubr.msk.f32.gmra.mxu0 %vm418_vm3, %v4604_v62 }
0x10a8   :  { %7066 = vmatpush3.xpose.msk.msra.mxu0 %vm418_vm3, %v4841_v19  ;;  %7067 = vmatprep.mubr.msk.f32.mxu0 %vm7473_vm2, %v7471_v49 }
0x10ab   :  { %v3287_v39 = vpop.permute.xlu1 %3286  ;;  %7068 = vmatmul.mubr.msk.f32.vlgmr.msra.gmra.mxu0 %vm418_vm3, %v4835_v45 }
0x10ac   :  { %6869 = vmatpush3.msra.mxu1 %v3287_v39  ;;  %7070 = vmatprep.mubr.msk.f32.mxu0 %vm7473_vm2, %v7471_v49 }
0x10ad   :  { %6870 = vmatprep.subr.mxu1 %v7471_v49 }
0x10af   :  { %v3285_v41 = vpop.permute.xlu1 %3284  ;;  %7071 = vmatmul.mubr.msk.f32.gmra.mxu0 %vm418_vm3, %v4837_v9 }
0x10b0   :  { %6871 = vmatpush3.msra.mxu1 %v3285_v41  ;;  %7073 = vmatprep.mubr.msk.f32.mxu0 %vm7473_vm2, %v7471_v49 }
0x10b1   :  { %6896 = vmatprep.subr.mxu1 %v7471_v49 }
0x10b3   :  { %7074 = vmatmul.mubr.msk.f32.gmra.mxu0 %vm418_vm3, %v4839_v6 }
0x1114   :  { %v3472_v29 = vpop.f32.mrf.mxu0 }
0x1115   :  { %v3237_v58 = vpop.f32.mrf.mxu1  ;;  %v9017_v30 = vadd.f32 %v3472_v29, %v7797_v2 }
0x1116   :  { %v9014_v20 = vadd.f32 %v3237_v58, %v7797_v2  ;;  %v6889_v27 = vpop.f32.mrf.mxu0 }
0x1117   :  { %v6859_v57 = vpop.f32.mrf.mxu1  ;;  %v3486_v15 = vsel %vm511_vm7, %v9017_v30, -inf }
0x1118   :  { %v3251_v1 = vsel %vm511_vm7, %v9014_v20, -inf  ;;  %v3477_v33 = vpop.f32.mrf.mxu0 }
0x1119   :  { %3252 = vmax.xlane.f32.xlu0 %v3251_v1  ;;  %v3242_v43 = vpop.f32.mrf.mxu1  ;;  %v9025_v5 = vadd.f32 %v3477_v33, %v7797_v2 }
0x111a   :  { %v9022_v24 = vadd.f32 %v3242_v43, %v7797_v2  ;;  %v6892_v26 = vpop.f32.mrf.mxu0 }
0x111b   :  { %v6862_v31 = vpop.f32.mrf.mxu1  ;;  %v3489_v44 = vsel %vm511_vm7, %v9025_v5, -inf }
0x111c   :  { %v3254_v50 = vsel %vm511_vm7, %v9022_v24, -inf  ;;  %v3482_v46 = vpop.f32.mrf.mxu0 }
0x111d   :  { %3255 = vmax.xlane.f32.xlu1 %v3254_v50  ;;  %v3247_v0 = vpop.f32.mrf.mxu1  ;;  %3487 = vmax.xlane.f32.xlu0 %v3486_v15  ;;  %v9032_v63 = vadd.f32 %v3482_v46, %v7797_v2 }
0x111e   :  { %v6895_v42 = vpop.f32.mrf.mxu0  ;;  %v9037_v3 = vadd.f32 %v3247_v0, %v7797_v2 }
0x111f   :  { %v6865_v13 = vpop.f32.mrf.mxu1  ;;  %v3492_v54 = vsel %vm511_vm7, %v9032_v63, -inf }
0x1120   :  { %v3257_v17 = vsel %vm511_vm7, %v9037_v3, -inf }
0x1121   :  { %3490 = vmax.xlane.f32.xlu0 %v3489_v44  ;;  %3493 = vmax.xlane.f32.xlu1 %v3492_v54  ;;  %v3707_v56 = vpop.f32.mrf.mxu0 }
0x1122   :  { %v9042_v8 = vadd.f32 %v3707_v56, %v7797_v2 }
0x1123   :  { %v6919_v48 = vpop.f32.mrf.mxu0 }
0x1124   :  { %v3721_v36 = vsel %vm511_vm7, %v9042_v8, -inf }
0x1125   :  { %3258 = vmax.xlane.f32.xlu0 %v3257_v17  ;;  %v3712_v47 = vpop.f32.mrf.mxu0 }
0x1126   :  { %v9047_v21 = vadd.f32 %v3712_v47, %v7797_v2 }
0x1127   :  { %v6922_v25 = vpop.f32.mrf.mxu0 }
0x1128   :  { %v3724_v40 = vsel %vm511_vm7, %v9047_v21, -inf }
0x1129   :  { %3722 = vmax.xlane.f32.xlu0 %v3721_v36  ;;  %3725 = vmax.xlane.f32.xlu1 %v3724_v40  ;;  %v3717_v28 = vpop.f32.mrf.mxu0 }
0x112a   :  { %v9054_v16 = vadd.f32 %v3717_v28, %v7797_v2 }
0x112b   :  { %v6925_v14 = vpop.f32.mrf.mxu0 }
0x112c   :  { %v3727_v37 = vsel %vm511_vm7, %v9054_v16, -inf }
0x112d   :  { %3728 = vmax.xlane.f32.xlu0 %v3727_v37  ;;  %v3942_v32 = vpop.f32.mrf.mxu0  ;;  %v9108_v37 = vpop.permute.xlu0 %3523 }
0x112e   :  { %v9059_v53 = vadd.f32 %v3942_v32, %v7797_v2 }
0x112f   :  { %v6949_v38 = vpop.f32.mrf.mxu0 }
0x1130   :  { %v3956_v22 = vsel %vm511_vm7, %v9059_v53, -inf }
0x1131   :  { %3957 = vmax.xlane.f32.xlu1 %v3956_v22  ;;  %v3947_v51 = vpop.f32.mrf.mxu0 }
0x1132   :  { %v9064_v4 = vadd.f32 %v3947_v51, %v7797_v2  ;;  %v9110_v51 = vpop.permute.xlu0 %3519 }
0x1133   :  { %v6952_v18 = vpop.f32.mrf.mxu0 }
0x1134   :  { %v3959_v10 = vsel %vm511_vm7, %v9064_v4, -inf }
0x1135   :  { %3960 = vmax.xlane.f32.xlu0 %v3959_v10  ;;  %v3952_v19 = vpop.f32.mrf.mxu0 }
0x1136   :  { %v9069_v34 = vadd.f32 %v3952_v19, %v7797_v2 }
0x1137   :  { %v6955_v9 = vpop.f32.mrf.mxu0 }
0x1138   :  { %v3962_v62 = vsel %vm511_vm7, %v9069_v34, -inf  ;;  %v9114_v9 = vpop.permute.xlu0 %3758 }
0x1139   :  { %3963 = vmax.xlane.f32.xlu1 %v3962_v62 }
0x1147   :  { %v4219_v61 = vpop.f32.mrf.mxu0 }
0x1148   :  { %v9074_v45 = vadd.f32 %v4219_v61, %v7797_v2  ;;  %v9118_v61 = vpop.permute.xlu0 %3754 }
0x1149   :  { %v6979_v6 = vpop.f32.mrf.mxu0 }
0x114a   :  { %v4233_v39 = vsel %vm511_vm7, %v9074_v45, -inf }
0x114b   :  { %4234 = vmax.xlane.f32.xlu0 %v4233_v39  ;;  %v4224_v41 = vpop.f32.mrf.mxu0 }
0x114c   :  { %v9079_v29 = vadd.f32 %v4224_v41, %v7797_v2  ;;  %v9120_v6 = vpop.permute.xlu0 %3993  ;;  %v9124_v41 = vpop.permute.xlu1 %3521 }
0x114d   :  { %v6982_v58 = vpop.f32.mrf.mxu0 }
0x114e   :  { %v4236_v27 = vsel %vm511_vm7, %v9079_v29, -inf }
0x114f   :  { %4237 = vmax.xlane.f32.xlu1 %v4236_v27  ;;  %v4229_v57 = vpop.f32.mrf.mxu0 }
0x1150   :  { %v9084_v1 = vadd.f32 %v4229_v57, %v7797_v2  ;;  %v9122_v39 = vpop.permute.xlu0 %3989  ;;  %v9131_v57 = vpop.permute.xlu1 %3756 }
0x1151   :  { %v6985_v33 = vpop.f32.mrf.mxu0 }
0x1152   :  { %v4239_v43 = vsel %vm511_vm7, %v9084_v1, -inf }
0x1153   :  { %4240 = vmax.xlane.f32.xlu0 %v4239_v43  ;;  %v4454_v26 = vpop.f32.mrf.mxu0 }
0x1154   :  { %v9089_v31 = vadd.f32 %v4454_v26, %v7797_v2  ;;  %v9126_v58 = vpop.permute.xlu0 %4270 }
0x1155   :  { %v7009_v50 = vpop.f32.mrf.mxu0 }
0x1156   :  { %v4468_v15 = vsel %vm511_vm7, %v9089_v31, -inf }
0x1157   :  { %4469 = vmax.xlane.f32.xlu1 %v4468_v15  ;;  %v4459_v46 = vpop.f32.mrf.mxu0  ;;  %v9143_v15 = vpop.permute.xlu1 %3991 }
0x1158   :  { %v9094_v0 = vadd.f32 %v4459_v46, %v7797_v2  ;;  %v9133_v33 = vpop.permute.xlu0 %4266 }
0x1159   :  { %v7012_v42 = vpop.f32.mrf.mxu0 }
0x115a   :  { %v4471_v13 = vsel %vm511_vm7, %v9094_v0, -inf }
0x115b   :  { %4472 = vmax.xlane.f32.xlu0 %v4471_v13  ;;  %v4464_v54 = vpop.f32.mrf.mxu0 }
0x115c   :  { %v9099_v44 = vadd.f32 %v4464_v54, %v7797_v2  ;;  %v9152_v54 = vpop.permute.xlu0 %4505 }
0x115d   :  { %v7015_v56 = vpop.f32.mrf.mxu0 }
0x115e   :  { %v4474_v48 = vsel %vm511_vm7, %v9099_v44, -inf }
0x115f   :  { %4475 = vmax.xlane.f32.xlu1 %v4474_v48  ;;  %v4689_v17 = vpop.f32.mrf.mxu0 }
0x1160   :  { %v9104_v47 = vadd.f32 %v4689_v17, %v7797_v2  ;;  %v9159_v17 = vpop.permute.xlu1 %4268 }
0x1161   :  { %v7039_v25 = vpop.f32.mrf.mxu0 }
0x1162   :  { %v4703_v36 = vsel %vm511_vm7, %v9104_v47, -inf  ;;  %v9161_v25 = vpop.permute.xlu0 %4501 }
0x1163   :  { %4704 = vmax.xlane.f32.xlu0 %v4703_v36  ;;  %v4694_v40 = vpop.f32.mrf.mxu0 }
0x1164   :  { %v9129_v27 = vadd.f32 %v4694_v40, %v7797_v2  ;;  %v9165_v40 = vpop.permute.xlu1 %4503 }
0x1165   :  { %v7042_v28 = vpop.f32.mrf.mxu0 }
0x1166   :  { %v4706_v50 = vsel %vm511_vm7, %v9129_v27, -inf }
0x1167   :  { %v4699_v14 = vpop.f32.mrf.mxu0 }
0x1168   :  { %v9136_v43 = vadd.f32 %v4699_v14, %v7797_v2 }
0x1169   :  { %v7045_v32 = vpop.f32.mrf.mxu0 }
0x116a   :  { %v4709_v42 = vsel %vm511_vm7, %v9136_v43, -inf }
0x116b   :  { %v4924_v38 = vpop.f32.mrf.mxu0 }
0x116c   :  { %v9139_v26 = vadd.f32 %v4924_v38, %v7797_v2 }
0x116d   :  { %v7069_v22 = vpop.f32.mrf.mxu0 }
0x116e   :  { %v4938_v13 = vsel %vm511_vm7, %v9139_v26, -inf }
0x116f   :  { %v4929_v18 = vpop.f32.mrf.mxu0 }
0x1170   :  { %4738 = vrot.lane.b32.xlu1 %v8811_v12, %s9833_s3  ;;  %v9146_v46 = vadd.f32 %v4929_v18, %v7797_v2 }
0x1171   :  { %v7072_v10 = vpop.f32.mrf.mxu0 }
0x1172   :  { %v4941_v48 = vsel %vm511_vm7, %v9146_v46, -inf }
0x1173   :  { %v4934_v19 = vpop.f32.mrf.mxu0 }
0x1174   :  { %v9155_v56 = vadd.f32 %v4934_v19, %v7797_v2 }
0x1175   :  { %v7075_v62 = vpop.f32.mrf.mxu0 }
0x1176   :  { %v4944_v36 = vsel %vm511_vm7, %v9155_v56, -inf }
0x1179   :  { %4740 = vrot.lane.b32.xlu0 %v8803_v59, %s9833_s3 }
0x1194   :  { %4707 = vmax.xlane.f32.xlu1 %v4706_v50 }
0x1198   :  { %4710 = vmax.xlane.f32.xlu0 %v4709_v42  ;;  %4939 = vmax.xlane.f32.xlu1 %v4938_v13 }
0x119c   :  { %4942 = vmax.xlane.f32.xlu0 %v4941_v48 }
0x11a0   :  { %4945 = vmax.xlane.f32.xlu0 %v4944_v36 }
0x11a2   :  { %v3253_v28 = vpop.xlane.xlu0 %3252 }
0x11a3   :  { %v3260_v14 = vsub.f32 %v9014_v20, %v3253_v28 }
0x11a5   :  { %v3263_v32 = vmul.f32 1.442695, %v3260_v14 }
0x11a6   :  { %v3256_v2 = vpop.xlane.xlu1 %3255  ;;  %v3488_v38 = vpop.xlane.xlu0 %3487 }
0x11a7   :  { %7339 = vpow2.f32 %v3263_v32  ;;  %v3261_v22 = vsub.f32 %v9022_v24, %v3256_v2  ;;  %v3495_v18 = vsub.f32 %v9017_v30, %v3488_v38 }
0x11a9   :  { %v3498_v10 = vmul.f32 1.442695, %v3495_v18  ;;  %v3265_v19 = vmul.f32 1.442695, %v3261_v22 }
0x11aa   :  { %v3494_v62 = vpop.xlane.xlu1 %3493  ;;  %v3491_v50 = vpop.xlane.xlu0 %3490 }
0x11ab   :  { %v3497_v42 = vsub.f32 %v9032_v63, %v3494_v62  ;;  %v3496_v13 = vsub.f32 %v9025_v5, %v3491_v50  ;;  %7341 = vpow2.f32 %v3498_v10 }
0x11ac   :  { %7343 = vpow2.f32 %v3265_v19 }
0x11ad   :  { %v3500_v48 = vmul.f32 1.442695, %v3496_v13  ;;  %v3502_v20 = vmul.f32 1.442695, %v3497_v42 }
0x11ae   :  { %v3259_v36 = vpop.xlane.xlu0 %3258 }
0x11af   :  { %v3262_v28 = vsub.f32 %v9037_v3, %v3259_v36  ;;  %7345 = vpow2.f32 %v3500_v48 }
0x11b0   :  { %7347 = vpow2.f32 %v3502_v20 }
0x11b1   :  { %v3267_v14 = vmul.f32 1.442695, %v3262_v28 }
0x11b2   :  { %v3726_v24 = vpop.xlane.xlu1 %3725  ;;  %v3723_v30 = vpop.xlane.xlu0 %3722 }
0x11b3   :  { %7349 = vpow2.f32 %v3267_v14  ;;  %v3731_v32 = vsub.f32 %v9047_v21, %v3726_v24  ;;  %v3730_v2 = vsub.f32 %v9042_v8, %v3723_v30 }
0x11b4   :  { %v9175_v63 = vpop.eup %7339 }
0x11b5   :  { %v3735_v5 = vmul.f32 1.442695, %v3731_v32  ;;  %v3733_v38 = vmul.f32 1.442695, %v3730_v2  ;;  %v3269_v22 = vsel %vm511_vm7, %v9175_v63, 0.0 }
0x11b6   :  { %3270 = vadd.xlane.f32.xlu1 %v3269_v22  ;;  %v3729_v18 = vpop.xlane.xlu0 %3728 }
0x11b7   :  { %7351 = vpow2.f32 %v3735_v5  ;;  %v3732_v3 = vsub.f32 %v9054_v16, %v3729_v18 }
0x11b8   :  { %7353 = vpow2.f32 %v3733_v38  ;;  %v9180_v10 = vpop.eup %7341 }
0x11b9   :  { %v3737_v19 = vmul.f32 1.442695, %v3732_v3  ;;  %v3504_v8 = vsel %vm511_vm7, %v9180_v10, 0.0  ;;  %v9184_v21 = vpop.eup %7343 }
0x11ba   :  { %v3958_v62 = vpop.xlane.xlu1 %3957  ;;  %3505 = vadd.xlane.f32.xlu1 %v3504_v8  ;;  %v3272_v16 = vsel %vm511_vm7, %v9184_v21, 0.0 }
0x11bb   :  { %7355 = vpow2.f32 %v3737_v19  ;;  %v3965_v50 = vsub.f32 %v9059_v53, %v3958_v62 }
0x11bc   :  { %v9187_v42 = vpop.eup %7345 }
0x11bd   :  { %v3968_v13 = vmul.f32 1.442695, %v3965_v50  ;;  %v3507_v48 = vsel %vm511_vm7, %v9187_v42, 0.0  ;;  %v9193_v36 = vpop.eup %7347 }
0x11be   :  { %v3961_v20 = vpop.xlane.xlu0 %3960  ;;  %3273 = vadd.xlane.f32.xlu1 %v3272_v16  ;;  %3508 = vadd.xlane.f32.xlu0 %v3507_v48  ;;  %v3510_v32 = vsel %vm511_vm7, %v9193_v36, 0.0 }
0x11bf   :  { %7357 = vpow2.f32 %v3968_v13  ;;  %v3966_v28 = vsub.f32 %v9064_v4, %v3961_v20 }
0x11c0   :  { %v9196_v14 = vpop.eup %7349 }
0x11c1   :  { %v3970_v53 = vmul.f32 1.442695, %v3966_v28  ;;  %v3275_v24 = vsel %vm511_vm7, %v9196_v14, 0.0 }
0x11c2   :  { %v3964_v30 = vpop.xlane.xlu1 %3963  ;;  %3511 = vadd.xlane.f32.xlu1 %v3510_v32  ;;  %3276 = vadd.xlane.f32.xlu0 %v3275_v24 }
0x11c3   :  { %7359 = vpow2.f32 %v3970_v53  ;;  %v3967_v2 = vsub.f32 %v9069_v34, %v3964_v30 }
0x11c4   :  { %v9203_v5 = vpop.eup %7351 }
0x11c5   :  { %v9205_v38 = vpop.eup %7353  ;;  %v3972_v4 = vmul.f32 1.442695, %v3967_v2  ;;  %v3742_v22 = vsel %vm511_vm7, %v9203_v5, 0.0 }
0x11c6   :  { %v3739_v18 = vsel %vm511_vm7, %v9205_v38, 0.0  ;;  %3743 = vadd.xlane.f32.xlu0 %v3742_v22 }
0x11c7   :  { %7361 = vpow2.f32 %v3972_v4  ;;  %3740 = vadd.xlane.f32.xlu1 %v3739_v18 }
0x11c8   :  { %v9211_v3 = vpop.eup %7355 }
0x11c9   :  { %v3745_v34 = vsel %vm511_vm7, %v9211_v3, 0.0 }
0x11cb   :  { %3746 = vadd.xlane.f32.xlu1 %v3745_v34 }
0x11cc   :  { %v9215_v19 = vpop.eup %7357 }
0x11cd   :  { %v3974_v62 = vsel %vm511_vm7, %v9215_v19, 0.0 }
0x11cf   :  { %3975 = vadd.xlane.f32.xlu1 %v3974_v62 }
0x11d0   :  { %v9219_v8 = vpop.eup %7359 }
0x11d1   :  { %v3977_v50 = vsel %vm511_vm7, %v9219_v8, 0.0 }
0x11d2   :  { %3978 = vadd.xlane.f32.xlu0 %v3977_v50 }
0x11d4   :  { %v9223_v13 = vpop.eup %7361  ;;  %v4235_v16 = vpop.xlane.xlu0 %4234 }
0x11d5   :  { %v4242_v48 = vsub.f32 %v9074_v45, %v4235_v16  ;;  %v3980_v20 = vsel %vm511_vm7, %v9223_v13, 0.0 }
0x11d6   :  { %3981 = vadd.xlane.f32.xlu1 %v3980_v20 }
0x11d7   :  { %v4245_v28 = vmul.f32 1.442695, %v4242_v48 }
0x11d8   :  { %v4238_v53 = vpop.xlane.xlu1 %4237 }
0x11d9   :  { %7363 = vpow2.f32 %v4245_v28  ;;  %v4243_v24 = vsub.f32 %v9079_v29, %v4238_v53 }
0x11db   :  { %v4247_v30 = vmul.f32 1.442695, %v4243_v24 }
0x11dc   :  { %v4241_v32 = vpop.xlane.xlu0 %4240 }
0x11dd   :  { %7365 = vpow2.f32 %v4247_v30  ;;  %v4244_v2 = vsub.f32 %v9084_v1, %v4241_v32 }
0x11df   :  { %v4249_v4 = vmul.f32 1.442695, %v4244_v2 }
0x11e0   :  { %v4470_v22 = vpop.xlane.xlu1 %4469 }
0x11e1   :  { %7367 = vpow2.f32 %v4249_v4  ;;  %v4477_v18 = vsub.f32 %v9089_v31, %v4470_v22 }
0x11e3   :  { %v4480_v45 = vmul.f32 1.442695, %v4477_v18 }
0x11e4   :  { %v4473_v34 = vpop.xlane.xlu0 %4472 }
0x11e5   :  { %7369 = vpow2.f32 %v4480_v45  ;;  %v4478_v62 = vsub.f32 %v9094_v0, %v4473_v34 }
0x11e6   :  { %v9232_v50 = vpop.eup %7363 }
0x11e7   :  { %v4482_v16 = vmul.f32 1.442695, %v4478_v62  ;;  %v4251_v29 = vsel %vm511_vm7, %v9232_v50, 0.0 }
0x11e8   :  { %4252 = vadd.xlane.f32.xlu1 %v4251_v29  ;;  %v4476_v30 = vpop.xlane.xlu1 %4475 }
0x11e9   :  { %7371 = vpow2.f32 %v4482_v16  ;;  %v4479_v32 = vsub.f32 %v9099_v44, %v4476_v30 }
0x11ea   :  { %v9236_v48 = vpop.eup %7365 }
0x11eb   :  { %v4254_v1 = vsel %vm511_vm7, %v9236_v48, 0.0  ;;  %v4484_v4 = vmul.f32 1.442695, %v4479_v32 }
0x11ec   :  { %4255 = vadd.xlane.f32.xlu0 %v4254_v1  ;;  %v4705_v2 = vpop.xlane.xlu0 %4704  ;;  %v9258_v45 = vpop.permute.xlu1 %4738 }
0x11ed   :  { %v4712_v22 = vsub.f32 %v9104_v47, %v4705_v2  ;;  %7373 = vpow2.f32 %v4484_v4 }
0x11ee   :  { %v9240_v31 = vpop.eup %7367 }
0x11ef   :  { %v4257_v20 = vsel %vm511_vm7, %v9240_v31, 0.0  ;;  %v4715_v18 = vmul.f32 1.442695, %v4712_v22 }
0x11f0   :  { %4258 = vadd.xlane.f32.xlu1 %v4257_v20  ;;  %v9260_v34 = vpop.permute.xlu0 %4740 }
0x11f1   :  { %7375 = vpow2.f32 %v4715_v18 }
0x11f2   :  { %v9244_v0 = vpop.eup %7369 }
0x11f3   :  { %v4486_v28 = vsel %vm511_vm7, %v9244_v0, 0.0 }
0x11f4   :  { %4487 = vadd.xlane.f32.xlu1 %v4486_v28 }
0x11f6   :  { %v9248_v53 = vpop.eup %7371 }
0x11f7   :  { %v4489_v24 = vsel %vm511_vm7, %v9248_v53, 0.0 }
0x11f8   :  { %4490 = vadd.xlane.f32.xlu0 %v4489_v24 }
0x11fa   :  { %v9265_v47 = vpop.eup %7373 }
0x11fe   :  { %v9270_v4 = vpop.eup %7375 }
0x11ff   :  { %v4721_v18 = vsel %vm511_vm7, %v9270_v4, 0.0 }
0x1205   :  { %4975 = vrot.lane.b32.xlu1 %v8803_v59, %s9834_s29 }
0x120e   :  { %4736 = vrot.lane.b32.xlu0 %v8809_v35, %s9833_s3 }
0x121d   :  { %v4708_v62 = vpop.xlane.xlu1 %4707 }
0x121e   :  { %v4713_v59 = vsub.f32 %v9129_v27, %v4708_v62  ;;  %v4492_v27 = vsel %vm511_vm7, %v9265_v47, 0.0 }
0x1220   :  { %v4717_v16 = vmul.f32 1.442695, %v4713_v59 }
0x1221   :  { %v4940_v29 = vpop.xlane.xlu1 %4939  ;;  %v4711_v1 = vpop.xlane.xlu0 %4710 }
0x1222   :  { %7377 = vpow2.f32 %v4717_v16  ;;  %v4947_v44 = vsub.f32 %v9139_v26, %v4940_v29  ;;  %v4714_v20 = vsub.f32 %v9136_v43, %v4711_v1 }
0x1224   :  { %v4719_v28 = vmul.f32 1.442695, %v4714_v20  ;;  %v4950_v24 = vmul.f32 1.442695, %v4947_v44 }
0x1225   :  { %v4943_v30 = vpop.xlane.xlu0 %4942 }
0x1226   :  { %v4948_v32 = vsub.f32 %v9146_v46, %v4943_v30  ;;  %7379 = vpow2.f32 %v4719_v28 }
0x1227   :  { %7381 = vpow2.f32 %v4950_v24 }
0x1228   :  { %v4952_v2 = vmul.f32 1.442695, %v4948_v32 }
0x1229   :  { %4493 = vadd.xlane.f32.xlu1 %v4492_v27  ;;  %v4946_v22 = vpop.xlane.xlu0 %4945 }
0x122a   :  { %7383 = vpow2.f32 %v4952_v2  ;;  %v4949_v43 = vsub.f32 %v9155_v56, %v4946_v22 }
0x122c   :  { %v4954_v26 = vmul.f32 1.442695, %v4949_v43 }
0x122d   :  { %4722 = vadd.xlane.f32.xlu1 %v4721_v18 }
0x122e   :  { %7385 = vpow2.f32 %v4954_v26 }
0x122f   :  { %v9275_v46 = vpop.eup %7377 }
0x1230   :  { %v4724_v62 = vsel %vm511_vm7, %v9275_v46, 0.0 }
0x1231   :  { %4725 = vadd.xlane.f32.xlu0 %v4724_v62 }
0x1233   :  { %v9279_v59 = vpop.eup %7379 }
0x1234   :  { %v4727_v16 = vsel %vm511_vm7, %v9279_v59, 0.0  ;;  %v9283_v29 = vpop.eup %7381 }
0x1235   :  { %4728 = vadd.xlane.f32.xlu1 %v4727_v16  ;;  %v4956_v44 = vsel %vm511_vm7, %v9283_v29, 0.0 }
0x1237   :  { %v9285_v56 = vpop.eup %7383 }
0x1238   :  { %v4959_v1 = vsel %vm511_vm7, %v9285_v56, 0.0 }
0x1239   :  { %4960 = vadd.xlane.f32.xlu0 %v4959_v1  ;;  %4957 = vadd.xlane.f32.xlu1 %v4956_v44 }
0x123b   :  { %v9291_v20 = vpop.eup %7385 }
0x123c   :  { %v4962_v28 = vsel %vm511_vm7, %v9291_v20, 0.0 }
0x123d   :  { %4963 = vadd.xlane.f32.xlu1 %v4962_v28 }
0x123f   :  { %v3271_v24 = vpop.xlane.xlu1 %3270 }
0x1240   :  { %7387 = vrcp.f32 %v3271_v24 }
0x1243   :  { %v3506_v30 = vpop.xlane.xlu1 %3505 }
0x1247   :  { %v3274_v32 = vpop.xlane.xlu1 %3273  ;;  %v3509_v2 = vpop.xlane.xlu0 %3508 }
0x1248   :  { %7389 = vrcp.f32 %v3274_v32 }
0x124b   :  { %v3277_v27 = vpop.xlane.xlu0 %3276  ;;  %v3512_v26 = vpop.xlane.xlu1 %3511 }
0x124c   :  { %7391 = vrcp.f32 %v3277_v27 }
0x124d   :  { %v7388_v22 = vpop.eup %7387  ;;  %7393 = vrcp.f32 %v3506_v30 }
0x124e   :  { %v3281_v43 = vmul.f32 %v7388_v22, %v9175_v63  ;;  %4971 = vrot.lane.b32.xlu1 %v8809_v35, %s9834_s29  ;;  %7395 = vrcp.f32 %v3509_v2 }
0x124f   :  { %4973 = vrot.lane.b32.xlu0 %v8811_v12, %s9834_s29  ;;  %7397 = vrcp.f32 %v3512_v26  ;;  %v3744_v62 = vpop.xlane.xlu0 %3743 }
0x1250   :  { %6873 = vmatmul.mubr.msk.f32.vlgmr.msra.gmra.mxu1 %vm511_vm7, %v3281_v43 }
0x1251   :  { %6897 = vmatpush3.msra.mxu1 %v9108_v37  ;;  %6875 = vmatprep.mubr.msk.f32.mxu1 %vm7473_vm2, %v7471_v49  ;;  %v3741_v37 = vpop.xlane.xlu1 %3740 }
0x1252   :  { %6898 = vmatprep.subr.mxu1 %v7471_v49  ;;  %7399 = vrcp.f32 %v3741_v37 }
0x1253   :  { %6899 = vmatpush3.msra.mxu1 %v9124_v41  ;;  %7401 = vrcp.f32 %v3744_v62 }
0x1254   :  { %6900 = vmatprep.subr.mxu1 %v7471_v49 }
0x1255   :  { %6901 = vmatpush3.msra.mxu1 %v9110_v51  ;;  %v7390_v35 = vpop.eup %7389  ;;  %v3747_v51 = vpop.xlane.xlu1 %3746 }
0x1256   :  { %6926 = vmatprep.subr.mxu1 %v7471_v49  ;;  %v3282_v12 = vmul.f32 %v7390_v35, %v9184_v21  ;;  %7403 = vrcp.f32 %v3747_v51 }
0x1258   :  { %6876 = vmatmul.mubr.msk.f32.gmra.mxu1 %vm511_vm7, %v3282_v12 }
0x1259   :  { %6878 = vmatprep.mubr.msk.f32.mxu1 %vm7473_vm2, %v7471_v49  ;;  %v7392_v63 = vpop.eup %7391  ;;  %v3976_v44 = vpop.xlane.xlu1 %3975 }
0x125a   :  { %v3283_v41 = vmul.f32 %v7392_v63, %v9196_v14  ;;  %v7394_v18 = vpop.eup %7393  ;;  %7405 = vrcp.f32 %v3976_v44 }
0x125b   :  { %v3516_v21 = vmul.f32 %v7394_v18, %v9180_v10  ;;  %v7396_v16 = vpop.eup %7395 }
0x125c   :  { %6879 = vmatmul.mubr.msk.f32.gmra.mxu1 %vm511_vm7, %v3283_v41  ;;  %v3517_v14 = vmul.f32 %v7396_v16, %v9187_v42  ;;  %v7398_v1 = vpop.eup %7397  ;;  %v3979_v42 = vpop.xlane.xlu0 %3978 }
0x125d   :  { %6902 = vmatprep.mubr.msk.f32.mxu1 %vm7473_vm2, %v7471_v49  ;;  %7407 = vrcp.f32 %v3979_v42 }
0x125f   :  { %v7400_v10 = vpop.eup %7399 }
0x1260   :  { %6903 = vmatmul.mubr.msk.f32.vlgmr.msra.gmra.mxu1 %vm511_vm7, %v3516_v21  ;;  %v7402_v28 = vpop.eup %7401 }
0x1261   :  { %6927 = vmatpush3.msra.mxu1 %v9114_v9  ;;  %6905 = vmatprep.mubr.msk.f32.mxu1 %vm7473_vm2, %v7471_v49  ;;  %v3518_v9 = vmul.f32 %v7398_v1, %v9193_v36  ;;  %v3752_v36 = vmul.f32 %v7402_v28, %v9203_v5 }
0x1262   :  { %6928 = vmatprep.subr.mxu1 %v7471_v49 }
0x1263   :  { %6929 = vmatpush3.msra.mxu1 %v9131_v57  ;;  %v3751_v57 = vmul.f32 %v7400_v10, %v9205_v38  ;;  %v7404_v24 = vpop.eup %7403 }
0x1264   :  { %6930 = vmatprep.subr.mxu1 %v7471_v49  ;;  %6906 = vmatmul.mubr.msk.f32.gmra.mxu1 %vm511_vm7, %v3517_v14 }
0x1265   :  { %6931 = vmatpush3.msra.mxu1 %v9118_v61  ;;  %6908 = vmatprep.mubr.msk.f32.mxu1 %vm7473_vm2, %v7471_v49  ;;  %v3982_v61 = vpop.xlane.xlu1 %3981 }
0x1266   :  { %6956 = vmatprep.subr.mxu1 %v7471_v49  ;;  %7409 = vrcp.f32 %v3982_v61 }
0x1267   :  { %v7406_v38 = vpop.eup %7405 }
0x1268   :  { %6909 = vmatmul.mubr.msk.f32.gmra.mxu1 %vm511_vm7, %v3518_v9 }
0x1269   :  { %6932 = vmatprep.mubr.msk.f32.mxu1 %vm7473_vm2, %v7471_v49 }
0x126a   :  { %v7408_v32 = vpop.eup %7407 }
0x126c   :  { %6933 = vmatmul.mubr.msk.f32.vlgmr.msra.gmra.mxu1 %vm511_vm7, %v3751_v57 }
0x126d   :  { %6957 = vmatpush3.msra.mxu1 %v9120_v6  ;;  %6935 = vmatprep.mubr.msk.f32.mxu1 %vm7473_vm2, %v7471_v49  ;;  %v3753_v6 = vmul.f32 %v7404_v24, %v9211_v3 }
0x126e   :  { %6958 = vmatprep.subr.mxu1 %v7471_v49 }
0x126f   :  { %6959 = vmatpush3.msra.mxu1 %v9143_v15  ;;  %v3986_v15 = vmul.f32 %v7406_v38, %v9215_v19 }
0x1270   :  { %6960 = vmatprep.subr.mxu1 %v7471_v49  ;;  %6936 = vmatmul.mubr.msk.f32.gmra.mxu1 %vm511_vm7, %v3752_v36 }
0x1271   :  { %v4253_v30 = vpop.xlane.xlu1 %4252  ;;  %6961 = vmatpush3.msra.mxu1 %v9122_v39  ;;  %6938 = vmatprep.mubr.msk.f32.mxu1 %vm7473_vm2, %v7471_v49  ;;  %v3987_v39 = vmul.f32 %v7408_v32, %v9219_v8  ;;  %v6087_v32 = vld [vmem:[%s9777_s9 + $0x20] sm:$0xff] }
0x1272   :  { %7411 = vrcp.f32 %v4253_v30  ;;  %6986 = vmatprep.subr.mxu1 %v7471_v49  ;;  %v6090_v30 = vld [vmem:[%s9777_s9 + $0x38] sm:$0xff] }
0x1273   :  { %v7410_v3 = vpop.eup %7409  ;;  %7091 = vmatprep.subr.mxu0 %v6090_v30 }
0x1274   :  { %6939 = vmatmul.mubr.msk.f32.gmra.mxu1 %vm511_vm7, %v3753_v6  ;;  %v6089_v6 = vld [vmem:[%s9777_s9 + $0x30] sm:$0xff]  ;;  %7092 = vmatpush3.msra.mxu0 %v6090_v30 }
0x1275   :  { %v4256_v5 = vpop.xlane.xlu0 %4255  ;;  %6962 = vmatprep.mubr.msk.f32.mxu1 %vm7473_vm2, %v7471_v49  ;;  %7093 = vmatprep.subr.mxu0 %v6089_v6 }
0x1276   :  { %7413 = vrcp.f32 %v4256_v5  ;;  %7094 = vmatpush3.msra.mxu0 %v6089_v6 }
0x1278   :  { %6963 = vmatmul.mubr.msk.f32.vlgmr.msra.gmra.mxu1 %vm511_vm7, %v3986_v15  ;;  %v6088_v15 = vld [vmem:[%s9777_s9 + $0x28] sm:$0xff] }
0x1279   :  { %v4259_v2 = vpop.xlane.xlu1 %4258  ;;  %6987 = vmatpush3.msra.mxu1 %v9126_v58  ;;  %6965 = vmatprep.mubr.msk.f32.mxu1 %vm7473_vm2, %v7471_v49  ;;  %v3988_v58 = vmul.f32 %v7410_v3, %v9223_v13 }
0x127a   :  { %7415 = vrcp.f32 %v4259_v2  ;;  %6988 = vmatprep.subr.mxu1 %v7471_v49  ;;  %7095 = vmatprep.subr.mxu0 %v6088_v15 }
0x127b   :  { %6989 = vmatpush3.msra.mxu1 %v9159_v17  ;;  %7096 = vmatpush3.msra.mxu0 %v6088_v15 }
0x127c   :  { %6990 = vmatprep.subr.mxu1 %v7471_v49  ;;  %6966 = vmatmul.mubr.msk.f32.gmra.mxu1 %vm511_vm7, %v3987_v39 }
0x127d   :  { %v4488_v27 = vpop.xlane.xlu1 %4487  ;;  %6991 = vmatpush3.msra.mxu1 %v9133_v33  ;;  %6968 = vmatprep.mubr.msk.f32.mxu1 %vm7473_vm2, %v7471_v49 }
0x127e   :  { %7417 = vrcp.f32 %v4488_v27  ;;  %7016 = vmatprep.subr.mxu1 %v7471_v49  ;;  %7097 = vmatprep.subr.mxu0 %v6087_v32 }
0x127f   :  { %v7412_v19 = vpop.eup %7411  ;;  %7098 = vmatpush3.msra.mxu0 %v6087_v32 }
0x1280   :  { %v4263_v22 = vmul.f32 %v7412_v19, %v9232_v50  ;;  %6969 = vmatmul.mubr.msk.f32.gmra.mxu1 %vm511_vm7, %v3988_v58 }
0x1281   :  { %v4491_v8 = vpop.xlane.xlu0 %4490  ;;  %6992 = vmatprep.mubr.msk.f32.mxu1 %vm7473_vm2, %v7471_v49 }
0x1282   :  { %7419 = vrcp.f32 %v4491_v8 }
0x1283   :  { %v7414_v17 = vpop.eup %7413 }
0x1284   :  { %6993 = vmatmul.mubr.msk.f32.vlgmr.msra.gmra.mxu1 %vm511_vm7, %v4263_v22  ;;  %v4264_v33 = vmul.f32 %v7414_v17, %v9236_v48 }
0x1285   :  { %7017 = vmatpush3.msra.mxu1 %v9152_v54  ;;  %6995 = vmatprep.mubr.msk.f32.mxu1 %vm7473_vm2, %v7471_v49 }
0x1286   :  { %7018 = vmatprep.subr.mxu1 %v7471_v49 }
0x1287   :  { %v7416_v43 = vpop.eup %7415  ;;  %7019 = vmatpush3.msra.mxu1 %v9165_v40 }
0x1288   :  { %7020 = vmatprep.subr.mxu1 %v7471_v49  ;;  %6996 = vmatmul.mubr.msk.f32.gmra.mxu1 %vm511_vm7, %v4264_v33  ;;  %v4265_v13 = vmul.f32 %v7416_v43, %v9240_v31  ;;  %v4976_v31 = vpop.permute.xlu1 %4975 }
0x1289   :  { %7021 = vmatpush3.msra.mxu1 %v9161_v25  ;;  %6998 = vmatprep.mubr.msk.f32.mxu1 %vm7473_vm2, %v7471_v49  ;;  %v4737_v25 = vpop.permute.xlu0 %4736 }
0x128a   :  { %7046 = vmatprep.subr.mxu1 %v7471_v49 }
0x128b   :  { %v7418_v50 = vpop.eup %7417 }
0x128c   :  { %v4498_v54 = vmul.f32 %v7418_v50, %v9244_v0  ;;  %6999 = vmatmul.mubr.msk.f32.gmra.mxu1 %vm511_vm7, %v4265_v13 }
0x128d   :  { %7022 = vmatprep.mubr.msk.f32.mxu1 %vm7473_vm2, %v7471_v49 }
0x128f   :  { %v7420_v48 = vpop.eup %7419 }
0x1290   :  { %7023 = vmatmul.mubr.msk.f32.vlgmr.msra.gmra.mxu1 %vm511_vm7, %v4498_v54  ;;  %v4499_v40 = vmul.f32 %v7420_v48, %v9248_v53 }
0x1291   :  { %7047 = vmatpush3.msra.mxu1 %v9260_v34  ;;  %7025 = vmatprep.mubr.msk.f32.mxu1 %vm7473_vm2, %v7471_v49 }
0x1292   :  { %7048 = vmatprep.subr.mxu1 %v7471_v49 }
0x1293   :  { %7049 = vmatpush3.msra.mxu1 %v9258_v45 }
0x1294   :  { %7050 = vmatprep.subr.mxu1 %v7471_v49  ;;  %7026 = vmatmul.mubr.msk.f32.gmra.mxu1 %vm511_vm7, %v4499_v40 }
0x1295   :  { %7051 = vmatpush3.msra.mxu1 %v4737_v25  ;;  %7028 = vmatprep.mubr.msk.f32.mxu1 %vm7473_vm2, %v7471_v49 }
0x1296   :  { %7076 = vmatprep.subr.mxu1 %v7471_v49 }
0x12b2   :  { %v4494_v0 = vpop.xlane.xlu1 %4493 }
0x12b3   :  { %7421 = vrcp.f32 %v4494_v0 }
0x12b6   :  { %v4723_v53 = vpop.xlane.xlu1 %4722 }
0x12b7   :  { %7423 = vrcp.f32 %v4723_v53 }
0x12ba   :  { %v4726_v34 = vpop.xlane.xlu0 %4725 }
0x12bb   :  { %7425 = vrcp.f32 %v4726_v34 }
0x12be   :  { %v4729_v26 = vpop.xlane.xlu1 %4728 }
0x12bf   :  { %7427 = vrcp.f32 %v4729_v26 }
0x12c0   :  { %v7422_v45 = vpop.eup %7421 }
0x12c1   :  { %v4500_v35 = vmul.f32 %v7422_v45, %v9265_v47 }
0x12c2   :  { %v4958_v12 = vpop.xlane.xlu1 %4957  ;;  %v4961_v37 = vpop.xlane.xlu0 %4960 }
0x12c3   :  { %7029 = vmatmul.mubr.msk.f32.gmra.mxu1 %vm511_vm7, %v4500_v35  ;;  %7429 = vrcp.f32 %v4958_v12 }
0x12c4   :  { %v7424_v63 = vpop.eup %7423  ;;  %7052 = vmatprep.mubr.msk.f32.mxu1 %vm7473_vm2, %v7471_v49  ;;  %7431 = vrcp.f32 %v4961_v37 }
0x12c5   :  { %v4733_v41 = vmul.f32 %v7424_v63, %v9270_v4 }
0x12c6   :  { %v4964_v18 = vpop.xlane.xlu1 %4963  ;;  %v4974_v47 = vpop.permute.xlu0 %4973 }
0x12c7   :  { %7053 = vmatmul.mubr.msk.f32.vlgmr.msra.gmra.mxu1 %vm511_vm7, %v4733_v41  ;;  %7433 = vrcp.f32 %v4964_v18 }
0x12c8   :  { %v7426_v62 = vpop.eup %7425  ;;  %7077 = vmatpush3.msra.mxu1 %v4976_v31  ;;  %7055 = vmatprep.mubr.msk.f32.mxu1 %vm7473_vm2, %v7471_v49 }
0x12c9   :  { %7078 = vmatprep.subr.mxu1 %v7471_v49  ;;  %v4734_v51 = vmul.f32 %v7426_v62, %v9275_v46 }
0x12ca   :  { %7079 = vmatpush3.msra.mxu1 %v4974_v47  ;;  %v4972_v21 = vpop.permute.xlu1 %4971 }
0x12cb   :  { %7080 = vmatprep.subr.mxu1 %v7471_v49  ;;  %7056 = vmatmul.mubr.msk.f32.gmra.mxu1 %vm511_vm7, %v4734_v51 }
0x12cc   :  { %7081 = vmatpush3.msra.mxu1 %v4972_v21  ;;  %7058 = vmatprep.mubr.msk.f32.mxu1 %vm7473_vm2, %v7471_v49  ;;  %v7428_v4 = vpop.eup %7427 }
0x12cd   :  { %v4735_v16 = vmul.f32 %v7428_v4, %v9279_v59 }
0x12cf   :  { %7059 = vmatmul.mubr.msk.f32.gmra.mxu1 %vm511_vm7, %v4735_v16 }
0x12d0   :  { %v7430_v14 = vpop.eup %7429  ;;  %7082 = vmatprep.mubr.msk.f32.mxu1 %vm7473_vm2, %v7471_v49 }
0x12d1   :  { %v4968_v46 = vmul.f32 %v7430_v14, %v9283_v29  ;;  %v7432_v1 = vpop.eup %7431 }
0x12d2   :  { %v4969_v44 = vmul.f32 %v7432_v1, %v9285_v56 }
0x12d3   :  { %7083 = vmatmul.mubr.msk.f32.vlgmr.msra.gmra.mxu1 %vm511_vm7, %v4968_v46 }
0x12d4   :  { %7085 = vmatprep.mubr.msk.f32.mxu1 %vm7473_vm2, %v7471_v49  ;;  %v7434_v9 = vpop.eup %7433 }
0x12d5   :  { %v4970_v59 = vmul.f32 %v7434_v9, %v9291_v20 }
0x12d7   :  { %7086 = vmatmul.mubr.msk.f32.gmra.mxu1 %vm511_vm7, %v4969_v44 }
0x12d8   :  { %7088 = vmatprep.mubr.msk.f32.mxu1 %vm7473_vm2, %v7471_v49 }
0x12db   :  { %7089 = vmatmul.mubr.msk.f32.gmra.mxu1 %vm511_vm7, %v4970_v59 }
0x1310   :  { %v9430_v10 = vpop.f32.mrf.mxu1 }
0x1312   :  { %v6874_v29 = vpop.f32.mrf.mxu1 }
0x1318   :  { %v9432_v42 = vpop.f32.mrf.mxu1 }
0x131a   :  { %v6877_v57 = vpop.f32.mrf.mxu1 }
0x131c   :  { %v9434_v28 = vpop.f32.mrf.mxu1 }
0x131e   :  { %v6880_v61 = vpop.f32.mrf.mxu1 }
0x1320   :  { %v3603_v56 = vpop.f32.mrf.mxu1 }
0x1321   :  { %4090 = vrot.lane.b32.xlu0 %v3603_v56, %s7485_s26 }
0x1322   :  { %v6904_v36 = vpop.f32.mrf.mxu1 }
0x1324   :  { %v3608_v24 = vpop.f32.mrf.mxu1 }
0x1325   :  { %4092 = vrot.lane.b32.xlu1 %v3608_v24, %s7485_s26 }
0x1326   :  { %v6907_v49 = vpop.f32.mrf.mxu1 }
0x1328   :  { %v3613_v20 = vpop.f32.mrf.mxu1 }
0x1329   :  { %4094 = vrot.lane.b32.xlu0 %v3613_v20, %s7485_s26 }
0x132a   :  { %v6910_v38 = vpop.f32.mrf.mxu1 }
0x132c   :  { %v3838_v5 = vpop.f32.mrf.mxu1 }
0x132d   :  { %4102 = vrot.lane.b32.xlu0 %v3838_v5, %s9835_s5 }
0x132e   :  { %v6934_v2 = vpop.f32.mrf.mxu1 }
0x1330   :  { %v3843_v39 = vpop.f32.mrf.mxu1 }
0x1331   :  { %4104 = vrot.lane.b32.xlu1 %v3843_v39, %s9835_s5 }
0x1332   :  { %v6937_v3 = vpop.f32.mrf.mxu1 }
0x1334   :  { %v3848_v27 = vpop.f32.mrf.mxu1 }
0x1335   :  { %4106 = vrot.lane.b32.xlu1 %v3848_v27, %s9835_s5 }
0x1336   :  { %v6940_v19 = vpop.f32.mrf.mxu1 }
0x1338   :  { %v4073_v58 = vpop.f32.mrf.mxu1 }
0x1339   :  { %4114 = vrot.lane.b32.xlu0 %v4073_v58, %s9836_s8 }
0x133a   :  { %v6964_v8 = vpop.f32.mrf.mxu1 }
0x133c   :  { %v4078_v22 = vpop.f32.mrf.mxu1 }
0x133d   :  { %4116 = vrot.lane.b32.xlu1 %v4078_v22, %s9836_s8 }
0x133e   :  { %v6967_v17 = vpop.f32.mrf.mxu1 }
0x1340   :  { %v4083_v33 = vpop.f32.mrf.mxu1 }
0x1341   :  { %4118 = vrot.lane.b32.xlu1 %v4083_v33, %s9836_s8 }
0x1342   :  { %v6970_v43 = vpop.f32.mrf.mxu1 }
0x1344   :  { %v4350_v13 = vpop.f32.mrf.mxu1 }
0x1346   :  { %v6994_v50 = vpop.f32.mrf.mxu1 }
0x1348   :  { %v9457_v54 = vpop.f32.mrf.mxu1 }
0x134a   :  { %v6997_v48 = vpop.f32.mrf.mxu1 }
0x134c   :  { %v9459_v40 = vpop.f32.mrf.mxu1 }
0x134e   :  { %v7000_v25 = vpop.f32.mrf.mxu1 }
0x1350   :  { %v4585_v31 = vpop.f32.mrf.mxu1 }
0x1351   :  { %5072 = vrot.lane.b32.xlu0 %v4585_v31, %s7485_s26 }
0x1352   :  { %v7024_v0 = vpop.f32.mrf.mxu1 }
0x1354   :  { %v4590_v53 = vpop.f32.mrf.mxu1 }
0x1355   :  { %5074 = vrot.lane.b32.xlu0 %v4590_v53, %s7485_s26 }
0x1356   :  { %v7027_v34 = vpop.f32.mrf.mxu1 }
0x1383   :  { %v4595_v26 = vpop.f32.mrf.mxu1 }
0x1384   :  { %5076 = vrot.lane.b32.xlu1 %v4595_v26, %s7485_s26 }
0x1385   :  { %v7030_v45 = vpop.f32.mrf.mxu1 }
0x1387   :  { %v4820_v35 = vpop.f32.mrf.mxu1 }
0x1388   :  { %5084 = vrot.lane.b32.xlu0 %v4820_v35, %s9835_s5 }
0x1389   :  { %v7054_v12 = vpop.f32.mrf.mxu1 }
0x138b   :  { %v4825_v37 = vpop.f32.mrf.mxu1 }
0x138c   :  { %5086 = vrot.lane.b32.xlu0 %v4825_v37, %s9835_s5 }
0x138d   :  { %v7057_v63 = vpop.f32.mrf.mxu1 }
0x138f   :  { %v4830_v41 = vpop.f32.mrf.mxu1 }
0x1390   :  { %5088 = vrot.lane.b32.xlu1 %v4830_v41, %s9835_s5 }
0x1391   :  { %v7060_v18 = vpop.f32.mrf.mxu1 }
0x1393   :  { %v5055_v62 = vpop.f32.mrf.mxu1  ;;  %v4091_v14 = vpop.permute.xlu0 %4090 }
0x1394   :  { %5096 = vrot.lane.b32.xlu1 %v5055_v62, %s9836_s8  ;;  %v4123_v59 = vsel %vm418_vm3, %v9430_v10, %v4091_v14 }
0x1395   :  { %v7084_v47 = vpop.f32.mrf.mxu1 }
0x1397   :  { %v5060_v51 = vpop.f32.mrf.mxu1  ;;  %v4093_v46 = vpop.permute.xlu1 %4092 }
0x1398   :  { %5098 = vrot.lane.b32.xlu0 %v5060_v51, %s9836_s8  ;;  %v4124_v36 = vsel %vm418_vm3, %v9432_v42, %v4093_v46 }
0x1399   :  { %v7087_v21 = vpop.f32.mrf.mxu1 }
0x139b   :  { %v5065_v4 = vpop.f32.mrf.mxu1  ;;  %v4095_v1 = vpop.permute.xlu0 %4094 }
0x139c   :  { %5100 = vrot.lane.b32.xlu1 %v5065_v4, %s9836_s8  ;;  %v4125_v10 = vsel %vm418_vm3, %v9434_v28, %v4095_v1 }
0x139d   :  { %v7090_v16 = vpop.f32.mrf.mxu1 }
0x139f   :  { %v4103_v9 = vpop.permute.xlu0 %4102 }
0x13a0   :  { %v4126_v29 = vsel %vm1387_vm8, %v4123_v59, %v4103_v9 }
0x13a3   :  { %v4105_v44 = vpop.permute.xlu1 %4104 }
0x13a4   :  { %v4127_v24 = vsel %vm1387_vm8, %v4124_v36, %v4105_v44  ;;  %v6103_v36 = vld [vmem:[%s9779_s13 + $0x20] sm:$0xff] }
0x13a7   :  { %v4107_v57 = vpop.permute.xlu1 %4106 }
0x13a8   :  { %v4128_v30 = vsel %vm1387_vm8, %v4125_v10, %v4107_v57  ;;  %v6106_v57 = vld [vmem:[%s9779_s13 + $0x38] sm:$0xff] }
0x13a9   :  { %7108 = vmatprep.subr.mxu1 %v6106_v57 }
0x13aa   :  { %7109 = vmatpush3.msra.mxu1 %v6106_v57 }
0x13ab   :  { %v4115_v61 = vpop.permute.xlu0 %4114 }
0x13ac   :  { %v4129_v56 = vsel %vm511_vm7, %v4126_v29, %v4115_v61  ;;  %v6105_v61 = vld [vmem:[%s9779_s13 + $0x30] sm:$0xff] }
0x13ad   :  { %7099 = vmatprep.mubr.msk.f32.mxu0 %vm199_vm1, %v4129_v56  ;;  %v6104_v56 = vld [vmem:[%s9779_s13 + $0x28] sm:$0xff]  ;;  %7110 = vmatprep.subr.mxu1 %v6105_v61 }
0x13ae   :  { %7111 = vmatpush3.msra.mxu1 %v6105_v61  ;;  %v6125_v61 = vld [vmem:[%s9782_s15 + $0xd0] sm:$0xff] }
0x13af   :  { %v4117_v49 = vpop.permute.xlu1 %4116  ;;  %7112 = vmatprep.subr.mxu1 %v6104_v56 }
0x13b0   :  { %v4130_v20 = vsel %vm511_vm7, %v4127_v24, %v4117_v49  ;;  %7113 = vmatpush3.msra.mxu1 %v6104_v56 }
0x13b1   :  { %7100 = vmatmul.mubr.msk.f32.vlgmr.msra.gmra.mxu0 %vm199_vm1, %v4130_v20  ;;  %7114 = vmatprep.subr.mxu1 %v6103_v36 }
0x13b2   :  { %7115 = vmatpush3.msra.mxu1 %v6103_v36  ;;  %v6124_v36 = vld [vmem:[%s9782_s15 + $0xc8] sm:$0xff] }
0x13b3   :  { %v4119_v6 = vpop.permute.xlu1 %4118 }
0x13b4   :  { %v4131_v38 = vsel %vm511_vm7, %v4128_v30, %v4119_v6 }
0x13b5   :  { %7102 = vmatprep.mubr.msk.f32.mxu0 %vm199_vm1, %v4131_v38 }
0x13c3   :  { %v5073_v5 = vpop.permute.xlu0 %5072 }
0x13c4   :  { %v5105_v39 = vsel %vm418_vm3, %v4350_v13, %v5073_v5 }
0x13c7   :  { %v5075_v15 = vpop.permute.xlu0 %5074 }
0x13c8   :  { %v5106_v58 = vsel %vm418_vm3, %v9457_v54, %v5075_v15  ;;  %v6098_v54 = vld [vmem:[%s9778_s10 + $0x1] ss:$0 sm:$0xff] }
0x13f6   :  { %v5077_v42 = vpop.permute.xlu1 %5076 }
0x13f7   :  { %v5107_v33 = vsel %vm418_vm3, %v9459_v40, %v5077_v42 }
0x13fa   :  { %v5085_v32 = vpop.permute.xlu0 %5084 }
0x13fb   :  { %v5108_v3 = vsel %vm1387_vm8, %v5105_v39, %v5085_v32 }
0x13fe   :  { %v5087_v27 = vpop.permute.xlu0 %5086 }
0x13ff   :  { %v5109_v8 = vsel %vm1387_vm8, %v5106_v58, %v5087_v27 }
0x1402   :  { %v5089_v2 = vpop.permute.xlu1 %5088 }
0x1403   :  { %v5110_v43 = vsel %vm1387_vm8, %v5107_v33, %v5089_v2 }
0x1406   :  { %v5097_v19 = vpop.permute.xlu1 %5096 }
0x1407   :  { %v5111_v28 = vsel %vm511_vm7, %v5108_v3, %v5097_v19 }
0x1408   :  { %7103 = vmatmul.mubr.msk.f32.gmra.mxu0 %vm199_vm1, %v5111_v28 }
0x140a   :  { %v5099_v22 = vpop.permute.xlu0 %5098 }
0x140b   :  { %v5112_v17 = vsel %vm511_vm7, %v5109_v8, %v5099_v22 }
0x140c   :  { %7105 = vmatprep.mubr.msk.f32.mxu0 %vm199_vm1, %v5112_v17 }
0x140e   :  { %v5101_v13 = vpop.permute.xlu1 %5100 }
0x140f   :  { %v5113_v50 = vsel %vm511_vm7, %v5110_v43, %v5101_v13 }
0x1410   :  { %7106 = vmatmul.mubr.msk.f32.gmra.mxu0 %vm199_vm1, %v5113_v50 }
0x1471   :  { %v7101_v48 = vpop.f32.mrf.mxu0 }
0x1472   :  { %v5233_v25 = vadd.f32 %v7101_v48, %v8684_v7 }
0x1473   :  { %v5203_v31 = vpop.f32.mrf.mxu0 }
0x1474   :  { %v9503_v0 = vadd.f32 %v6098_v54, %v5233_v25  ;;  %v5232_v53 = vadd.f32 %v5203_v31, %v8687_v60  ;;  %v9575_v25 = vld [vmem:[%s9780_s11 + $0x1] ss:$0 sm:$0xff] }
0x1476   :  { %v9506_v40 = vadd.f32 %v6098_v54, %v5232_v53  ;;  %v5259_v34 = vsel %vm199_vm1, %v9503_v0, 0.0 }
0x1477   :  { %5260 = vadd.xlane.f32.xlu1 %v5259_v34 }
0x1478   :  { %v5256_v26 = vsel %vm199_vm1, %v9506_v40, 0.0 }
0x1479   :  { %5257 = vadd.xlane.f32.xlu0 %v5256_v26 }
0x14c8   :  { %v7104_v45 = vpop.f32.mrf.mxu0 }
0x14c9   :  { %v5235_v35 = vadd.f32 %v7104_v45, %v8694_v23  ;;  %v9581_v45 = vld [vmem:[%s9781_s12 + $0x1] ss:$0 sm:$0xff] }
0x14ca   :  { %v5213_v12 = vpop.f32.mrf.mxu0 }
0x14cb   :  { %v9513_v7 = vadd.f32 %v6098_v54, %v5235_v35  ;;  %v5234_v37 = vadd.f32 %v5213_v12, %v8697_v52 }
0x14cd   :  { %v9516_v63 = vadd.f32 %v6098_v54, %v5234_v37  ;;  %v5265_v60 = vsel %vm199_vm1, %v9513_v7, 0.0 }
0x14ce   :  { %5266 = vadd.xlane.f32.xlu0 %v5265_v60 }
0x14cf   :  { %v5262_v62 = vsel %vm199_vm1, %v9516_v63, 0.0 }
0x14d0   :  { %v7107_v41 = vpop.f32.mrf.mxu0 }
0x14d1   :  { %v5237_v18 = vadd.f32 %v7107_v41, %v8704_v11 }
0x14d2   :  { %5263 = vadd.xlane.f32.xlu0 %v5262_v62  ;;  %v5223_v47 = vpop.f32.mrf.mxu0 }
0x14d3   :  { %v9523_v23 = vadd.f32 %v6098_v54, %v5237_v18  ;;  %v5236_v51 = vadd.f32 %v5223_v47, %v8707_v55 }
0x14d5   :  { %v9526_v21 = vadd.f32 %v6098_v54, %v5236_v51  ;;  %v5271_v52 = vsel %vm199_vm1, %v9523_v23, 0.0 }
0x14d6   :  { %5272 = vadd.xlane.f32.xlu1 %v5271_v52 }
0x14d7   :  { %v5268_v4 = vsel %vm199_vm1, %v9526_v21, 0.0 }
0x14d8   :  { %5269 = vadd.xlane.f32.xlu0 %v5268_v4 }
0x1500   :  { %v5261_v11 = vpop.xlane.xlu1 %5260 }
0x1501   :  { %v5275_v16 = vmul.f32 0.03125, %v5261_v11 }
0x1502   :  { %v5258_v14 = vpop.xlane.xlu0 %5257 }
0x1503   :  { %v5281_v46 = vsub.f32 %v9503_v0, %v5275_v16  ;;  %v5274_v1 = vmul.f32 0.03125, %v5258_v14  ;;  %v6130_v16 = vld [vmem:[%s9782_s15 + $0xf8] sm:$0xff] }
0x1504   :  { %7125 = vmatprep.subr.mxu0 %v6130_v16 }
0x1505   :  { %v5280_v44 = vsub.f32 %v9506_v40, %v5274_v1  ;;  %v5287_v9 = vmul.f32 %v5281_v46, %v5281_v46  ;;  %7126 = vmatpush3.msra.mxu0 %v6130_v16  ;;  %v6129_v1 = vld [vmem:[%s9782_s15 + $0xf0] sm:$0xff] }
0x1506   :  { %7127 = vmatprep.subr.mxu0 %v6129_v1 }
0x1507   :  { %v5295_v55 = vsel %vm199_vm1, %v5287_v9, 0.0  ;;  %v5286_v59 = vmul.f32 %v5280_v44, %v5280_v44  ;;  %7128 = vmatpush3.msra.mxu0 %v6129_v1  ;;  %v6128_v9 = vld [vmem:[%s9782_s15 + $0xe8] sm:$0xff] }
0x1508   :  { %5296 = vadd.xlane.f32.xlu1 %v5295_v55  ;;  %7129 = vmatprep.subr.mxu0 %v6128_v9  ;;  %v6127_v55 = vld [vmem:[%s9782_s15 + $0xe0] sm:$0xff] }
0x1509   :  { %v5292_v29 = vsel %vm199_vm1, %v5286_v59, 0.0  ;;  %7130 = vmatpush3.msra.mxu0 %v6128_v9 }
0x150a   :  { %5293 = vadd.xlane.f32.xlu0 %v5292_v29  ;;  %7131 = vmatprep.subr.mxu0 %v6127_v55  ;;  %v6126_v29 = vld [vmem:[%s9782_s15 + $0xd8] sm:$0xff] }
0x150b   :  { %7132 = vmatpush3.msra.mxu0 %v6127_v55 }
0x150c   :  { %7133 = vmatprep.subr.mxu0 %v6126_v29 }
0x150d   :  { %7134 = vmatpush3.msra.mxu0 %v6126_v29 }
0x150e   :  { %7135 = vmatprep.subr.mxu0 %v6125_v61 }
0x150f   :  { %7136 = vmatpush3.msra.mxu0 %v6125_v61 }
0x1510   :  { %7137 = vmatprep.subr.mxu0 %v6124_v36 }
0x1511   :  { %7138 = vmatpush3.msra.mxu0 %v6124_v36 }
0x1557   :  { %v5267_v24 = vpop.xlane.xlu0 %5266 }
0x1558   :  { %v5277_v49 = vmul.f32 0.03125, %v5267_v24 }
0x155a   :  { %v9549_v20 = vsub.f32 %v9513_v7, %v5277_v49 }
0x155b   :  { %v5264_v10 = vpop.xlane.xlu0 %5263 }
0x155c   :  { %v5276_v30 = vmul.f32 0.03125, %v5264_v10  ;;  %v5289_v6 = vmul.f32 %v9549_v20, %v9549_v20 }
0x155e   :  { %v9554_v38 = vsub.f32 %v9516_v63, %v5276_v30  ;;  %v5301_v5 = vsel %vm199_vm1, %v5289_v6, 0.0  ;;  %v6122_v6 = vld [vmem:[%s9782_s15 + $0xb8] sm:$0xff] }
0x155f   :  { %v5273_v15 = vpop.xlane.xlu1 %5272  ;;  %5302 = vadd.xlane.f32.xlu1 %v5301_v5 }
0x1560   :  { %v5279_v42 = vmul.f32 0.03125, %v5273_v15  ;;  %v5288_v32 = vmul.f32 %v9554_v38, %v9554_v38 }
0x1561   :  { %v5270_v2 = vpop.xlane.xlu0 %5269 }
0x1562   :  { %v9560_v39 = vsub.f32 %v9523_v23, %v5279_v42  ;;  %v5278_v3 = vmul.f32 0.03125, %v5270_v2  ;;  %v5298_v27 = vsel %vm199_vm1, %v5288_v32, 0.0  ;;  %v6121_v32 = vld [vmem:[%s9782_s15 + $0xb0] sm:$0xff] }
0x1563   :  { %5299 = vadd.xlane.f32.xlu0 %v5298_v27 }
0x1564   :  { %v9564_v19 = vsub.f32 %v9526_v21, %v5278_v3  ;;  %v5291_v28 = vmul.f32 %v9560_v39, %v9560_v39  ;;  %v6120_v3 = vld [vmem:[%s9782_s15 + $0xa8] sm:$0xff] }
0x1566   :  { %v5307_v58 = vsel %vm199_vm1, %v5291_v28, 0.0  ;;  %v5290_v8 = vmul.f32 %v9564_v19, %v9564_v19  ;;  %v6119_v28 = vld [vmem:[%s9782_s15 + $0xa0] sm:$0xff] }
0x1567   :  { %5308 = vadd.xlane.f32.xlu1 %v5307_v58 }
0x1568   :  { %v5304_v22 = vsel %vm199_vm1, %v5290_v8, 0.0  ;;  %v6118_v8 = vld [vmem:[%s9782_s15 + $0x98] sm:$0xff] }
0x1569   :  { %5305 = vadd.xlane.f32.xlu0 %v5304_v22  ;;  %v6117_v22 = vld [vmem:[%s9782_s15 + $0x90] sm:$0xff] }
0x1591   :  { %v5297_v17 = vpop.xlane.xlu1 %5296 }
0x1592   :  { %v5311_v33 = vmul.f32 0.03125, %v5297_v17  ;;  %v6116_v17 = vld [vmem:[%s9782_s15 + $0x88] sm:$0xff] }
0x1593   :  { %v5294_v43 = vpop.xlane.xlu0 %5293 }
0x1594   :  { %v5317_v13 = vadd.f32 1e-06, %v5311_v33  ;;  %v5310_v50 = vmul.f32 0.03125, %v5294_v43  ;;  %v6115_v33 = vld [vmem:[%s9782_s15 + $0x80] sm:$0xff] }
0x1595   :  { %v6108_v43 = vld [vmem:[%s9783_s14 + $0x1] ss:$0 sm:$0xff] }
0x1596   :  { %7435 = vrsqrt.f32 %v5317_v13  ;;  %v5316_v48 = vadd.f32 1e-06, %v5310_v50 }
0x1598   :  { %7437 = vrsqrt.f32 %v5316_v48 }
0x15a3   :  { %v7436_v54 = vpop.eup %7435 }
0x15a4   :  { %v5329_v31 = vmul.f32 %v7436_v54, %v5281_v46 }
0x15a5   :  { %v7438_v53 = vpop.eup %7437 }
0x15a6   :  { %v5328_v34 = vmul.f32 %v7438_v53, %v5280_v44  ;;  %v5341_v26 = vmul.f32 %v9575_v25, %v5329_v31 }
0x15a8   :  { %v5340_v35 = vmul.f32 %v9575_v25, %v5328_v34  ;;  %v5353_v37 = vadd.f32 %v9581_v45, %v5341_v26 }
0x15aa   :  { %v5352_v12 = vadd.f32 %v9581_v45, %v5340_v35 }
0x15ac   :  { %7116 = vmatprep.mubr.msk.f32.mxu1 %vm199_vm1, %v5352_v12 }
0x15ad   :  { %7117 = vmatmul.mubr.msk.f32.vlgmr.msra.gmra.mxu1 %vm199_vm1, %v5353_v37 }
0x15e8   :  { %v5303_v60 = vpop.xlane.xlu1 %5302 }
0x15e9   :  { %v5313_v41 = vmul.f32 0.03125, %v5303_v60 }
0x15eb   :  { %v5319_v18 = vadd.f32 1e-06, %v5313_v41 }
0x15ec   :  { %v5300_v62 = vpop.xlane.xlu0 %5299 }
0x15ed   :  { %7439 = vrsqrt.f32 %v5319_v18  ;;  %v5312_v47 = vmul.f32 0.03125, %v5300_v62 }
0x15ef   :  { %v5318_v51 = vadd.f32 1e-06, %v5312_v47 }
0x15f0   :  { %v5309_v52 = vpop.xlane.xlu1 %5308 }
0x15f1   :  { %7441 = vrsqrt.f32 %v5318_v51  ;;  %v5315_v4 = vmul.f32 0.03125, %v5309_v52 }
0x15f2   :  { %v5306_v11 = vpop.xlane.xlu0 %5305 }
0x15f3   :  { %v5321_v14 = vadd.f32 1e-06, %v5315_v4  ;;  %v5314_v46 = vmul.f32 0.03125, %v5306_v11 }
0x15f5   :  { %7443 = vrsqrt.f32 %v5321_v14  ;;  %v5320_v44 = vadd.f32 1e-06, %v5314_v46 }
0x15f7   :  { %7445 = vrsqrt.f32 %v5320_v44 }
0x15fa   :  { %v7440_v59 = vpop.eup %7439 }
0x15fb   :  { %v5331_v57 = vmul.f32 %v7440_v59, %v9549_v20  ;;  %v6123_v20 = vld [vmem:[%s9782_s15 + $0xc0] sm:$0xff] }
0x15fc   :  { %7139 = vmatprep.subr.mxu0 %v6123_v20 }
0x15fd   :  { %v5343_v49 = vmul.f32 %v9575_v25, %v5331_v57  ;;  %7140 = vmatpush3.msra.mxu0 %v6123_v20 }
0x15fe   :  { %v7442_v56 = vpop.eup %7441  ;;  %7141 = vmatprep.subr.mxu0 %v6122_v6 }
0x15ff   :  { %v5330_v24 = vmul.f32 %v7442_v56, %v9554_v38  ;;  %v5355_v42 = vadd.f32 %v9581_v45, %v5343_v49  ;;  %7142 = vmatpush3.msra.mxu0 %v6122_v6 }
0x1600   :  { %7143 = vmatprep.subr.mxu0 %v6121_v32 }
0x1601   :  { %v5342_v10 = vmul.f32 %v9575_v25, %v5330_v24  ;;  %7144 = vmatpush3.msra.mxu0 %v6121_v32 }
0x1602   :  { %v7444_v30 = vpop.eup %7443  ;;  %7145 = vmatprep.subr.mxu0 %v6120_v3 }
0x1603   :  { %v5333_v5 = vmul.f32 %v7444_v30, %v9560_v39  ;;  %v5354_v38 = vadd.f32 %v9581_v45, %v5342_v10  ;;  %7146 = vmatpush3.msra.mxu0 %v6120_v3 }
0x1604   :  { %v7446_v15 = vpop.eup %7445  ;;  %7147 = vmatprep.subr.mxu0 %v6119_v28 }
0x1605   :  { %7119 = vmatprep.mubr.msk.f32.mxu1 %vm199_vm1, %v5354_v38  ;;  %v5332_v2 = vmul.f32 %v7446_v15, %v9564_v19  ;;  %v5345_v39 = vmul.f32 %v9575_v25, %v5333_v5  ;;  %7148 = vmatpush3.msra.mxu0 %v6119_v28 }
0x1606   :  { %7120 = vmatmul.mubr.msk.f32.gmra.mxu1 %vm199_vm1, %v5355_v42  ;;  %7149 = vmatprep.subr.mxu0 %v6118_v8 }
0x1607   :  { %v5344_v27 = vmul.f32 %v9575_v25, %v5332_v2  ;;  %v5357_v58 = vadd.f32 %v9581_v45, %v5345_v39  ;;  %7150 = vmatpush3.msra.mxu0 %v6118_v8 }
0x1608   :  { %7151 = vmatprep.subr.mxu0 %v6117_v22 }
0x1609   :  { %v5356_v19 = vadd.f32 %v9581_v45, %v5344_v27  ;;  %7152 = vmatpush3.msra.mxu0 %v6117_v22 }
0x160a   :  { %7153 = vmatprep.subr.mxu0 %v6116_v17 }
0x160b   :  { %7122 = vmatprep.mubr.msk.f32.mxu1 %vm199_vm1, %v5356_v19  ;;  %7154 = vmatpush3.msra.mxu0 %v6116_v17 }
0x160c   :  { %7123 = vmatmul.mubr.msk.f32.gmra.mxu1 %vm199_vm1, %v5357_v58  ;;  %7155 = vmatprep.subr.mxu0 %v6115_v33 }
0x160d   :  { %7156 = vmatpush3.msra.mxu0 %v6115_v33 }
0x166d   :  { %v7118_v13 = vpop.f32.mrf.mxu1 }
0x166e   :  { %v5461_v50 = vadd.f32 %v7118_v13, %v6108_v43 }
0x166f   :  { %v5455_v48 = vpop.f32.mrf.mxu1 }
0x1670   :  { %v5485_v54 = vmul.f32 %v5461_v50, %v5461_v50  ;;  %v5456_v25 = vadd.f32 %v6108_v43, %v5455_v48 }
0x1672   :  { %v5491_v31 = vmul.f32 %v5485_v54, %v5461_v50  ;;  %v5484_v53 = vmul.f32 %v5456_v25, %v5456_v25 }
0x1674   :  { %v5497_v34 = vmul.f32 0.044715, %v5491_v31  ;;  %v5490_v26 = vmul.f32 %v5484_v53, %v5456_v25 }
0x1676   :  { %v5503_v45 = vadd.f32 %v5497_v34, %v5461_v50  ;;  %v5496_v35 = vmul.f32 0.044715, %v5490_v26  ;;  %v6132_v26 = vld [vmem:[%s9784_s16 + $0x1] ss:$0 sm:$0xff] }
0x1678   :  { %v5509_v12 = vmul.f32 0.7978846, %v5503_v45  ;;  %v5502_v37 = vadd.f32 %v5496_v35, %v5456_v25 }
0x167a   :  { %7447 = vtanh.f32 %v5509_v12  ;;  %v5508_v60 = vmul.f32 0.7978846, %v5502_v37 }
0x167c   :  { %7449 = vtanh.f32 %v5508_v60 }
0x1687   :  { %v7448_v41 = vpop.eup %7447 }
0x1688   :  { %v5521_v18 = vadd.f32 1.0, %v7448_v41 }
0x1689   :  { %v7450_v62 = vpop.eup %7449 }
0x168a   :  { %v5520_v47 = vadd.f32 1.0, %v7450_v62  ;;  %v5527_v51 = vmul.f32 0.5, %v5521_v18 }
0x168c   :  { %v5526_v52 = vmul.f32 0.5, %v5520_v47  ;;  %v5533_v11 = vmul.f32 %v5527_v51, %v5461_v50 }
0x168e   :  { %v5532_v4 = vmul.f32 %v5526_v52, %v5456_v25 }
0x1690   :  { %7157 = vmatprep.mubr.f32.mxu0 %v5532_v4 }
0x1691   :  { %7158 = vmatmul.mubr.f32.vlgmr.msra.gmra.mxu0 %v5533_v11 }
0x16c6   :  { %v7121_v16 = vpop.f32.mrf.mxu1 }
0x16c7   :  { %v5471_v14 = vadd.f32 %v7121_v16, %v6108_v43 }
0x16c8   :  { %v5465_v46 = vpop.f32.mrf.mxu1 }
0x16c9   :  { %v5487_v1 = vmul.f32 %v5471_v14, %v5471_v14  ;;  %v5466_v44 = vadd.f32 %v6108_v43, %v5465_v46 }
0x16cb   :  { %v5493_v9 = vmul.f32 %v5487_v1, %v5471_v14  ;;  %v5486_v55 = vmul.f32 %v5466_v44, %v5466_v44 }
0x16cc   :  { %v7124_v59 = vpop.f32.mrf.mxu1 }
0x16cd   :  { %v5499_v29 = vmul.f32 0.044715, %v5493_v9  ;;  %v5492_v57 = vmul.f32 %v5486_v55, %v5466_v44  ;;  %v5481_v61 = vadd.f32 %v7124_v59, %v6108_v43 }
0x16ce   :  { %v5475_v56 = vpop.f32.mrf.mxu1 }
0x16cf   :  { %v5505_v36 = vadd.f32 %v5499_v29, %v5471_v14  ;;  %v5498_v24 = vmul.f32 0.044715, %v5492_v57  ;;  %v5489_v49 = vmul.f32 %v5481_v61, %v5481_v61  ;;  %v5476_v20 = vadd.f32 %v6108_v43, %v5475_v56 }
0x16d1   :  { %v5511_v10 = vmul.f32 0.7978846, %v5505_v36  ;;  %v5504_v30 = vadd.f32 %v5498_v24, %v5466_v44  ;;  %v5495_v6 = vmul.f32 %v5489_v49, %v5481_v61  ;;  %v5488_v5 = vmul.f32 %v5476_v20, %v5476_v20 }
0x16d3   :  { %7451 = vtanh.f32 %v5511_v10  ;;  %v5510_v38 = vmul.f32 0.7978846, %v5504_v30  ;;  %v5501_v15 = vmul.f32 0.044715, %v5495_v6  ;;  %v5494_v42 = vmul.f32 %v5488_v5, %v5476_v20 }
0x16d5   :  { %7453 = vtanh.f32 %v5510_v38  ;;  %v5507_v32 = vadd.f32 %v5501_v15, %v5481_v61  ;;  %v5500_v2 = vmul.f32 0.044715, %v5494_v42 }
0x16d7   :  { %v5513_v39 = vmul.f32 0.7978846, %v5507_v32  ;;  %v5506_v3 = vadd.f32 %v5500_v2, %v5476_v20 }
0x16d9   :  { %7455 = vtanh.f32 %v5513_v39  ;;  %v5512_v27 = vmul.f32 0.7978846, %v5506_v3 }
0x16db   :  { %7457 = vtanh.f32 %v5512_v27  ;;  %v5782_v27 = vld [vmem:[%s9785_s19 + $0x10] sm:$0xff] }
0x16e0   :  { %v7452_v28 = vpop.eup %7451 }
0x16e1   :  { %v5523_v19 = vadd.f32 1.0, %v7452_v28  ;;  %v5780_v28 = vld [vmem:[%s9785_s19] sm:$0xff] }
0x16e2   :  { %v7454_v58 = vpop.eup %7453 }
0x16e3   :  { %v5522_v8 = vadd.f32 1.0, %v7454_v58  ;;  %v5529_v22 = vmul.f32 0.5, %v5523_v19 }
0x16e5   :  { %v5528_v17 = vmul.f32 0.5, %v5522_v8  ;;  %v5535_v48 = vmul.f32 %v5529_v22, %v5471_v14 }
0x16e6   :  { %v7456_v33 = vpop.eup %7455 }
0x16e7   :  { %v5534_v43 = vmul.f32 %v5528_v17, %v5466_v44  ;;  %v5525_v13 = vadd.f32 1.0, %v7456_v33  ;;  %v9701_v17 = vld [vmem:[%s9786_s17] ss:$0 sm:$0xff] }
0x16e8   :  { %v7458_v50 = vpop.eup %7457 }
0x16e9   :  { %7160 = vmatprep.mubr.f32.mxu0 %v5534_v43  ;;  %v5524_v54 = vadd.f32 1.0, %v7458_v50  ;;  %v5531_v25 = vmul.f32 0.5, %v5525_v13  ;;  %v9706_v43 = vld [vmem:[%s9787_s18] ss:$0 sm:$0xff] }
0x16ea   :  { %7161 = vmatmul.mubr.f32.gmra.mxu0 %v5535_v48 }
0x16eb   :  { %v5530_v31 = vmul.f32 0.5, %v5524_v54  ;;  %v5537_v34 = vmul.f32 %v5531_v25, %v5481_v61 }
0x16ed   :  { %v5536_v53 = vmul.f32 %v5530_v31, %v5476_v20 }
0x16ef   :  { %7163 = vmatprep.mubr.f32.mxu0 %v5536_v53 }
0x16f0   :  { %7164 = vmatmul.mubr.f32.gmra.mxu0 %v5537_v34 }
0x1751   :  { %v7159_v45 = vpop.f32.mrf.mxu0 }
0x1752   :  { %v5635_v35 = vadd.f32 %v7159_v45, %v6132_v26 }
0x1753   :  { %v5629_v60 = vpop.f32.mrf.mxu0 }
0x1754   :  { %v5659_v12 = vadd.f32 %v5635_v35, %v9503_v0  ;;  %v5630_v30 = vadd.f32 %v6132_v26, %v5629_v60 }
0x1756   :  { %v5669_v37 = vsel %vm199_vm1, %v5659_v12, 0.0  ;;  %v5658_v32 = vadd.f32 %v5630_v30, %v9506_v40  ;;  %v5781_v40 = vld [vmem:[%s9785_s19 + $0x8] sm:$0xff] }
0x1757   :  { %5670 = vadd.xlane.f32.xlu0 %v5669_v37 }
0x1758   :  { %v5666_v3 = vsel %vm199_vm1, %v5658_v32, 0.0 }
0x17aa   :  { %v7162_v41 = vpop.f32.mrf.mxu0 }
0x17ab   :  { %v5645_v24 = vadd.f32 %v7162_v41, %v6132_v26 }
0x17ac   :  { %v5639_v18 = vpop.f32.mrf.mxu0 }
0x17ad   :  { %v5640_v62 = vadd.f32 %v6132_v26, %v5639_v18  ;;  %v5661_v38 = vadd.f32 %v5645_v24, %v9513_v7  ;;  %v5783_v7 = vld [vmem:[%s9785_s19 + $0x18] sm:$0xff] }
0x17ae   :  { %7166 = vmatprep.subr.mxu1 %v5783_v7 }
0x17af   :  { %v5660_v47 = vadd.f32 %v5640_v62, %v9516_v63  ;;  %v5675_v39 = vsel %vm199_vm1, %v5661_v38, 0.0  ;;  %7167 = vmatpush3.msra.mxu1 %v5783_v7  ;;  %v6135_v7 = vld [vmem:[%s9789_s20] ss:$0 sm:$0xff] }
0x17b0   :  { %v7165_v51 = vpop.f32.mrf.mxu0  ;;  %7168 = vmatprep.subr.mxu1 %v5782_v27 }
0x17b1   :  { %v5655_v52 = vadd.f32 %v7165_v51, %v6132_v26  ;;  %v5672_v4 = vsel %vm199_vm1, %v5660_v47, 0.0  ;;  %7169 = vmatpush3.msra.mxu1 %v5782_v27 }
0x17b2   :  { %5673 = vadd.xlane.f32.xlu1 %v5672_v4  ;;  %v5649_v11 = vpop.f32.mrf.mxu0  ;;  %7170 = vmatprep.subr.mxu1 %v5781_v40 }
0x17b3   :  { %v5663_v16 = vadd.f32 %v5655_v52, %v9523_v23  ;;  %v5650_v14 = vadd.f32 %v6132_v26, %v5649_v11  ;;  %7171 = vmatpush3.msra.mxu1 %v5781_v40 }
0x17b4   :  { %7172 = vmatprep.subr.mxu1 %v5780_v28 }
0x17b5   :  { %v5662_v0 = vadd.f32 %v5650_v14, %v9526_v21  ;;  %v5681_v46 = vsel %vm199_vm1, %v5663_v16, 0.0  ;;  %7173 = vmatpush3.msra.mxu1 %v5780_v28 }
0x17b6   :  { %5682 = vadd.xlane.f32.xlu1 %v5681_v46 }
0x17b7   :  { %v5678_v1 = vsel %vm199_vm1, %v5662_v0, 0.0 }
0x17b8   :  { %5679 = vadd.xlane.f32.xlu0 %v5678_v1 }
0x17e0   :  { %v5671_v44 = vpop.xlane.xlu0 %5670 }
0x17e1   :  { %v5685_v9 = vmul.f32 0.03125, %v5671_v44 }
0x17e3   :  { %v5691_v63 = vsub.f32 %v5659_v12, %v5685_v9 }
0x17e5   :  { %v5697_v55 = vmul.f32 %v5691_v63, %v5691_v63 }
0x17e7   :  { %v5705_v59 = vsel %vm199_vm1, %v5697_v55, 0.0 }
0x17e8   :  { %5706 = vadd.xlane.f32.xlu0 %v5705_v59 }
0x183b   :  { %v5674_v29 = vpop.xlane.xlu1 %5673 }
0x183c   :  { %v5686_v57 = vmul.f32 0.03125, %v5674_v29 }
0x183e   :  { %v9667_v61 = vsub.f32 %v5660_v47, %v5686_v57 }
0x183f   :  { %v5683_v23 = vpop.xlane.xlu1 %5682 }
0x1840   :  { %v5689_v56 = vmul.f32 0.03125, %v5683_v23  ;;  %v5698_v21 = vmul.f32 %v9667_v61, %v9667_v61 }
0x1841   :  { %v5680_v36 = vpop.xlane.xlu0 %5679 }
0x1842   :  { %v9671_v49 = vsub.f32 %v5663_v16, %v5689_v56  ;;  %v5688_v20 = vmul.f32 0.03125, %v5680_v36  ;;  %v5708_v10 = vsel %vm199_vm1, %v5698_v21, 0.0 }
0x1843   :  { %5709 = vadd.xlane.f32.xlu1 %v5708_v10 }
0x1844   :  { %v9674_v6 = vsub.f32 %v5662_v0, %v5688_v20  ;;  %v5701_v5 = vmul.f32 %v9671_v49, %v9671_v49 }
0x1846   :  { %v5717_v15 = vsel %vm199_vm1, %v5701_v5, 0.0  ;;  %v5700_v42 = vmul.f32 %v9674_v6, %v9674_v6 }
0x1847   :  { %5718 = vadd.xlane.f32.xlu1 %v5717_v15 }
0x1848   :  { %v5714_v2 = vsel %vm199_vm1, %v5700_v42, 0.0 }
0x1849   :  { %5715 = vadd.xlane.f32.xlu0 %v5714_v2 }
0x184b   :  { %5676 = vadd.xlane.f32.xlu1 %v5675_v39 }
0x184d   :  { %5667 = vadd.xlane.f32.xlu0 %v5666_v3 }
0x1871   :  { %v5707_v19 = vpop.xlane.xlu0 %5706 }
0x1872   :  { %v5721_v58 = vmul.f32 0.03125, %v5707_v19 }
0x1874   :  { %v5727_v8 = vadd.f32 1e-06, %v5721_v58 }
0x1876   :  { %7459 = vrsqrt.f32 %v5727_v8 }
0x1883   :  { %v7460_v22 = vpop.eup %7459 }
0x1884   :  { %v5739_v33 = vmul.f32 %v7460_v22, %v5691_v63 }
0x1886   :  { %v5751_v13 = vmul.f32 %v9701_v17, %v5739_v33 }
0x1888   :  { %v5763_v50 = vadd.f32 %v9706_v43, %v5751_v13 }
0x188a   :  { %v5769_v48 = vsel %vm199_vm1, %v5763_v50, 0.0  ;;  %7174 = vmatprep.mubr.msk.f32.mxu1 %vm199_vm1, %v5763_v50 }
0x188b   :  { %5775 = vst [vmem:[%s9788_s21 + $0x8] sm:$0xff] %v5769_v48 }
0x18cc   :  { %v5710_v54 = vpop.xlane.xlu1 %5709 }
0x18cd   :  { %v5722_v25 = vmul.f32 0.03125, %v5710_v54 }
0x18cf   :  { %v5728_v31 = vadd.f32 1e-06, %v5722_v25 }
0x18d0   :  { %v5719_v53 = vpop.xlane.xlu1 %5718 }
0x18d1   :  { %7461 = vrsqrt.f32 %v5728_v31  ;;  %v5725_v34 = vmul.f32 0.03125, %v5719_v53 }
0x18d2   :  { %v5716_v26 = vpop.xlane.xlu0 %5715 }
0x18d3   :  { %v5731_v45 = vadd.f32 1e-06, %v5725_v34  ;;  %v5724_v35 = vmul.f32 0.03125, %v5716_v26 }
0x18d4   :  { %v5677_v12 = vpop.xlane.xlu1 %5676 }
0x18d5   :  { %7463 = vrsqrt.f32 %v5731_v45  ;;  %v5730_v37 = vadd.f32 1e-06, %v5724_v35  ;;  %v5687_v60 = vmul.f32 0.03125, %v5677_v12 }
0x18d6   :  { %v5668_v41 = vpop.xlane.xlu0 %5667 }
0x18d7   :  { %7465 = vrsqrt.f32 %v5730_v37  ;;  %v5693_v18 = vsub.f32 %v5661_v38, %v5687_v60  ;;  %v5684_v62 = vmul.f32 0.03125, %v5668_v41 }
0x18d9   :  { %v5690_v47 = vsub.f32 %v5658_v32, %v5684_v62  ;;  %v5699_v51 = vmul.f32 %v5693_v18, %v5693_v18 }
0x18db   :  { %v5711_v52 = vsel %vm199_vm1, %v5699_v51, 0.0  ;;  %v5696_v4 = vmul.f32 %v5690_v47, %v5690_v47 }
0x18dc   :  { %5712 = vadd.xlane.f32.xlu1 %v5711_v52 }
0x18dd   :  { %v5702_v11 = vsel %vm199_vm1, %v5696_v4, 0.0 }
0x18de   :  { %v7462_v16 = vpop.eup %7461  ;;  %5703 = vadd.xlane.f32.xlu0 %v5702_v11 }
0x18df   :  { %v5740_v14 = vmul.f32 %v7462_v16, %v9667_v61 }
0x18e1   :  { %v5752_v0 = vmul.f32 %v9701_v17, %v5740_v14 }
0x18e2   :  { %v7464_v46 = vpop.eup %7463 }
0x18e3   :  { %v5764_v1 = vadd.f32 %v9706_v43, %v5752_v0  ;;  %v5743_v44 = vmul.f32 %v7464_v46, %v9671_v49 }
0x18e4   :  { %v7466_v9 = vpop.eup %7465 }
0x18e5   :  { %v5770_v63 = vsel %vm199_vm1, %v5764_v1, 0.0  ;;  %7175 = vmatmul.mubr.msk.f32.vlgmr.msra.gmra.mxu1 %vm199_vm1, %v5764_v1  ;;  %v5742_v55 = vmul.f32 %v7466_v9, %v9674_v6  ;;  %v5755_v59 = vmul.f32 %v9701_v17, %v5743_v44 }
0x18e6   :  { %5776 = vst [vmem:[%s9788_s21 + $0x10] sm:$0xff] %v5770_v63 }
0x18e7   :  { %v5754_v29 = vmul.f32 %v9701_v17, %v5742_v55  ;;  %v5767_v57 = vadd.f32 %v9706_v43, %v5755_v59 }
0x18e9   :  { %v5766_v61 = vadd.f32 %v9706_v43, %v5754_v29  ;;  %v5773_v23 = vsel %vm199_vm1, %v5767_v57, 0.0 }
0x18ea   :  { %5779 = vst [vmem:[%s9788_s21 + $0x28] sm:$0xff] %v5773_v23 }
0x18eb   :  { %v5772_v56 = vsel %vm199_vm1, %v5766_v61, 0.0  ;;  %7177 = vmatprep.mubr.msk.f32.mxu1 %vm199_vm1, %v5766_v61 }
0x18ec   :  { %5778 = vst [vmem:[%s9788_s21 + $0x20] sm:$0xff] %v5772_v56  ;;  %7178 = vmatmul.mubr.msk.f32.gmra.mxu1 %vm199_vm1, %v5767_v57 }
0x1965   :  { %v5713_v21 = vpop.xlane.xlu1 %5712 }
0x1966   :  { %v5723_v36 = vmul.f32 0.03125, %v5713_v21 }
0x1967   :  { %v5704_v24 = vpop.xlane.xlu0 %5703 }
0x1968   :  { %v5729_v49 = vadd.f32 1e-06, %v5723_v36  ;;  %v5720_v20 = vmul.f32 0.03125, %v5704_v24 }
0x196a   :  { %7467 = vrsqrt.f32 %v5729_v49  ;;  %v5726_v10 = vadd.f32 1e-06, %v5720_v20 }
0x196c   :  { %7469 = vrsqrt.f32 %v5726_v10 }
0x1977   :  { %v7468_v30 = vpop.eup %7467 }
0x1978   :  { %v5741_v6 = vmul.f32 %v7468_v30, %v5693_v18 }
0x1979   :  { %v7470_v5 = vpop.eup %7469 }
0x197a   :  { %v5753_v38 = vmul.f32 %v9701_v17, %v5741_v6  ;;  %v5738_v15 = vmul.f32 %v7470_v5, %v5690_v47 }
0x197c   :  { %v5765_v42 = vadd.f32 %v9706_v43, %v5753_v38  ;;  %v5750_v32 = vmul.f32 %v9701_v17, %v5738_v15 }
0x197e   :  { %v5771_v2 = vsel %vm199_vm1, %v5765_v42, 0.0  ;;  %v5762_v39 = vadd.f32 %v9706_v43, %v5750_v32 }
0x197f   :  { %5777 = vst [vmem:[%s9788_s21 + $0x18] sm:$0xff] %v5771_v2 }
0x1980   :  { %v5768_v3 = vsel %vm199_vm1, %v5762_v39, 0.0 }
0x1981   :  { %5774 = vst [vmem:[%s9788_s21] sm:$0xff] %v5768_v3 }
0x19a5   :  { %v7176_v27 = vpop.f32.mrf.mxu1 }
0x19a6   :  { %v5875_v40 = vadd.f32 %v7176_v27, %v6135_v7 }
0x19a7   :  { %v5869_v28 = vpop.f32.mrf.mxu1 }
0x19a8   :  { %5889 = vst [vmem:[%s9790_s22 + $0x8] sm:$0xff] %v5875_v40  ;;  %v5870_v19 = vadd.f32 %v6135_v7, %v5869_v28 }
0x19aa   :  { %5888 = vst [vmem:[%s9790_s22] sm:$0xff] %v5870_v19 }
0x19ac   :  { %v7179_v58 = vpop.f32.mrf.mxu1 }
0x19ad   :  { %v5885_v8 = vadd.f32 %v7179_v58, %v6135_v7 }
0x19ae   :  { %v5879_v22 = vpop.f32.mrf.mxu1 }
0x19af   :  { %5891 = vst [vmem:[%s9790_s22 + $0x18] sm:$0xff] %v5885_v8  ;;  %v5880_v17 = vadd.f32 %v6135_v7, %v5879_v22 }
0x19b1   :  { %5890 = vst [vmem:[%s9790_s22 + $0x10] sm:$0xff] %v5880_v17 }

</bundles_post_ra>
